<compile_context>
chip_gen: v6e
topology: v6e:2x2x1
jax: 0.10.0
libtpu: 0.0.40
codegen_flags: <defaults>
</compile_context>

<pallas_src>
import functools
import math

import jax
import jax.numpy as jnp
from jax.experimental import pallas as pl
from jax.experimental.pallas import tpu as pltpu

LANE = 128       # TPU lane width
SUBLANE = 8      # f32 sublane count

CFG = (64, 'M', 128, 'M', 512, 'M')   # flattened feature dim = 512 at 1x1
OUT_CHANNELS = 10


def _round_up(v, m):
    return (v + m - 1) // m * m


def _raster_rows(H, W):
    """Rows of the per-image zero-padded raster slab ((H+2)*(W+2), 8-aligned)."""
    return _round_up((H + 2) * (W + 2), SUBLANE)


# ---------------------------------------------------------------------------
# Pallas kernels
# ---------------------------------------------------------------------------

def _conv3x3_relu_pool_kernel(x_ref, w_ref, b_ref, o_ref, acc_ref, *,
                              S, S_next, H, W, offsets, n_imgs, pool):
    """Conv2d(3x3, pad=1) + bias + ReLU (+ MaxPool2d(2,2)), raster in -> raster out.

    x_ref  : (n_imgs*S, K) bf16   stacked padded-raster (or im2col) slab
    w_ref  : (n_taps, K, Cout) bf16   resident full-Cout weights
    b_ref  : (1, Cout) f32
    o_ref  : (n_imgs*S_next, Cout)    NEXT layer's padded raster (zero padding
                                      provided by this kernel)
    acc_ref: (M_step, Cout) f32       VMEM staging for the pool epilogue
    """
    Wp = W + 2
    Wp_next = (W // 2 if pool else W) + 2
    cout = w_ref.shape[-1]
    M_acc = H * Wp - 2                     # excludes the last row's 2 garbage cols
    M_step = (n_imgs - 1) * S + M_acc      # all images of this step in ONE matmul

    # 9 taps (or 1 for the im2col'd first layer), each a shifted contiguous
    # row-slice of the raster feeding the MXU; garbage rows between images /
    # at padded columns are computed but never read back.
    # (Pairing taps to K=2*Cin would further fill the 256-deep v6e/v7x MXU.)
    acc = jnp.zeros((M_step, cout), jnp.float32)
    for t, off in enumerate(offsets):
        acc = acc + jnp.dot(x_ref[pl.ds(off, M_step), :], w_ref[t],
                            preferred_element_type=jnp.float32)
    acc_ref[...] = jnp.maximum(acc + b_ref[...], 0.0)

    # One unmasked, lane-dense store zeroes the whole output raster block --
    # it *is* the next layer's zero padding; valid rows are overwritten below.
    o_ref[...] = jnp.zeros(o_ref.shape, o_ref.dtype)

    if pool:
        Ho, Wo = H // 2, W // 2
        S2, W2 = S // 2, Wp // 2
        half = M_step // 2
        # Horizontal 2->1 max over the whole slab: raster-row parity equals
        # pixel-column parity (Wp and S are even), so two stride-2 slab loads
        # plus a single VPU max cover every image at once.
        even = acc_ref[pl.ds(0, half, stride=2), :]
        odd = acc_ref[pl.ds(1, half, stride=2), :]
        hmax = jnp.maximum(even, odd)                       # (half, cout)
        for n in range(n_imgs):
            for io in range(Ho):
                a0 = n * S2 + (2 * io) * W2
                a1 = n * S2 + (2 * io + 1) * W2
                row = jnp.maximum(hmax[a0:a0 + Wo], hmax[a1:a1 + Wo])
                dst = n * S_next + (io + 1) * Wp_next + 1   # interior raster rows
                o_ref[pl.ds(dst, Wo), :] = row.astype(o_ref.dtype)
    else:
        for n in range(n_imgs):
            for i in range(H):
                src = n * S + i * Wp
                dst = n * S_next + (i + 1) * Wp_next + 1
                o_ref[pl.ds(dst, W), :] = acc_ref[pl.ds(src, W), :].astype(o_ref.dtype)


def _conv3x3_relu_pool_fc_kernel(x_ref, w_ref, b_ref, fcw_ref, fcb_ref, o_ref, *,
                                 S, offsets, n_imgs):
    """Last stage, fully fused: Conv(3x3)+bias+ReLU on a 2x2 map, 2x2 maxpool to
    the 1x1x512 feature, then the Linear(512, out) classifier."""
    Wp = 4                                  # W == 2
    cout = w_ref.shape[-1]
    M_acc = 2 * Wp - 2
    M_step = (n_imgs - 1) * S + M_acc

    acc = jnp.zeros((M_step, cout), jnp.float32)
    for t, off in enumerate(offsets):
        acc = acc + jnp.dot(x_ref[pl.ds(off, M_step), :], w_ref[t],
                            preferred_element_type=jnp.float32)
    acc = jnp.maximum(acc + b_ref[...], 0.0)

    # Pool: per image the 1x1 feature is the max of conv rows (0,0),(0,1),(1,0),(1,1).
    rows = []
    for n in range(n_imgs):
        base = n * S
        rows.append(jnp.maximum(
            jnp.maximum(acc[base:base + 1], acc[base + 1:base + 2]),
            jnp.maximum(acc[base + Wp:base + Wp + 1], acc[base + Wp + 1:base + Wp + 2])))
    feat = rows[0] if n_imgs == 1 else jnp.concatenate(rows, axis=0)   # (n_imgs, cout)

    logits = jnp.dot(feat.astype(fcw_ref.dtype), fcw_ref[...],
                     preferred_element_type=jnp.float32) + fcb_ref[...]
    o_ref[...] = logits.astype(o_ref.dtype)


# ---------------------------------------------------------------------------
# pallas_call wrappers
# ---------------------------------------------------------------------------

def _pick_images_per_step(N, S, M_acc, max_acc_rows=256):
    """Images folded into one grid step: keep >=2 'parallel' steps when N > 1
    (v7x megacore) and bound the f32 accumulator (review: avoid vreg spills)."""
    best = 1
    for tb in range(1, N + 1):
        if N % tb:
            continue
        if N > 1 and N // tb < 2:
            continue
        if (tb - 1) * S + M_acc > max_acc_rows:
            continue
        best = tb
    return best


def conv_relu_pool(x_rast, w, b, *, N, S, H, W, offsets, pool,
                   out_dtype=jnp.bfloat16):
    """x_rast: (N*S, K) bf16 raster/im2col slab; w: (n_taps, K, Cout) bf16;
    b: (1, Cout) f32.  Returns the next layer's padded raster (N*S_next, Cout)."""
    n_taps, K, Cout = w.shape
    assert x_rast.shape == (N * S, K)
    assert len(offsets) == n_taps
    if pool:
        assert H % 2 == 0 and W % 2 == 0, "2x2 maxpool needs even spatial dims"
        Ho, Wo = H // 2, W // 2
    else:
        Ho, Wo = H, W
    S_next = _raster_rows(Ho, Wo)
    M_acc = H * (W + 2) - 2
    TB = _pick_images_per_step(N, S, M_acc)
    G = N // TB
    M_step = (TB - 1) * S + M_acc
    # NOTE: at CIFAR-32 scale an explicit M grid axis would be needed to keep
    # the accumulator bounded; at these shapes the image chooser suffices.

    kernel = functools.partial(_conv3x3_relu_pool_kernel, S=S, S_next=S_next,
                               H=H, W=W, offsets=tuple(offsets),
                               n_imgs=TB, pool=pool)
    return pl.pallas_call(
        kernel,
        out_shape=jax.ShapeDtypeStruct((N * S_next, Cout), out_dtype),
        grid_spec=pltpu.PrefetchScalarGridSpec(
            num_scalar_prefetch=0,
            grid=(G,),
            in_specs=[
                pl.BlockSpec((TB * S, K), lambda g: (g, 0)),
                # Constant index map -> full weight slab fetched once, resident
                # across all grid steps (review: weight residency / full Cout).
                pl.BlockSpec((n_taps, K, Cout), lambda g: (0, 0, 0)),
                pl.BlockSpec((1, Cout), lambda g: (0, 0)),
            ],
            out_specs=pl.BlockSpec((TB * S_next, Cout), lambda g: (g, 0)),
            scratch_shapes=[pltpu.VMEM((M_step, Cout), jnp.float32)],
        ),
        compiler_params=pltpu.CompilerParams(
            dimension_semantics=("parallel",)),
    )(x_rast, w, b)


def conv_relu_pool_fc(x_rast, w, b, fcw, fcb, *, N, S, offsets, H, W):
    """Final fused stage (2x2 spatial): conv + ReLU + 2x2 pool + classifier."""
    assert H == 2 and W == 2, "fused classifier stage expects a 2x2 map"
    n_taps, K, Cout = w.shape
    Dout = fcw.shape[-1]
    assert x_rast.shape == (N * S, K) and fcw.shape[0] == Cout
    kernel = functools.partial(_conv3x3_relu_pool_fc_kernel,
                               S=S, offsets=tuple(offsets), n_imgs=N)
    vmem = pl.BlockSpec(memory_space=pltpu.MemorySpace.VMEM)
    return pl.pallas_call(
        kernel,
        out_shape=jax.ShapeDtypeStruct((N, Dout), jnp.float32),
        in_specs=[vmem] * 5,
        out_specs=vmem,
    )(x_rast, w, b, fcw, fcb)


# ---------------------------------------------------------------------------
# Parameters (mirrors VGG._initialize_weights) and one-time packing
# ---------------------------------------------------------------------------

def init_raw_params(key, in_channels=3, out_channels=OUT_CHANNELS, cfg=CFG):
    convs = []
    c_in = in_channels
    for v in cfg:
        if v == 'M':
            continue
        key, kw = jax.random.split(key)
        n = 3 * 3 * v                          # kh * kw * out_channels
        w = jax.random.normal(kw, (v, c_in, 3, 3), jnp.float32) * math.sqrt(2.0 / n)
        convs.append((w, jnp.zeros((v,), jnp.float32)))
        c_in = v
    key, kw = jax.random.split(key)
    fc_w = jax.random.normal(kw, (out_channels, 512), jnp.float32) * 0.01
    fc_b = jnp.zeros((out_channels,), jnp.float32)
    return {"convs": convs, "fc": (fc_w, fc_b)}


def pack_params(raw, cfg=CFG, in_channels=3):
    """Pack weights ONCE for the kernels: layer 1 as a (1, 9*Cin_pad, Cout_pad)
    im2col weight, later layers as (9, Cin_pad, Cout_pad); zero padding of extra
    in/out channels keeps the math identical.  bf16 weights, f32 biases."""
    packed = []
    prev_real, prev_pad = in_channels, None
    for li, (w, b) in enumerate(raw["convs"]):
        cout_real = w.shape[0]
        cout_pad = _round_up(cout_real, LANE)
        if li == 0:
            K = _round_up(9 * in_channels, SUBLANE)
            wk = jnp.transpose(w, (2, 3, 1, 0)).reshape(9 * in_channels, cout_real)
            wk = jnp.pad(wk, ((0, K - 9 * in_channels), (0, cout_pad - cout_real)))
            wk = wk.reshape(1, K, cout_pad)
        else:
            wk = jnp.transpose(w, (2, 3, 1, 0)).reshape(9, prev_real, cout_real)
            wk = jnp.pad(wk, ((0, 0), (0, prev_pad - prev_real),
                              (0, cout_pad - cout_real)))
        bk = jnp.pad(b, (0, cout_pad - cout_real)).reshape(1, cout_pad)
        packed.append((wk.astype(jnp.bfloat16), bk.astype(jnp.float32)))
        prev_real, prev_pad = cout_real, cout_pad

    fw, fb = raw["fc"]                          # (out, 512), (out,)
    dout, din = fw.shape
    assert din == prev_real, "classifier expects the last conv's channel count"
    dout_pad = _round_up(dout, LANE)
    fwp = jnp.pad(jnp.transpose(fw), ((0, prev_pad - din), (0, dout_pad - dout)))
    fbp = jnp.pad(fb, (0, dout_pad - dout)).reshape(1, dout_pad)
    return {"convs": packed,
            "fc": (fwp.astype(jnp.bfloat16), fbp.astype(jnp.float32))}


# ---------------------------------------------------------------------------
# Forward pass
# ---------------------------------------------------------------------------

def _prep_layer1_im2col(x_nchw, H, W):
    """NCHW input -> (N*S, K) bf16 layer-1 im2col slab (K = 9*Cin, 8-aligned).

    Rows follow padded-raster indexing m = i*(W+2) + w so the conv kernel's
    pool epilogue is identical to the 9-tap path; the K channel order matches
    the packed layer-1 weight ((dy*3+dx)*Cin + c)."""
    N, C, _, _ = x_nchw.shape
    Wp = W + 2
    M_acc = H * Wp - 2
    S = _round_up(M_acc, SUBLANE)
    K = _round_up(9 * C, SUBLANE)
    x = jnp.transpose(x_nchw, (0, 2, 3, 1))                         # NHWC
    xr = jnp.pad(x, ((0, 0), (1, 1), (1, 1), (0, 0))).reshape(N, (H + 2) * Wp, C)
    slabs = [xr[:, dy * Wp + dx: dy * Wp + dx + M_acc, :]
             for dy in range(3) for dx in range(3)]
    im = jnp.concatenate(slabs, axis=-1)                            # (N, M_acc, 9C)
    im = jnp.pad(im, ((0, 0), (0, S - M_acc), (0, K - 9 * C)))
    return im.reshape(N * S, K).astype(jnp.bfloat16), S


def vgg_forward(params, x_nchw, cfg=CFG, out_channels=OUT_CHANNELS):
    N, _, H, W = x_nchw.shape

    # Static per-conv schedule from cfg: (out_channels, pooled?)
    sched = []
    i = 0
    while i < len(cfg):
        v = cfg[i]
        assert v != 'M', "MaxPool not preceded by a conv is not supported"
        pool = (i + 1 < len(cfg)) and cfg[i + 1] == 'M'
        sched.append((v, pool))
        i += 2 if pool else 1
    n_convs = len(sched)
    assert len(params["convs"]) == n_convs

    # Layer 1: wrapper-side im2col (single K=9*Cin tap).
    cur, S = _prep_layer1_im2col(x_nchw, H, W)
    offsets = (0,)
    curH, curW = H, W

    for li, (_, pool) in enumerate(sched):
        w_p, b_p = params["convs"][li]
        last = li == n_convs - 1
        if last and pool and curH == 2 and curW == 2:
            # Fused final stage: conv + ReLU + 2x2->1x1 pool + Linear(512, out).
            fcw, fcb = params["fc"]
            logits = conv_relu_pool_fc(cur, w_p, b_p, fcw, fcb,
                                       N=N, S=S, offsets=offsets, H=curH, W=curW)
            # TODO(synk): the PyTorch forward calls `print(x.size())` (host-side side effect); omitted.
            return logits[:, :out_channels]
        cur = conv_relu_pool(cur, w_p, b_p, N=N, S=S, H=curH, W=curW,
                             offsets=offsets, pool=pool)
        if pool:
            curH, curW = curH // 2, curW // 2
        Wp = curW + 2
        S = _raster_rows(curH, curW)
        offsets = tuple(dy * Wp + dx for dy in range(3) for dx in range(3))

    # Fallback classifier (cfg did not end in a pooled 2x2 -> 1x1 conv stage):
    # let XLA emit the small GEMM.  Only the 1x1-spatial flatten is supported.
    assert curH == 1 and curW == 1, "classifier expects 512-dim (1x1) features"
    Cpad = cur.shape[-1]
    feat = cur.reshape(N, S, Cpad)[:, (curW + 2) + 1, :]     # the single valid row
    fcw, fcb = params["fc"]
    logits = jnp.dot(feat.astype(jnp.float32), fcw.astype(jnp.float32)) + fcb
    # TODO(synk): the PyTorch forward calls `print(x.size())` (host-side side effect); omitted.
    return logits[:, :out_channels]


# ---------------------------------------------------------------------------
# Pure-XLA f32 reference of the PyTorch module (for the self-check)
# ---------------------------------------------------------------------------

def reference_forward(raw, x_nchw, cfg=CFG):
    x = jnp.transpose(x_nchw, (0, 2, 3, 1))
    ci, i = 0, 0
    while i < len(cfg):
        w, b = raw["convs"][ci]
        wh = jnp.transpose(w, (2, 3, 1, 0))                  # HWIO
        x = jax.lax.conv_general_dilated(
            x, wh, window_strides=(1, 1), padding='SAME',
            dimension_numbers=('NHWC', 'HWIO', 'NHWC'))
        x = jnp.maximum(x + b, 0.0)
        if i + 1 < len(cfg) and cfg[i + 1] == 'M':
            n, hh, ww, cc = x.shape
            x = x.reshape(n, hh // 2, 2, ww // 2, 2, cc).max(axis=(2, 4))
            i += 2
        else:
            i += 1
        ci += 1
    feat = jnp.transpose(x, (0, 3, 1, 2)).reshape(x.shape[0], -1)
    fw, fb = raw["fc"]
    return feat @ fw.T + fb


if __name__ == "__main__":
    key = jax.random.PRNGKey(0)
    kparam, kx = jax.random.split(key)
    raw = init_raw_params(kparam, in_channels=3, out_channels=OUT_CHANNELS, cfg=CFG)
    params = pack_params(raw, cfg=CFG, in_channels=3)        # packed once, not per call
    # CIFAR-like NCHW input (as PyTorch): 8x8 so the three maxpools reach 1x1x512.
    x = jax.random.normal(kx, (2, 3, 8, 8), jnp.float32)

    fwd = jax.jit(vgg_forward)
    out = jax.block_until_ready(fwd(params, x))
    assert out.shape == (2, OUT_CHANNELS) and out.dtype == jnp.float32
    assert bool(jnp.all(jnp.isfinite(out)))

    # Correctness vs. the f32 XLA reference (bf16 MXU path => loose tolerance).
    ref = reference_forward(raw, x)
    err = float(jnp.max(jnp.abs(out - ref)))
    scale = float(jnp.max(jnp.abs(ref)))
    assert err <= 3e-2 + 3e-2 * scale, (err, scale)
    print("KERNEL_OK")
</pallas_src>

<mosaic_0001>
module attributes {stable_mosaic.version = 11 : i64} {
  func.func @_conv3x3_relu_pool_kernel(%arg0: i32, %arg1: memref<80x32xbf16, #tpu.memory_space<vmem>>, %arg2: memref<1x32x128xbf16, #tpu.memory_space<vmem>>, %arg3: memref<1x128xf32, #tpu.memory_space<vmem>>, %arg4: memref<40x128xbf16, #tpu.memory_space<vmem>>, %arg5: memref<78x128xf32, #tpu.memory_space<vmem>>) attributes {dimension_semantics = [#tpu.dimension_semantics<parallel>], iteration_bounds = array<i64: 2>, scalar_prefetch = 0 : i64, scratch_operands = 1 : i64, tpu.core_type = #tpu.core_type<tc>, window_params = [{transform_indices = @transform_0, window_bounds = array<i64: 80, 32>}, {pipeline_mode = #tpu.pipeline_mode<synchronous>, transform_indices = @transform_1, window_bounds = array<i64: 1, 32, 128>}, {pipeline_mode = #tpu.pipeline_mode<synchronous>, transform_indices = @transform_2, window_bounds = array<i64: 1, 128>}, {transform_indices = @transform_3, window_bounds = array<i64: 40, 128>}]} {
    %cst = arith.constant 0.000000e+00 : f32
    %0 = vector.broadcast %cst : f32 to vector<78x128xf32>
    %c0 = arith.constant 0 : index
    %c0_0 = arith.constant 0 : index
    %1 = vector.load %arg1[%c0, %c0_0] : memref<80x32xbf16, #tpu.memory_space<vmem>>, vector<78x32xbf16>
    %c0_1 = arith.constant 0 : index
    %c0_2 = arith.constant 0 : index
    %c0_3 = arith.constant 0 : index
    %2 = vector.load %arg2[%c0_1, %c0_2, %c0_3] : memref<1x32x128xbf16, #tpu.memory_space<vmem>>, vector<1x32x128xbf16>
    %3 = vector.shape_cast %2 : vector<1x32x128xbf16> to vector<32x128xbf16>
    %cst_4 = arith.constant dense<0.000000e+00> : vector<78x128xf32>
    %4 = tpu.matmul %1, %3, %cst_4 {dimension_numbers = #tpu.dot_dimension_numbers<[1], [0], [0], [1], [0, 0, 1, 1], [], []>} : vector<78x32xbf16>, vector<32x128xbf16>, vector<78x128xf32> -> vector<78x128xf32>
    %5 = arith.addf %0, %4 : vector<78x128xf32>
    %c0_5 = arith.constant 0 : index
    %c0_6 = arith.constant 0 : index
    %6 = vector.load %arg3[%c0_5, %c0_6] : memref<1x128xf32, #tpu.memory_space<vmem>>, vector<1x128xf32>
    %7 = vector.broadcast %6 : vector<1x128xf32> to vector<78x128xf32>
    %8 = arith.addf %5, %7 : vector<78x128xf32>
    %cst_7 = arith.constant 0.000000e+00 : f32
    %9 = vector.broadcast %cst_7 : f32 to vector<78x128xf32>
    %10 = arith.maximumf %8, %9 : vector<78x128xf32>
    %c0_8 = arith.constant 0 : index
    %c0_9 = arith.constant 0 : index
    %11 = vector.load %arg5[%c0_8, %c0_9] : memref<78x128xf32, #tpu.memory_space<vmem>>, vector<78x128xf32>
    tpu.vector_store %arg5[%c0_8, %c0_9], %10 {strides = array<i32>} : memref<78x128xf32, #tpu.memory_space<vmem>>, vector<78x128xf32>,
    %cst_10 = arith.constant 0.000000e+00 : bf16
    %12 = vector.broadcast %cst_10 : bf16 to vector<40x128xbf16>
    %c0_11 = arith.constant 0 : index
    %c0_12 = arith.constant 0 : index
    %13 = vector.load %arg4[%c0_11, %c0_12] : memref<40x128xbf16, #tpu.memory_space<vmem>>, vector<40x128xbf16>
    tpu.vector_store %arg4[%c0_11, %c0_12], %12 {strides = array<i32>} : memref<40x128xbf16, #tpu.memory_space<vmem>>, vector<40x128xbf16>,
    %c0_13 = arith.constant 0 : index
    %c0_14 = arith.constant 0 : index
    %14 = tpu.strided_load %arg5[%c0_13, %c0_14] {strides = array<i32: 2, 1>} : memref<78x128xf32, #tpu.memory_space<vmem>>, vector<39x128xf32>
    %c1 = arith.constant 1 : index
    %c0_15 = arith.constant 0 : index
    %15 = tpu.strided_load %arg5[%c1, %c0_15] {strides = array<i32: 2, 1>} : memref<78x128xf32, #tpu.memory_space<vmem>>, vector<39x128xf32>
    %16 = arith.maximumf %14, %15 : vector<39x128xf32>
    %17 = vector.extract_strided_slice %16 {offsets = [0, 0], sizes = [4, 128], strides = [1, 1]} : vector<39x128xf32> to vector<4x128xf32>
    %18 = vector.extract_strided_slice %16 {offsets = [5, 0], sizes = [4, 128], strides = [1, 1]} : vector<39x128xf32> to vector<4x128xf32>
    %19 = arith.maximumf %17, %18 : vector<4x128xf32>
    %20 = arith.truncf %19 : vector<4x128xf32> to vector<4x128xbf16>
    %c7 = arith.constant 7 : index
    %c0_16 = arith.constant 0 : index
    %21 = vector.load %arg4[%c7, %c0_16] : memref<40x128xbf16, #tpu.memory_space<vmem>>, vector<4x128xbf16>
    tpu.vector_store %arg4[%c7, %c0_16], %20 {strides = array<i32>} : memref<40x128xbf16, #tpu.memory_space<vmem>>, vector<4x128xbf16>,
    %22 = vector.extract_strided_slice %16 {offsets = [10, 0], sizes = [4, 128], strides = [1, 1]} : vector<39x128xf32> to vector<4x128xf32>
    %23 = vector.extract_strided_slice %16 {offsets = [15, 0], sizes = [4, 128], strides = [1, 1]} : vector<39x128xf32> to vector<4x128xf32>
    %24 = arith.maximumf %22, %23 : vector<4x128xf32>
    %25 = arith.truncf %24 : vector<4x128xf32> to vector<4x128xbf16>
    %c13 = arith.constant 13 : index
    %c0_17 = arith.constant 0 : index
    %26 = vector.load %arg4[%c13, %c0_17] : memref<40x128xbf16, #tpu.memory_space<vmem>>, vector<4x128xbf16>
    tpu.vector_store %arg4[%c13, %c0_17], %25 {strides = array<i32>} : memref<40x128xbf16, #tpu.memory_space<vmem>>, vector<4x128xbf16>,
    %27 = vector.extract_strided_slice %16 {offsets = [20, 0], sizes = [4, 128], strides = [1, 1]} : vector<39x128xf32> to vector<4x128xf32>
    %28 = vector.extract_strided_slice %16 {offsets = [25, 0], sizes = [4, 128], strides = [1, 1]} : vector<39x128xf32> to vector<4x128xf32>
    %29 = arith.maximumf %27, %28 : vector<4x128xf32>
    %30 = arith.truncf %29 : vector<4x128xf32> to vector<4x128xbf16>
    %c19 = arith.constant 19 : index
    %c0_18 = arith.constant 0 : index
    %31 = vector.load %arg4[%c19, %c0_18] : memref<40x128xbf16, #tpu.memory_space<vmem>>, vector<4x128xbf16>
    tpu.vector_store %arg4[%c19, %c0_18], %30 {strides = array<i32>} : memref<40x128xbf16, #tpu.memory_space<vmem>>, vector<4x128xbf16>,
    %32 = vector.extract_strided_slice %16 {offsets = [30, 0], sizes = [4, 128], strides = [1, 1]} : vector<39x128xf32> to vector<4x128xf32>
    %33 = vector.extract_strided_slice %16 {offsets = [35, 0], sizes = [4, 128], strides = [1, 1]} : vector<39x128xf32> to vector<4x128xf32>
    %34 = arith.maximumf %32, %33 : vector<4x128xf32>
    %35 = arith.truncf %34 : vector<4x128xf32> to vector<4x128xbf16>
    %c25 = arith.constant 25 : index
    %c0_19 = arith.constant 0 : index
    %36 = vector.load %arg4[%c25, %c0_19] : memref<40x128xbf16, #tpu.memory_space<vmem>>, vector<4x128xbf16>
    tpu.vector_store %arg4[%c25, %c0_19], %35 {strides = array<i32>} : memref<40x128xbf16, #tpu.memory_space<vmem>>, vector<4x128xbf16>,
    return
  }
  func.func @transform_0(%arg0: i32) -> (i32, i32) {
    %c0_i32 = arith.constant 0 : i32
    %c0_i32_0 = arith.constant 0 : i32
    return %arg0, %c0_i32 : i32, i32
  }
  func.func @transform_1(%arg0: i32) -> (i32, i32, i32) {
    %c0_i32 = arith.constant 0 : i32
    %c0_i32_0 = arith.constant 0 : i32
    %c0_i32_1 = arith.constant 0 : i32
    %c0_i32_2 = arith.constant 0 : i32
    return %c0_i32, %c0_i32_0, %c0_i32_1 : i32, i32, i32
  }
  func.func @transform_2(%arg0: i32) -> (i32, i32) {
    %c0_i32 = arith.constant 0 : i32
    %c0_i32_0 = arith.constant 0 : i32
    %c0_i32_1 = arith.constant 0 : i32
    return %c0_i32, %c0_i32_0 : i32, i32
  }
  func.func @transform_3(%arg0: i32) -> (i32, i32) {
    %c0_i32 = arith.constant 0 : i32
    %c0_i32_0 = arith.constant 0 : i32
    return %arg0, %c0_i32 : i32, i32
  }
}

module attributes {stable_mosaic.version = 11 : i64} {
  func.func @_conv3x3_relu_pool_fc_kernel(%arg0: memref<32x128xbf16, #tpu.memory_space<vmem>>, %arg1: memref<9x128x512xbf16, #tpu.memory_space<vmem>>, %arg2: memref<1x512xf32, #tpu.memory_space<vmem>>, %arg3: memref<512x128xbf16, #tpu.memory_space<vmem>>, %arg4: memref<1x128xf32, #tpu.memory_space<vmem>>, %arg5: memref<2x128xf32, #tpu.memory_space<vmem>>) attributes {dimension_semantics = [], scalar_prefetch = 0 : i64, scratch_operands = 0 : i64, tpu.core_type = #tpu.core_type<tc>} {
    %cst = arith.constant 0.000000e+00 : f32
    %0 = vector.broadcast %cst : f32 to vector<22x512xf32>
    %c0 = arith.constant 0 : index
    %c0_0 = arith.constant 0 : index
    %1 = vector.load %arg0[%c0, %c0_0] : memref<32x128xbf16, #tpu.memory_space<vmem>>, vector<22x128xbf16>
    %c0_1 = arith.constant 0 : index
    %c0_2 = arith.constant 0 : index
    %c0_3 = arith.constant 0 : index
    %2 = vector.load %arg1[%c0_1, %c0_2, %c0_3] : memref<9x128x512xbf16, #tpu.memory_space<vmem>>, vector<1x128x512xbf16>
    %3 = vector.shape_cast %2 : vector<1x128x512xbf16> to vector<128x512xbf16>
    %cst_4 = arith.constant dense<0.000000e+00> : vector<22x512xf32>
    %4 = tpu.matmul %1, %3, %cst_4 {dimension_numbers = #tpu.dot_dimension_numbers<[1], [0], [0], [1], [0, 0, 1, 1], [], []>} : vector<22x128xbf16>, vector<128x512xbf16>, vector<22x512xf32> -> vector<22x512xf32>
    %5 = arith.addf %0, %4 : vector<22x512xf32>
    %c1 = arith.constant 1 : index
    %c0_5 = arith.constant 0 : index
    %6 = vector.load %arg0[%c1, %c0_5] : memref<32x128xbf16, #tpu.memory_space<vmem>>, vector<22x128xbf16>
    %c1_6 = arith.constant 1 : index
    %c0_7 = arith.constant 0 : index
    %c0_8 = arith.constant 0 : index
    %7 = vector.load %arg1[%c1_6, %c0_7, %c0_8] : memref<9x128x512xbf16, #tpu.memory_space<vmem>>, vector<1x128x512xbf16>
    %8 = vector.shape_cast %7 : vector<1x128x512xbf16> to vector<128x512xbf16>
    %cst_9 = arith.constant dense<0.000000e+00> : vector<22x512xf32>
    %9 = tpu.matmul %6, %8, %cst_9 {dimension_numbers = #tpu.dot_dimension_numbers<[1], [0], [0], [1], [0, 0, 1, 1], [], []>} : vector<22x128xbf16>, vector<128x512xbf16>, vector<22x512xf32> -> vector<22x512xf32>
    %10 = arith.addf %5, %9 : vector<22x512xf32>
    %c2 = arith.constant 2 : index
    %c0_10 = arith.constant 0 : index
    %11 = vector.load %arg0[%c2, %c0_10] : memref<32x128xbf16, #tpu.memory_space<vmem>>, vector<22x128xbf16>
    %c2_11 = arith.constant 2 : index
    %c0_12 = arith.constant 0 : index
    %c0_13 = arith.constant 0 : index
    %12 = vector.load %arg1[%c2_11, %c0_12, %c0_13] : memref<9x128x512xbf16, #tpu.memory_space<vmem>>, vector<1x128x512xbf16>
    %13 = vector.shape_cast %12 : vector<1x128x512xbf16> to vector<128x512xbf16>
    %cst_14 = arith.constant dense<0.000000e+00> : vector<22x512xf32>
    %14 = tpu.matmul %11, %13, %cst_14 {dimension_numbers = #tpu.dot_dimension_numbers<[1], [0], [0], [1], [0, 0, 1, 1], [], []>} : vector<22x128xbf16>, vector<128x512xbf16>, vector<22x512xf32> -> vector<22x512xf32>
    %15 = arith.addf %10, %14 : vector<22x512xf32>
    %c4 = arith.constant 4 : index
    %c0_15 = arith.constant 0 : index
    %16 = vector.load %arg0[%c4, %c0_15] : memref<32x128xbf16, #tpu.memory_space<vmem>>, vector<22x128xbf16>
    %c3 = arith.constant 3 : index
    %c0_16 = arith.constant 0 : index
    %c0_17 = arith.constant 0 : index
    %17 = vector.load %arg1[%c3, %c0_16, %c0_17] : memref<9x128x512xbf16, #tpu.memory_space<vmem>>, vector<1x128x512xbf16>
    %18 = vector.shape_cast %17 : vector<1x128x512xbf16> to vector<128x512xbf16>
    %cst_18 = arith.constant dense<0.000000e+00> : vector<22x512xf32>
    %19 = tpu.matmul %16, %18, %cst_18 {dimension_numbers = #tpu.dot_dimension_numbers<[1], [0], [0], [1], [0, 0, 1, 1], [], []>} : vector<22x128xbf16>, vector<128x512xbf16>, vector<22x512xf32> -> vector<22x512xf32>
    %20 = arith.addf %15, %19 : vector<22x512xf32>
    %c5 = arith.constant 5 : index
    %c0_19 = arith.constant 0 : index
    %21 = vector.load %arg0[%c5, %c0_19] : memref<32x128xbf16, #tpu.memory_space<vmem>>, vector<22x128xbf16>
    %c4_20 = arith.constant 4 : index
    %c0_21 = arith.constant 0 : index
    %c0_22 = arith.constant 0 : index
    %22 = vector.load %arg1[%c4_20, %c0_21, %c0_22] : memref<9x128x512xbf16, #tpu.memory_space<vmem>>, vector<1x128x512xbf16>
    %23 = vector.shape_cast %22 : vector<1x128x512xbf16> to vector<128x512xbf16>
    %cst_23 = arith.constant dense<0.000000e+00> : vector<22x512xf32>
    %24 = tpu.matmul %21, %23, %cst_23 {dimension_numbers = #tpu.dot_dimension_numbers<[1], [0], [0], [1], [0, 0, 1, 1], [], []>} : vector<22x128xbf16>, vector<128x512xbf16>, vector<22x512xf32> -> vector<22x512xf32>
    %25 = arith.addf %20, %24 : vector<22x512xf32>
    %c6 = arith.constant 6 : index
    %c0_24 = arith.constant 0 : index
    %26 = vector.load %arg0[%c6, %c0_24] : memref<32x128xbf16, #tpu.memory_space<vmem>>, vector<22x128xbf16>
    %c5_25 = arith.constant 5 : index
    %c0_26 = arith.constant 0 : index
    %c0_27 = arith.constant 0 : index
    %27 = vector.load %arg1[%c5_25, %c0_26, %c0_27] : memref<9x128x512xbf16, #tpu.memory_space<vmem>>, vector<1x128x512xbf16>
    %28 = vector.shape_cast %27 : vector<1x128x512xbf16> to vector<128x512xbf16>
    %cst_28 = arith.constant dense<0.000000e+00> : vector<22x512xf32>
    %29 = tpu.matmul %26, %28, %cst_28 {dimension_numbers = #tpu.dot_dimension_numbers<[1], [0], [0], [1], [0, 0, 1, 1], [], []>} : vector<22x128xbf16>, vector<128x512xbf16>, vector<22x512xf32> -> vector<22x512xf32>
    %30 = arith.addf %25, %29 : vector<22x512xf32>
    %c8 = arith.constant 8 : index
    %c0_29 = arith.constant 0 : index
    %31 = vector.load %arg0[%c8, %c0_29] : memref<32x128xbf16, #tpu.memory_space<vmem>>, vector<22x128xbf16>
    %c6_30 = arith.constant 6 : index
    %c0_31 = arith.constant 0 : index
    %c0_32 = arith.constant 0 : index
    %32 = vector.load %arg1[%c6_30, %c0_31, %c0_32] : memref<9x128x512xbf16, #tpu.memory_space<vmem>>, vector<1x128x512xbf16>
    %33 = vector.shape_cast %32 : vector<1x128x512xbf16> to vector<128x512xbf16>
    %cst_33 = arith.constant dense<0.000000e+00> : vector<22x512xf32>
    %34 = tpu.matmul %31, %33, %cst_33 {dimension_numbers = #tpu.dot_dimension_numbers<[1], [0], [0], [1], [0, 0, 1, 1], [], []>} : vector<22x128xbf16>, vector<128x512xbf16>, vector<22x512xf32> -> vector<22x512xf32>
    %35 = arith.addf %30, %34 : vector<22x512xf32>
    %c9 = arith.constant 9 : index
    %c0_34 = arith.constant 0 : index
    %36 = vector.load %arg0[%c9, %c0_34] : memref<32x128xbf16, #tpu.memory_space<vmem>>, vector<22x128xbf16>
    %c7 = arith.constant 7 : index
    %c0_35 = arith.constant 0 : index
    %c0_36 = arith.constant 0 : index
    %37 = vector.load %arg1[%c7, %c0_35, %c0_36] : memref<9x128x512xbf16, #tpu.memory_space<vmem>>, vector<1x128x512xbf16>
    %38 = vector.shape_cast %37 : vector<1x128x512xbf16> to vector<128x512xbf16>
    %cst_37 = arith.constant dense<0.000000e+00> : vector<22x512xf32>
    %39 = tpu.matmul %36, %38, %cst_37 {dimension_numbers = #tpu.dot_dimension_numbers<[1], [0], [0], [1], [0, 0, 1, 1], [], []>} : vector<22x128xbf16>, vector<128x512xbf16>, vector<22x512xf32> -> vector<22x512xf32>
    %40 = arith.addf %35, %39 : vector<22x512xf32>
    %c10 = arith.constant 10 : index
    %c0_38 = arith.constant 0 : index
    %41 = vector.load %arg0[%c10, %c0_38] : memref<32x128xbf16, #tpu.memory_space<vmem>>, vector<22x128xbf16>
    %c8_39 = arith.constant 8 : index
    %c0_40 = arith.constant 0 : index
    %c0_41 = arith.constant 0 : index
    %42 = vector.load %arg1[%c8_39, %c0_40, %c0_41] : memref<9x128x512xbf16, #tpu.memory_space<vmem>>, vector<1x128x512xbf16>
    %43 = vector.shape_cast %42 : vector<1x128x512xbf16> to vector<128x512xbf16>
    %cst_42 = arith.constant dense<0.000000e+00> : vector<22x512xf32>
    %44 = tpu.matmul %41, %43, %cst_42 {dimension_numbers = #tpu.dot_dimension_numbers<[1], [0], [0], [1], [0, 0, 1, 1], [], []>} : vector<22x128xbf16>, vector<128x512xbf16>, vector<22x512xf32> -> vector<22x512xf32>
    %45 = arith.addf %40, %44 : vector<22x512xf32>
    %c0_43 = arith.constant 0 : index
    %c0_44 = arith.constant 0 : index
    %46 = vector.load %arg2[%c0_43, %c0_44] : memref<1x512xf32, #tpu.memory_space<vmem>>, vector<1x512xf32>
    %47 = vector.broadcast %46 : vector<1x512xf32> to vector<22x512xf32>
    %48 = arith.addf %45, %47 : vector<22x512xf32>
    %cst_45 = arith.constant 0.000000e+00 : f32
    %49 = vector.broadcast %cst_45 : f32 to vector<22x512xf32>
    %50 = arith.maximumf %48, %49 : vector<22x512xf32>
    %51 = vector.extract_strided_slice %50 {offsets = [0, 0], sizes = [1, 512], strides = [1, 1]} : vector<22x512xf32> to vector<1x512xf32>
    %52 = vector.extract_strided_slice %50 {offsets = [1, 0], sizes = [1, 512], strides = [1, 1]} : vector<22x512xf32> to vector<1x512xf32>
    %53 = arith.maximumf %51, %52 : vector<1x512xf32>
    %54 = vector.extract_strided_slice %50 {offsets = [4, 0], sizes = [1, 512], strides = [1, 1]} : vector<22x512xf32> to vector<1x512xf32>
    %55 = vector.extract_strided_slice %50 {offsets = [5, 0], sizes = [1, 512], strides = [1, 1]} : vector<22x512xf32> to vector<1x512xf32>
    %56 = arith.maximumf %54, %55 : vector<1x512xf32>
    %57 = arith.maximumf %53, %56 : vector<1x512xf32>
    %58 = vector.extract_strided_slice %50 {offsets = [16, 0], sizes = [1, 512], strides = [1, 1]} : vector<22x512xf32> to vector<1x512xf32>
    %59 = vector.extract_strided_slice %50 {offsets = [17, 0], sizes = [1, 512], strides = [1, 1]} : vector<22x512xf32> to vector<1x512xf32>
    %60 = arith.maximumf %58, %59 : vector<1x512xf32>
    %61 = vector.extract_strided_slice %50 {offsets = [20, 0], sizes = [1, 512], strides = [1, 1]} : vector<22x512xf32> to vector<1x512xf32>
    %62 = vector.extract_strided_slice %50 {offsets = [21, 0], sizes = [1, 512], strides = [1, 1]} : vector<22x512xf32> to vector<1x512xf32>
    %63 = arith.maximumf %61, %62 : vector<1x512xf32>
    %64 = arith.maximumf %60, %63 : vector<1x512xf32>
    %65 = tpu.concatenate %57, %64 in 0 : vector<1x512xf32>, vector<1x512xf32> -> vector<2x512xf32>
    %66 = arith.truncf %65 : vector<2x512xf32> to vector<2x512xbf16>
    %c0_46 = arith.constant 0 : index
    %c0_47 = arith.constant 0 : index
    %67 = vector.load %arg3[%c0_46, %c0_47] : memref<512x128xbf16, #tpu.memory_space<vmem>>, vector<512x128xbf16>
    %cst_48 = arith.constant dense<0.000000e+00> : vector<2x128xf32>
    %68 = tpu.matmul %66, %67, %cst_48 {dimension_numbers = #tpu.dot_dimension_numbers<[1], [0], [0], [1], [0, 0, 1, 1], [], []>} : vector<2x512xbf16>, vector<512x128xbf16>, vector<2x128xf32> -> vector<2x128xf32>
    %c0_49 = arith.constant 0 : index
    %c0_50 = arith.constant 0 : index
    %69 = vector.load %arg4[%c0_49, %c0_50] : memref<1x128xf32, #tpu.memory_space<vmem>>, vector<1x128xf32>
    %70 = vector.broadcast %69 : vector<1x128xf32> to vector<2x128xf32>
    %71 = arith.addf %68, %70 : vector<2x128xf32>
    %c0_51 = arith.constant 0 : index
    %c0_52 = arith.constant 0 : index
    %72 = vector.load %arg5[%c0_51, %c0_52] : memref<2x128xf32, #tpu.memory_space<vmem>>, vector<2x128xf32>
    tpu.vector_store %arg5[%c0_51, %c0_52], %71 {strides = array<i32>} : memref<2x128xf32, #tpu.memory_space<vmem>>, vector<2x128xf32>,
    return
  }
}

module attributes {stable_mosaic.version = 11 : i64} {
  func.func @_conv3x3_relu_pool_kernel(%arg0: i32, %arg1: memref<40x128xbf16, #tpu.memory_space<vmem>>, %arg2: memref<9x128x128xbf16, #tpu.memory_space<vmem>>, %arg3: memref<1x128xf32, #tpu.memory_space<vmem>>, %arg4: memref<16x128xbf16, #tpu.memory_space<vmem>>, %arg5: memref<22x128xf32, #tpu.memory_space<vmem>>) attributes {dimension_semantics = [#tpu.dimension_semantics<parallel>], iteration_bounds = array<i64: 2>, scalar_prefetch = 0 : i64, scratch_operands = 1 : i64, tpu.core_type = #tpu.core_type<tc>, window_params = [{transform_indices = @transform_0, window_bounds = array<i64: 40, 128>}, {pipeline_mode = #tpu.pipeline_mode<synchronous>, transform_indices = @transform_1, window_bounds = array<i64: 9, 128, 128>}, {pipeline_mode = #tpu.pipeline_mode<synchronous>, transform_indices = @transform_2, window_bounds = array<i64: 1, 128>}, {transform_indices = @transform_3, window_bounds = array<i64: 16, 128>}]} {
    %cst = arith.constant 0.000000e+00 : f32
    %0 = vector.broadcast %cst : f32 to vector<22x128xf32>
    %c0 = arith.constant 0 : index
    %c0_0 = arith.constant 0 : index
    %1 = vector.load %arg1[%c0, %c0_0] : memref<40x128xbf16, #tpu.memory_space<vmem>>, vector<22x128xbf16>
    %c0_1 = arith.constant 0 : index
    %c0_2 = arith.constant 0 : index
    %c0_3 = arith.constant 0 : index
    %2 = vector.load %arg2[%c0_1, %c0_2, %c0_3] : memref<9x128x128xbf16, #tpu.memory_space<vmem>>, vector<1x128x128xbf16>
    %3 = vector.shape_cast %2 : vector<1x128x128xbf16> to vector<128x128xbf16>
    %cst_4 = arith.constant dense<0.000000e+00> : vector<22x128xf32>
    %4 = tpu.matmul %1, %3, %cst_4 {dimension_numbers = #tpu.dot_dimension_numbers<[1], [0], [0], [1], [0, 0, 1, 1], [], []>} : vector<22x128xbf16>, vector<128x128xbf16>, vector<22x128xf32> -> vector<22x128xf32>
    %5 = arith.addf %0, %4 : vector<22x128xf32>
    %c1 = arith.constant 1 : index
    %c0_5 = arith.constant 0 : index
    %6 = vector.load %arg1[%c1, %c0_5] : memref<40x128xbf16, #tpu.memory_space<vmem>>, vector<22x128xbf16>
    %c1_6 = arith.constant 1 : index
    %c0_7 = arith.constant 0 : index
    %c0_8 = arith.constant 0 : index
    %7 = vector.load %arg2[%c1_6, %c0_7, %c0_8] : memref<9x128x128xbf16, #tpu.memory_space<vmem>>, vector<1x128x128xbf16>
    %8 = vector.shape_cast %7 : vector<1x128x128xbf16> to vector<128x128xbf16>
    %cst_9 = arith.constant dense<0.000000e+00> : vector<22x128xf32>
    %9 = tpu.matmul %6, %8, %cst_9 {dimension_numbers = #tpu.dot_dimension_numbers<[1], [0], [0], [1], [0, 0, 1, 1], [], []>} : vector<22x128xbf16>, vector<128x128xbf16>, vector<22x128xf32> -> vector<22x128xf32>
    %10 = arith.addf %5, %9 : vector<22x128xf32>
    %c2 = arith.constant 2 : index
    %c0_10 = arith.constant 0 : index
    %11 = vector.load %arg1[%c2, %c0_10] : memref<40x128xbf16, #tpu.memory_space<vmem>>, vector<22x128xbf16>
    %c2_11 = arith.constant 2 : index
    %c0_12 = arith.constant 0 : index
    %c0_13 = arith.constant 0 : index
    %12 = vector.load %arg2[%c2_11, %c0_12, %c0_13] : memref<9x128x128xbf16, #tpu.memory_space<vmem>>, vector<1x128x128xbf16>
    %13 = vector.shape_cast %12 : vector<1x128x128xbf16> to vector<128x128xbf16>
    %cst_14 = arith.constant dense<0.000000e+00> : vector<22x128xf32>
    %14 = tpu.matmul %11, %13, %cst_14 {dimension_numbers = #tpu.dot_dimension_numbers<[1], [0], [0], [1], [0, 0, 1, 1], [], []>} : vector<22x128xbf16>, vector<128x128xbf16>, vector<22x128xf32> -> vector<22x128xf32>
    %15 = arith.addf %10, %14 : vector<22x128xf32>
    %c6 = arith.constant 6 : index
    %c0_15 = arith.constant 0 : index
    %16 = vector.load %arg1[%c6, %c0_15] : memref<40x128xbf16, #tpu.memory_space<vmem>>, vector<22x128xbf16>
    %c3 = arith.constant 3 : index
    %c0_16 = arith.constant 0 : index
    %c0_17 = arith.constant 0 : index
    %17 = vector.load %arg2[%c3, %c0_16, %c0_17] : memref<9x128x128xbf16, #tpu.memory_space<vmem>>, vector<1x128x128xbf16>
    %18 = vector.shape_cast %17 : vector<1x128x128xbf16> to vector<128x128xbf16>
    %cst_18 = arith.constant dense<0.000000e+00> : vector<22x128xf32>
    %19 = tpu.matmul %16, %18, %cst_18 {dimension_numbers = #tpu.dot_dimension_numbers<[1], [0], [0], [1], [0, 0, 1, 1], [], []>} : vector<22x128xbf16>, vector<128x128xbf16>, vector<22x128xf32> -> vector<22x128xf32>
    %20 = arith.addf %15, %19 : vector<22x128xf32>
    %c7 = arith.constant 7 : index
    %c0_19 = arith.constant 0 : index
    %21 = vector.load %arg1[%c7, %c0_19] : memref<40x128xbf16, #tpu.memory_space<vmem>>, vector<22x128xbf16>
    %c4 = arith.constant 4 : index
    %c0_20 = arith.constant 0 : index
    %c0_21 = arith.constant 0 : index
    %22 = vector.load %arg2[%c4, %c0_20, %c0_21] : memref<9x128x128xbf16, #tpu.memory_space<vmem>>, vector<1x128x128xbf16>
    %23 = vector.shape_cast %22 : vector<1x128x128xbf16> to vector<128x128xbf16>
    %cst_22 = arith.constant dense<0.000000e+00> : vector<22x128xf32>
    %24 = tpu.matmul %21, %23, %cst_22 {dimension_numbers = #tpu.dot_dimension_numbers<[1], [0], [0], [1], [0, 0, 1, 1], [], []>} : vector<22x128xbf16>, vector<128x128xbf16>, vector<22x128xf32> -> vector<22x128xf32>
    %25 = arith.addf %20, %24 : vector<22x128xf32>
    %c8 = arith.constant 8 : index
    %c0_23 = arith.constant 0 : index
    %26 = vector.load %arg1[%c8, %c0_23] : memref<40x128xbf16, #tpu.memory_space<vmem>>, vector<22x128xbf16>
    %c5 = arith.constant 5 : index
    %c0_24 = arith.constant 0 : index
    %c0_25 = arith.constant 0 : index
    %27 = vector.load %arg2[%c5, %c0_24, %c0_25] : memref<9x128x128xbf16, #tpu.memory_space<vmem>>, vector<1x128x128xbf16>
    %28 = vector.shape_cast %27 : vector<1x128x128xbf16> to vector<128x128xbf16>
    %cst_26 = arith.constant dense<0.000000e+00> : vector<22x128xf32>
    %29 = tpu.matmul %26, %28, %cst_26 {dimension_numbers = #tpu.dot_dimension_numbers<[1], [0], [0], [1], [0, 0, 1, 1], [], []>} : vector<22x128xbf16>, vector<128x128xbf16>, vector<22x128xf32> -> vector<22x128xf32>
    %30 = arith.addf %25, %29 : vector<22x128xf32>
    %c12 = arith.constant 12 : index
    %c0_27 = arith.constant 0 : index
    %31 = vector.load %arg1[%c12, %c0_27] : memref<40x128xbf16, #tpu.memory_space<vmem>>, vector<22x128xbf16>
    %c6_28 = arith.constant 6 : index
    %c0_29 = arith.constant 0 : index
    %c0_30 = arith.constant 0 : index
    %32 = vector.load %arg2[%c6_28, %c0_29, %c0_30] : memref<9x128x128xbf16, #tpu.memory_space<vmem>>, vector<1x128x128xbf16>
    %33 = vector.shape_cast %32 : vector<1x128x128xbf16> to vector<128x128xbf16>
    %cst_31 = arith.constant dense<0.000000e+00> : vector<22x128xf32>
    %34 = tpu.matmul %31, %33, %cst_31 {dimension_numbers = #tpu.dot_dimension_numbers<[1], [0], [0], [1], [0, 0, 1, 1], [], []>} : vector<22x128xbf16>, vector<128x128xbf16>, vector<22x128xf32> -> vector<22x128xf32>
    %35 = arith.addf %30, %34 : vector<22x128xf32>
    %c13 = arith.constant 13 : index
    %c0_32 = arith.constant 0 : index
    %36 = vector.load %arg1[%c13, %c0_32] : memref<40x128xbf16, #tpu.memory_space<vmem>>, vector<22x128xbf16>
    %c7_33 = arith.constant 7 : index
    %c0_34 = arith.constant 0 : index
    %c0_35 = arith.constant 0 : index
    %37 = vector.load %arg2[%c7_33, %c0_34, %c0_35] : memref<9x128x128xbf16, #tpu.memory_space<vmem>>, vector<1x128x128xbf16>
    %38 = vector.shape_cast %37 : vector<1x128x128xbf16> to vector<128x128xbf16>
    %cst_36 = arith.constant dense<0.000000e+00> : vector<22x128xf32>
    %39 = tpu.matmul %36, %38, %cst_36 {dimension_numbers = #tpu.dot_dimension_numbers<[1], [0], [0], [1], [0, 0, 1, 1], [], []>} : vector<22x128xbf16>, vector<128x128xbf16>, vector<22x128xf32> -> vector<22x128xf32>
    %40 = arith.addf %35, %39 : vector<22x128xf32>
    %c14 = arith.constant 14 : index
    %c0_37 = arith.constant 0 : index
    %41 = vector.load %arg1[%c14, %c0_37] : memref<40x128xbf16, #tpu.memory_space<vmem>>, vector<22x128xbf16>
    %c8_38 = arith.constant 8 : index
    %c0_39 = arith.constant 0 : index
    %c0_40 = arith.constant 0 : index
    %42 = vector.load %arg2[%c8_38, %c0_39, %c0_40] : memref<9x128x128xbf16, #tpu.memory_space<vmem>>, vector<1x128x128xbf16>
    %43 = vector.shape_cast %42 : vector<1x128x128xbf16> to vector<128x128xbf16>
    %cst_41 = arith.constant dense<0.000000e+00> : vector<22x128xf32>
    %44 = tpu.matmul %41, %43, %cst_41 {dimension_numbers = #tpu.dot_dimension_numbers<[1], [0], [0], [1], [0, 0, 1, 1], [], []>} : vector<22x128xbf16>, vector<128x128xbf16>, vector<22x128xf32> -> vector<22x128xf32>
    %45 = arith.addf %40, %44 : vector<22x128xf32>
    %c0_42 = arith.constant 0 : index
    %c0_43 = arith.constant 0 : index
    %46 = vector.load %arg3[%c0_42, %c0_43] : memref<1x128xf32, #tpu.memory_space<vmem>>, vector<1x128xf32>
    %47 = vector.broadcast %46 : vector<1x128xf32> to vector<22x128xf32>
    %48 = arith.addf %45, %47 : vector<22x128xf32>
    %cst_44 = arith.constant 0.000000e+00 : f32
    %49 = vector.broadcast %cst_44 : f32 to vector<22x128xf32>
    %50 = arith.maximumf %48, %49 : vector<22x128xf32>
    %c0_45 = arith.constant 0 : index
    %c0_46 = arith.constant 0 : index
    %51 = vector.load %arg5[%c0_45, %c0_46] : memref<22x128xf32, #tpu.memory_space<vmem>>, vector<22x128xf32>
    tpu.vector_store %arg5[%c0_45, %c0_46], %50 {strides = array<i32>} : memref<22x128xf32, #tpu.memory_space<vmem>>, vector<22x128xf32>,
    %cst_47 = arith.constant 0.000000e+00 : bf16
    %52 = vector.broadcast %cst_47 : bf16 to vector<16x128xbf16>
    %c0_48 = arith.constant 0 : index
    %c0_49 = arith.constant 0 : index
    %53 = vector.load %arg4[%c0_48, %c0_49] : memref<16x128xbf16, #tpu.memory_space<vmem>>, vector<16x128xbf16>
    tpu.vector_store %arg4[%c0_48, %c0_49], %52 {strides = array<i32>} : memref<16x128xbf16, #tpu.memory_space<vmem>>, vector<16x128xbf16>,
    %c0_50 = arith.constant 0 : index
    %c0_51 = arith.constant 0 : index
    %54 = tpu.strided_load %arg5[%c0_50, %c0_51] {strides = array<i32: 2, 1>} : memref<22x128xf32, #tpu.memory_space<vmem>>, vector<11x128xf32>
    %c1_52 = arith.constant 1 : index
    %c0_53 = arith.constant 0 : index
    %55 = tpu.strided_load %arg5[%c1_52, %c0_53] {strides = array<i32: 2, 1>} : memref<22x128xf32, #tpu.memory_space<vmem>>, vector<11x128xf32>
    %56 = arith.maximumf %54, %55 : vector<11x128xf32>
    %57 = vector.extract_strided_slice %56 {offsets = [0, 0], sizes = [2, 128], strides = [1, 1]} : vector<11x128xf32> to vector<2x128xf32>
    %58 = vector.extract_strided_slice %56 {offsets = [3, 0], sizes = [2, 128], strides = [1, 1]} : vector<11x128xf32> to vector<2x128xf32>
    %59 = arith.maximumf %57, %58 : vector<2x128xf32>
    %60 = arith.truncf %59 : vector<2x128xf32> to vector<2x128xbf16>
    %c5_54 = arith.constant 5 : index
    %c0_55 = arith.constant 0 : index
    %61 = vector.load %arg4[%c5_54, %c0_55] : memref<16x128xbf16, #tpu.memory_space<vmem>>, vector<2x128xbf16>
    tpu.vector_store %arg4[%c5_54, %c0_55], %60 {strides = array<i32>} : memref<16x128xbf16, #tpu.memory_space<vmem>>, vector<2x128xbf16>,
    %62 = vector.extract_strided_slice %56 {offsets = [6, 0], sizes = [2, 128], strides = [1, 1]} : vector<11x128xf32> to vector<2x128xf32>
    %63 = vector.extract_strided_slice %56 {offsets = [9, 0], sizes = [2, 128], strides = [1, 1]} : vector<11x128xf32> to vector<2x128xf32>
    %64 = arith.maximumf %62, %63 : vector<2x128xf32>
    %65 = arith.truncf %64 : vector<2x128xf32> to vector<2x128xbf16>
    %c9 = arith.constant 9 : index
    %c0_56 = arith.constant 0 : index
    %66 = vector.load %arg4[%c9, %c0_56] : memref<16x128xbf16, #tpu.memory_space<vmem>>, vector<2x128xbf16>
    tpu.vector_store %arg4[%c9, %c0_56], %65 {strides = array<i32>} : memref<16x128xbf16, #tpu.memory_space<vmem>>, vector<2x128xbf16>,
    return
  }
  func.func @transform_0(%arg0: i32) -> (i32, i32) {
    %c0_i32 = arith.constant 0 : i32
    %c0_i32_0 = arith.constant 0 : i32
    return %arg0, %c0_i32 : i32, i32
  }
  func.func @transform_1(%arg0: i32) -> (i32, i32, i32) {
    %c0_i32 = arith.constant 0 : i32
    %c0_i32_0 = arith.constant 0 : i32
    %c0_i32_1 = arith.constant 0 : i32
    %c0_i32_2 = arith.constant 0 : i32
    return %c0_i32, %c0_i32_0, %c0_i32_1 : i32, i32, i32
  }
  func.func @transform_2(%arg0: i32) -> (i32, i32) {
    %c0_i32 = arith.constant 0 : i32
    %c0_i32_0 = arith.constant 0 : i32
    %c0_i32_1 = arith.constant 0 : i32
    return %c0_i32, %c0_i32_0 : i32, i32
  }
  func.func @transform_3(%arg0: i32) -> (i32, i32) {
    %c0_i32 = arith.constant 0 : i32
    %c0_i32_0 = arith.constant 0 : i32
    return %arg0, %c0_i32 : i32, i32
  }
}

</mosaic_0001>

<bundles_post_ra>
// kernel: vgg_forward.3
= control target key start
LH: loop header
LB: loop body
LE: loop exit
PB: predicated region body
PF: predicated region fallthrough
CT: control target
= control target key end

     0   :  { %8 = vsyncpa [#allocation4], 0  ;;  %s939_s0 = inlined_call_operand.vmem [shape: bf16[160,32], index: 0, kind: input, shape index: {}]   ;;  %s940_s1 = inlined_call_operand.hbm [shape: bf16[1,32,128], index: 1, kind: input, shape index: {}]   ;;  %s941_s2 = inlined_call_operand.hbm [shape: f32[1,128], index: 2, kind: input, shape index: {}]   ;;  %s942_s3 = inlined_call_operand.vmem [shape: bf16[80,128], index: 3, kind: output, shape index: {}]  }
   0x1   :  { %9 = vsyncpa [#allocation6], 0  ;;  %s813_s12 = smov 0  }
   0x2 LB: > { %s819_s13 = sadd.s32 4294967295, %s784_s12   ;;  %p608_p0 = scmp.ge.s32.totalorder %s784_s12, 1  ;;  %s784_s12 = sphi %s813_s12, %s15_s12  }
   0x3   : > { %p114_p1 = scmp.lt.s32.totalorder %s784_s12, 3  ;;  %s786_s14 = smov [#allocation3]  }
   0x4   : > { %s126_s15 = sshll.u32 %s786_s14, 4  ;;  %p692_p3 = scmp.eq.s32.totalorder %s819_s13, 0  ;;  %s127_s15 = int_to_ptr.vmem [resolvable:$true] %s126_s15 }
   0x5   : > { %p823_p2 = pnand %p608_p0, %p114_p1  ;;  %s787_s17 = smov [#allocation5]  }
   0x6   : > { %s140_s18 = sshll.u32 %s787_s17, 4  ;;  %s729_s20 = scalar_lea.vmem %s127_s15, 256  ;;  %s141_s18 = int_to_ptr.vmem [resolvable:$true] %s140_s18 }
   0x7   : > { %p685_p4 = pneg %p823_p2  ;;  %p730_p7 = scmp.ne.s32.totalorder %s127_s15, %s729_s20 }
   0x8   : > { %p737_p10 = scmp.lt.s32.totalorder %s127_s15, %s127_s15  ;;  %p738_p11 = scmp.lt.s32.totalorder %s729_s20, %s729_s20 }
   0x9   : > { %p832_p5 = pnand %p692_p3, %p685_p4 }
   0xa   : > { %p739_p12 = por %p738_p11, %p737_p10 }
   0xb   : > { %p720_p6 = pneg %p832_p5 }
   0xd   : > { %p732_p8 = pnand %p730_p7, %p720_p6 }
   0xf   : > { %p733_p9 = pneg %p732_p8 }
  0x11   : > { %p740_p13 = pnand %p739_p12, %p733_p9 }
  0x13   : > { %743 = shalt.err (!%p740_p13)
}
  0x14   : > { %s788_s21 = smov 64   ;;  %s789_s22 = smov 4  }
  0x15   : > { %688 = dma.hbm_to_vmem [thread:$0]  (!%p832_p5), %s940_s1, 256, %s127_s15, [#allocation4], %s788_s21, %s788_s21, %s789_s22  }
  0x16   : > { %s755_s25 = scalar_lea.vmem %s141_s18, 16  ;;  %s762_s26 = scalar_lea.vmem %s141_s18, 32 }
  0x17   : > { %p756_p0 = scmp.ne.s32.totalorder %s141_s18, %s755_s25  ;;  %p763_p7 = scmp.lt.s32.totalorder %s141_s18, %s141_s18 }
  0x18   : > { %p764_p8 = scmp.lt.s32.totalorder %s762_s26, %s755_s25 }
  0x19   : > { %p758_p1 = pnand %p756_p0, %p720_p6 }
  0x1a   : > { %p765_p9 = por %p764_p8, %p763_p7 }
  0x1b   : > { %p759_p4 = pneg %p758_p1 }
  0x1d   : > { %p766_p10 = pnand %p765_p9, %p759_p4 }
  0x1f   : > { %769 = shalt.err (!%p766_p10)
}
  0x20   : > { %691 = dma.hbm_to_vmem [thread:$0]  (!%p832_p5), %s941_s2, 16, %s141_s18, [#allocation6]  }
  0x21   : > { %162 = sbr.rel (%p823_p2) target bundleno = 294 (0x126), region = 32 }
  0x26   : > { %775 = dma.done.wait (%p692_p3), [#allocation4], 256  }
  0x27   : > { %777 = vsyncadd (%p692_p3), [#allocation4], 4294967040 }
  0x28   : > { %779 = dma.done.wait (%p692_p3), [#allocation6], 16  }
  0x29   : > { %781 = vsyncadd (%p692_p3), [#allocation6], 4294967280  ;;  %s190_s29 = smul.u32 10, %s819_s13  ;;  %v790_v0 = vmov 0.0   ;;  %vm791_vm0 = vmmov 0   ;;  %v711_v1 = vld [vmem:[#allocation3 + $0x8] sm:$0xff]  }
  0x2a   : > { %649 = vmatprep.subr.bf16.mxu0 %v790_v0  ;;  %673 = vmatprep.subr.bf16.mxu1 %v790_v0  ;;  %v712_v2 = vld [vmem:[#allocation3] sm:$0xff]   ;;  %vm261_vm1 = vcmask 261120   ;;  %s196_s7 = smul.u32 5, %s819_s13  ;;  %v792_v8 = vmov 0   ;;  %v617_v9 = vld [vmem:[#allocation5] ss:$0 sm:$0xff] }
  0x2b   : > { %653 = vmatprep.mubr.msk.bf16.mxu0 %vm791_vm0, %v790_v0  ;;  %665 = vmatprep.mubr.msk.bf16.mxu1 %vm791_vm0, %v790_v0  ;;  %p191_p2 = scmp.lt.s32.totalorder %s190_s29, 19  ;;  %vm401_vm2 = vcmask 1042432   ;;  %vm423_vm3 = vsmask.f32 7950  ;;  %vm422_vm4 = vcmask 1043459   ;;  %vm428_vm6 = vcmask 1041408  }
  0x2c   : > { %650 = vmatpush3.bf16.msra.mxu0 %v711_v1  ;;  %675 = vmatpush3.bf16.msra.mxu1 %v711_v1  ;;  %p197_p3 = scmp.lt.s32.totalorder %s196_s7, 9  ;;  %vm523_vm5 = vsmask.f32 2306  ;;  %vm429_vm7 = vsmask.f32 1280  ;;  %vm454_vm9 = vcmask 1043458   ;;  %vm887_vm11 = vmand %vm422_vm4, %vm423_vm3 }
  0x2d   : > { %s954_s29 = smov (!%p191_p2, %s190_s29), 19  ;;  %651 = vmatprep.subr.bf16.mxu0 %v790_v0  ;;  %674 = vmatprep.subr.bf16.mxu1 %v790_v0  ;;  %vm501_vm8 = vsmask.f32 5392  ;;  %vm455_vm10 = vsmask.f32 7946  ;;  %vm897_vm12 = vmand %vm428_vm6, %vm429_vm7  ;;  %vm484_vm14 = vcmask 1043457  }
  0x2e   : > { %s615_s30 = sshll.u32 %s954_s29, 2  ;;  %s956_s7 = smov (!%p197_p3, %s196_s7), 9  ;;  %vm905_vm13 = vmor %vm429_vm7, %vm501_vm8  ;;  %vm485_vm15 = vsmask.f32 3334  ;;  %vm461_vm3 = vsmask.f32 256 }
  0x2f   : > { %s194_s6 = scalar_lea.vmem %s939_s0, %s615_s30  ;;  %s616_s8 = sshll.u32 %s956_s7, 2  ;;  %vm486_vm4 = vmand %vm484_vm14, %vm485_vm15 }
  0x30   : > { %v713_v3 = vld [vmem:[%s194_s6] sm:$0xff]   ;;  %v714_v4 = vld [vmem:[%s194_s6 + $0x18] sm:$0xff]   ;;  %652 = vmatpush3.bf16.msra.mxu0 %v712_v2  ;;  %676 = vmatpush3.bf16.msra.mxu1 %v712_v2  ;;  %v715_v5 = vld [vmem:[%s194_s6 + $0x8] sm:$0xff]   ;;  %s877_s11 = scalar_lea.vmem %s942_s3, %s616_s8 }
  0x31   : > { %v716_v6 = vld [vmem:[%s194_s6 + $0x20] sm:$0x7f]   ;;  %v717_v7 = vld [vmem:[%s194_s6 + $0x10] sm:$0xff]   ;;  %370 = vst [vmem:[%s877_s11] sm:$0xf] %v792_v8  ;;  %374 = vst [vmem:[%s877_s11 + $0x10] sm:$0xf] %v792_v8 }
  0x32   : > { %371 = vst [vmem:[%s877_s11 + $0x4] sm:$0xf] %v792_v8  ;;  %372 = vst [vmem:[%s877_s11 + $0x8] sm:$0xf] %v792_v8 }
  0x33   : > { %654 = vmatmul.mubr.msk.bf16.vlgmr.msra.gmra.mxu0 %vm261_vm1, %v713_v3  ;;  %666 = vmatmul.mubr.msk.bf16.vlgmr.msra.gmra.mxu1 %vm261_vm1, %v714_v4  ;;  %373 = vst [vmem:[%s877_s11 + $0xc] sm:$0xf] %v792_v8 }
  0x34   : > { %657 = vmatprep.mubr.msk.bf16.mxu0 %vm791_vm0, %v790_v0  ;;  %669 = vmatprep.mubr.msk.bf16.mxu1 %vm791_vm0, %v790_v0 }
  0x3b   : > { %658 = vmatmul.mubr.msk.bf16.gmra.mxu0 %vm261_vm1, %v715_v5  ;;  %670 = vmatmul.mubr.msk.bf16.gmra.mxu1 %vm261_vm1, %v716_v6 }
  0x3c   : > { %661 = vmatprep.mubr.msk.bf16.mxu0 %vm791_vm0, %v790_v0  ;;  %vm911_vm0 = vmand %vm401_vm2, %vm523_vm5 }
  0x43   : > { %662 = vmatmul.mubr.msk.bf16.gmra.mxu0 %vm261_vm1, %v717_v7  ;;  %vm460_vm1 = vcmask 1040384  }
  0x44   : > { %vm462_vm5 = vmand %vm460_vm1, %vm461_vm3 }
  0xf3   : > { %v311_v10 = vpop.f32.mrf.mxu0  ;;  %v335_v11 = vpop.f32.mrf.mxu1 }
  0xf4   : > { %v312_v12 = vadd.f32 %v617_v9, %v311_v10  ;;  %v336_v13 = vadd.f32 %v617_v9, %v335_v11 }
  0xf5   : > { %v655_v14 = vpop.f32.mrf.mxu0  ;;  %v667_v15 = vpop.f32.mrf.mxu1 }
  0xf6   : > { %v350_v16 = vmax.f32 %v312_v12, 0.0  ;;  %v356_v17 = vmax.f32 %v336_v13, 0.0 }
  0xf7   : > { %v314_v18 = vpop.f32.mrf.mxu0  ;;  %v338_v19 = vpop.f32.mrf.mxu1 }
  0xf8   : > { %360 = vst [vmem:[#allocation2] sm:$0xff] %v350_v16  ;;  %366 = vst [vmem:[#allocation2 + $0x30] sm:$0xff] %v356_v17  ;;  %v315_v20 = vadd.f32 %v617_v9, %v314_v18  ;;  %v339_v21 = vadd.f32 %v617_v9, %v338_v19  ;;  %v425_v17 = vld [vmem:[%s877_s11] sm:$0x8] }
  0xf9   : > { %v656_v22 = vpop.f32.mrf.mxu0  ;;  %v668_v23 = vpop.f32.mrf.mxu1 }
  0xfa   : > { %v351_v24 = vmax.f32 %v315_v20, 0.0  ;;  %v357_v25 = vmax.f32 %v339_v21, 0.0 }
  0xfb   : > { %v319_v26 = vpop.f32.mrf.mxu0  ;;  %v343_v27 = vpop.f32.mrf.mxu1 }
  0xfc   : > { %361 = vst [vmem:[#allocation2 + $0x8] sm:$0xff] %v351_v24  ;;  %367 = vst [vmem:[#allocation2 + $0x38] sm:$0xff] %v357_v25  ;;  %v320_v28 = vadd.f32 %v617_v9, %v319_v26  ;;  %v344_v29 = vadd.f32 %v617_v9, %v343_v27 }
  0xfd   : > { %v659_v30 = vpop.f32.mrf.mxu0  ;;  %v671_v31 = vpop.f32.mrf.mxu1 }
  0xfe   : > { %v352_v32 = vmax.f32 %v320_v28, 0.0  ;;  %v358_v33 = vmax.f32 %v344_v29, 0.0 }
  0xff   : > { %v322_v34 = vpop.f32.mrf.mxu0  ;;  %v346_v35 = vpop.f32.mrf.mxu1 }
 0x100   : > { %362 = vst [vmem:[#allocation2 + $0x10] sm:$0xff] %v352_v32  ;;  %368 = vst [vmem:[#allocation2 + $0x40] sm:$0xff] %v358_v33  ;;  %v323_v36 = vadd.f32 %v617_v9, %v322_v34  ;;  %v347_v37 = vadd.f32 %v617_v9, %v346_v35  ;;  %v431_v33 = vld [vmem:[%s877_s11 + $0x4] sm:$0x3] }
 0x101   : > { %v660_v38 = vpop.f32.mrf.mxu0  ;;  %v672_v39 = vpop.f32.mrf.mxu1 }
 0x102   : > { %v353_v40 = vmax.f32 %v323_v36, 0.0  ;;  %v359_v41 = vmax.f32 %v347_v37, 0.0 }
 0x103   : > { %v327_v42 = vpop.f32.mrf.mxu0  ;;  %v375_v46 = vld [vmem:[#allocation2] ss:$2 sm:$0xff]  ;;  %v385_v47 = vld [vmem:[#allocation2 + $0x1] ss:$2 sm:$0xff]  ;;  %v381_v52 = vld [vmem:[#allocation2 + $0x30] ss:$2 sm:$0xff] }
 0x104   : > { %363 = vst [vmem:[#allocation2 + $0x18] sm:$0xff] %v353_v40  ;;  %369 = vst [vmem:[#allocation2 + $0x48] sm:$0x3f] %v359_v41  ;;  %v328_v43 = vadd.f32 %v617_v9, %v327_v42  ;;  %v394_v51 = vmax.f32 %v375_v46, %v385_v47  ;;  %v391_v54 = vld [vmem:[#allocation2 + $0x31] ss:$2 sm:$0xff] }
 0x105   : > { %v663_v44 = vpop.f32.mrf.mxu0  ;;  %v397_v63 = vmax.f32 %v381_v52, %v391_v54 }
 0x106   : > { %v354_v45 = vmax.f32 %v328_v43, 0.0  ;;  %v402_v61 = vrot.slane %v394_v51, 5  ;;  %v525_v43 = vld [vmem:[%s877_s11 + $0xc] sm:$0x7] }
 0x107   : > { %v330_v48 = vpop.f32.mrf.mxu0  ;;  %v467_v10 = vrot.slane %v397_v63, 5 }
 0x108   : > { %364 = vst [vmem:[#allocation2 + $0x20] sm:$0xff] %v354_v45  ;;  %v331_v49 = vadd.f32 %v617_v9, %v330_v48 }
 0x109   : > { %v664_v50 = vpop.f32.mrf.mxu0 }
 0x10a   : > { %v355_v53 = vmax.f32 %v331_v49, 0.0 }
 0x10b   : > { %v377_v55 = vld [vmem:[#allocation2 + $0x10] ss:$2 sm:$0xff]  ;;  %v387_v56 = vld [vmem:[#allocation2 + $0x11] ss:$2 sm:$0xff] }
 0x10c   : > { %v395_v57 = vmax.f32 %v377_v55, %v387_v56  ;;  %v383_v58 = vld [vmem:[#allocation2 + $0x40] ss:$2 sm:$0x7f]  ;;  %v393_v59 = vld [vmem:[#allocation2 + $0x41] ss:$2 sm:$0x7f] }
 0x10d   : > { %365 = vst [vmem:[#allocation2 + $0x28] sm:$0xff] %v355_v53  ;;  %v398_v60 = vmax.f32 %v383_v58, %v393_v59  ;;  %v487_v55 = vld [vmem:[%s877_s11 + $0x8] sm:$0xe]  ;;  %v457_v56 = vld [vmem:[%s877_s11 + $0x4] sm:$0xc] }
 0x10e   : > { %v403_v62 = vrot.slane %v395_v57, 5 }
 0x10f   : > { %v491_v0 = vrot.slane %v398_v60, 5 }
 0x110   : > { %v404_v1 = vsel %vm401_vm2, %v402_v61, %v403_v62 }
 0x111   : > { %v406_v2 = vmax.f32 %v394_v51, %v404_v1  ;;  %v493_v3 = vmax.f32 %v397_v63, %v491_v0  ;;  %v494_v4 = vmax.f32 %v398_v60, %v491_v0 }
 0x113   : > { %v637_v5 = vpack.c.bf16 %v406_v2, %v406_v2  ;;  %v640_v6 = vpack.c.bf16 %v493_v3, %v493_v3  ;;  %v641_v7 = vpack.c.bf16 %v494_v4, %v494_v4 }
 0x114   : > { %v379_v8 = vld [vmem:[#allocation2 + $0x20] ss:$2 sm:$0xff]  ;;  %v389_v9 = vld [vmem:[#allocation2 + $0x21] ss:$2 sm:$0xff] }
 0x115   : > { %v396_v11 = vmax.f32 %v379_v8, %v389_v9  ;;  %v412_v12 = vshll.u32 %v637_v5, 16  ;;  %v415_v13 = vshrl.u32 %v637_v5, 16  ;;  %v504_v14 = vshrl.u32 %v640_v6, 16 }
 0x116   : > { %v507_v15 = vshll.u32 %v640_v6, 16  ;;  %v513_v18 = vshrl.u32 %v641_v7, 16  ;;  %v516_v19 = vshll.u32 %v641_v7, 16 }
 0x117   : > { %v435_v20 = vrot.slane %v396_v11, 5  ;;  %v469_v21 = vmax.f32 %v396_v11, %v467_v10  ;;  %v414_v22 = vrot.slane %v412_v12, 5  ;;  %v417_v23 = vrot.slane %v415_v13, 4 }
 0x118   : > { %v506_v24 = vrot.slane %v504_v14, 6  ;;  %v509_v25 = vrot.slane %v507_v15, 7  ;;  %v515_v26 = vrot.slane %v513_v18, 6  ;;  %v518_v27 = vrot.slane %v516_v19, 7 }
 0x119   : > { %v436_v28 = vsel %vm401_vm2, %v403_v62, %v435_v20  ;;  %v639_v29 = vpack.c.bf16 %v469_v21, %v469_v21  ;;  %v418_v30 = vor.u32 %v417_v23, %v414_v22  ;;  %v426_v31 = vsel %vm887_vm11, %v414_v22, %v425_v17  ;;  %vm456_vm2 = vmand %vm454_vm9, %vm455_vm10 }
 0x11a   : > { %v510_v34 = vor.u32 %v509_v25, %v506_v24  ;;  %v438_v35 = vmax.f32 %v395_v57, %v436_v28  ;;  %427 = vst [vmem:[%s877_s11] sm:$0x8] %v426_v31  ;;  %v519_v42 = vor.u32 %v518_v27, %v515_v26  ;;  %v463_v57 = vld [vmem:[%s877_s11 + $0x8] sm:$0x1] }
 0x11b   : > { %v475_v37 = vshrl.u32 %v639_v29, 16  ;;  %v478_v38 = vshll.u32 %v639_v29, 16  ;;  %v419_v39 = vrot.slane %v418_v30, 4 }
 0x11c   : > { %v511_v41 = vrot.slane %v510_v34, 4  ;;  %v638_v44 = vpack.c.bf16 %v438_v35, %v438_v35 }
 0x11d   : > { %v477_v45 = vrot.slane %v475_v37, 4  ;;  %v480_v46 = vrot.slane %v478_v38, 5  ;;  %v432_v47 = vsel %vm897_vm12, %v419_v39, %v431_v33 }
 0x11e   : > { %v520_v48 = vsel %vm905_vm13, %v511_v41, %v519_v42  ;;  %v444_v49 = vshrl.u32 %v638_v44, 16  ;;  %v447_v50 = vshll.u32 %v638_v44, 16  ;;  %433 = vst [vmem:[%s877_s11 + $0x4] sm:$0x3] %v432_v47 }
 0x11f   : > { %v526_v51 = vsel %vm911_vm0, %v520_v48, %v525_v43  ;;  %v481_v52 = vor.u32 %v480_v46, %v477_v45 }
 0x120   : > { %527 = vst [vmem:[%s877_s11 + $0xc] sm:$0x7] %v526_v51  ;;  %v446_v53 = vrot.slane %v444_v49, 6  ;;  %v449_v54 = vrot.slane %v447_v50, 7 }
 0x121   : > { %v482_v58 = vrot.slane %v481_v52, 4 }
 0x122   : > { %v450_v59 = vor.u32 %v449_v54, %v446_v53  ;;  %v451_v60 = vrot.slane %v446_v53, 4 }
 0x123   : > { %v488_v61 = vsel %vm486_vm4, %v482_v58, %v487_v55 }
 0x124   : > { %v458_v62 = vsel %vm456_vm2, %v450_v59, %v457_v56  ;;  %v464_v63 = vsel %vm462_vm5, %v451_v60, %v463_v57  ;;  %489 = vst [vmem:[%s877_s11 + $0x8] sm:$0xe] %v488_v61 }
 0x125   : > { %459 = vst [vmem:[%s877_s11 + $0x4] sm:$0xc] %v458_v62  ;;  %465 = vst [vmem:[%s877_s11 + $0x8] sm:$0x1] %v464_v63 }
 0x126 PF: > { %s15_s12 = sadd.s32 1, %s784_s12  }
 0x127   : > { %p12_p5 = scmp.ge.s32.totalorder %s15_s12, 4  }
 0x129   :  { %14 = sbr.rel (!%p12_p5) target bundleno = 2 (0x2), region = 80 }
 0x12e   :  { %550 = vsyncpa [#allocation4], 1 }
 0x12f   :  { %552 = vsyncpa [#allocation4 + $0x1], 1 }
 0x130   :  { %553 = vsyncpa [#allocation6], 1 }

// kernel: vgg_forward.4
= control target key start
LH: loop header
LB: loop body
LE: loop exit
PB: predicated region body
PF: predicated region fallthrough
CT: control target
= control target key end

     0   :  { %8 = vsyncpa [#allocation4], 0  ;;  %s2253_s0 = inlined_call_operand.vmem [shape: bf16[80,128], index: 0, kind: input, shape index: {}]   ;;  %s2254_s1 = inlined_call_operand.hbm [shape: bf16[9,128,128], index: 1, kind: input, shape index: {}]   ;;  %s2255_s2 = inlined_call_operand.hbm [shape: f32[1,128], index: 2, kind: input, shape index: {}]   ;;  %s2256_s3 = inlined_call_operand.vmem [shape: bf16[32,128], index: 3, kind: output, shape index: {}]  }
   0x1   :  { %9 = vsyncpa [#allocation6], 0  ;;  %s2122_s12 = smov 0  }
   0x2 LB: > { %s2128_s13 = sadd.s32 4294967295, %s2095_s12   ;;  %p1540_p0 = scmp.ge.s32.totalorder %s2095_s12, 1  ;;  %s2095_s12 = sphi %s2122_s12, %s15_s12  }
   0x3   : > { %p114_p1 = scmp.lt.s32.totalorder %s2095_s12, 3  ;;  %s2097_s14 = smov [#allocation3]  }
   0x4   : > { %s126_s15 = sshll.u32 %s2097_s14, 4  ;;  %p1927_p3 = scmp.eq.s32.totalorder %s2128_s13, 0  ;;  %s127_s15 = int_to_ptr.vmem [resolvable:$true] %s126_s15 }
   0x5   : > { %p2132_p2 = pnand %p1540_p0, %p114_p1  ;;  %s2098_s17 = smov [#allocation5]  }
   0x6   : > { %s140_s18 = sshll.u32 %s2098_s17, 4  ;;  %s2040_s20 = scalar_lea.vmem %s127_s15, 9216  ;;  %s141_s18 = int_to_ptr.vmem [resolvable:$true] %s140_s18 }
   0x7   : > { %p1920_p4 = pneg %p2132_p2  ;;  %p2041_p7 = scmp.ne.s32.totalorder %s127_s15, %s2040_s20 }
   0x8   : > { %p2048_p10 = scmp.lt.s32.totalorder %s127_s15, %s127_s15  ;;  %p2049_p11 = scmp.lt.s32.totalorder %s2040_s20, %s2040_s20 }
   0x9   : > { %p2141_p5 = pnand %p1927_p3, %p1920_p4 }
   0xa   : > { %p2050_p12 = por %p2049_p11, %p2048_p10 }
   0xb   : > { %p2031_p6 = pneg %p2141_p5 }
   0xd   : > { %p2043_p8 = pnand %p2041_p7, %p2031_p6 }
   0xf   : > { %p2044_p9 = pneg %p2043_p8 }
  0x11   : > { %p2051_p13 = pnand %p2050_p12, %p2044_p9 }
  0x13   : > { %2054 = shalt.err (!%p2051_p13)
}
  0x14   : > { %s2099_s21 = smov 64   ;;  %s2100_s22 = smov 4  }
  0x15   : > { %1923 = dma.hbm_to_vmem [thread:$0]  (!%p2141_p5), %s2254_s1, 9216, %s127_s15, [#allocation4], %s2099_s21, %s2099_s21, %s2100_s22  }
  0x16   : > { %s2066_s25 = scalar_lea.vmem %s141_s18, 16  ;;  %s2073_s26 = scalar_lea.vmem %s141_s18, 32 }
  0x17   : > { %p2067_p0 = scmp.ne.s32.totalorder %s141_s18, %s2066_s25  ;;  %p2074_p7 = scmp.lt.s32.totalorder %s141_s18, %s141_s18 }
  0x18   : > { %p2075_p8 = scmp.lt.s32.totalorder %s2073_s26, %s2066_s25 }
  0x19   : > { %p2069_p1 = pnand %p2067_p0, %p2031_p6 }
  0x1a   : > { %p2076_p9 = por %p2075_p8, %p2074_p7 }
  0x1b   : > { %p2070_p4 = pneg %p2069_p1 }
  0x1d   : > { %p2077_p10 = pnand %p2076_p9, %p2070_p4 }
  0x1f   : > { %2080 = shalt.err (!%p2077_p10)
}
  0x20   : > { %1926 = dma.hbm_to_vmem [thread:$0]  (!%p2141_p5), %s2255_s2, 16, %s141_s18, [#allocation6]  }
  0x21   : > { %162 = sbr.rel (%p2132_p2) target bundleno = 431 (0x1af), region = 32 }
  0x26   : > { %2086 = dma.done.wait (%p1927_p3), [#allocation4], 9216  }
  0x27   : > { %2088 = vsyncadd (%p1927_p3), [#allocation4], 4294958080 }
  0x28   : > { %2090 = dma.done.wait (%p1927_p3), [#allocation6], 16  }
  0x29   : > { %2092 = vsyncadd (%p1927_p3), [#allocation6], 4294967280  ;;  %s190_s29 = smul.u32 5, %s2128_s13  ;;  %v1944_v0 = vld [vmem:[#allocation3 + $0x78] sm:$0xff]   ;;  %v1946_v2 = vld [vmem:[#allocation3 + $0x70] sm:$0xff]   ;;  %vm484_vm1 = vcmask 1046528  }
  0x2a   : > { %v1945_v1 = vld [vmem:[#allocation3 + $0x38] sm:$0xff]   ;;  %1732 = vmatprep.subr.bf16.mxu0 %v1944_v0  ;;  %v1947_v3 = vld [vmem:[#allocation3 + $0x30] sm:$0xff]   ;;  %v1948_v4 = vld [vmem:[#allocation3 + $0x68] sm:$0xff]   ;;  %vm248_vm0 = vsmask.f32 7424  ;;  %vm620_vm2 = vcmask 1044480  }
  0x2b   : > { %p191_p5 = scmp.lt.s32.totalorder %s190_s29, 9  ;;  %1752 = vmatprep.subr.bf16.mxu1 %v1945_v1  ;;  %1733 = vmatpush3.bf16.msra.mxu0 %v1944_v0  ;;  %v1949_v5 = vld [vmem:[#allocation3 + $0x28] sm:$0xff]   ;;  %v1950_v6 = vld [vmem:[#allocation3 + $0x60] sm:$0xff]   ;;  %v1952_v8 = vld [vmem:[#allocation3 + $0x58] sm:$0xff]   ;;  %vm746_vm3 = vsmask.f32 4352 }
  0x2c   : > { %1753 = vmatpush3.bf16.msra.mxu1 %v1945_v1  ;;  %1734 = vmatprep.subr.bf16.mxu0 %v1946_v2  ;;  %v1951_v7 = vld [vmem:[#allocation3 + $0x20] sm:$0xff]   ;;  %v1953_v9 = vld [vmem:[#allocation3 + $0x18] sm:$0xff]   ;;  %v1954_v10 = vld [vmem:[#allocation3 + $0x50] sm:$0xff]   ;;  %vm1016_vm4 = vcmask 1045504   ;;  %vm1142_vm5 = vsmask.f32 5376 }
  0x2d   : > { %1754 = vmatprep.subr.bf16.mxu1 %v1947_v3  ;;  %s2260_s29 = smov (!%p191_p5, %s190_s29), 9  ;;  %v1955_v11 = vld [vmem:[#allocation3 + $0x10] sm:$0xff]   ;;  %v1956_v19 = vld [vmem:[#allocation3 + $0x48] sm:$0xff]   ;;  %v1958_v24 = vld [vmem:[#allocation3 + $0x40] sm:$0xff]   ;;  %s1548_s7 = sshll.u32 %s2128_s13, 1  ;;  %vm1430_vm6 = vcmask 1043458  }
  0x2e   : > { %s1547_s30 = sshll.u32 %s2260_s29, 2  ;;  %v1957_v20 = vld [vmem:[#allocation3 + $0x8] sm:$0xff]   ;;  %v1959_v25 = vld [vmem:[#allocation3] sm:$0xff]   ;;  %v1963_v28 = vld [vmem:[#allocation3 + $0xb8] sm:$0xff]   ;;  %p197_p2 = scmp.lt.s32.totalorder %s1548_s7, 3  ;;  %vm1454_vm8 = vcmask 1041408  }
  0x2f   : > { %1735 = vmatpush3.bf16.msra.mxu0 %v1946_v2  ;;  %s2177_s6 = scalar_lea.vmem %s2253_s0, %s1547_s30  ;;  %v1964_v30 = vld [vmem:[#allocation3 + $0xf8] sm:$0xff]   ;;  %v1965_v32 = vld [vmem:[#allocation3 + $0xb0] sm:$0xff]   ;;  %v1967_v35 = vld [vmem:[#allocation3 + $0xa8] sm:$0xff]   ;;  %vm1431_vm7 = vsmask.f32 3338 }
  0x30   : > { %1755 = vmatpush3.bf16.msra.mxu1 %v1947_v3  ;;  %1736 = vmatprep.subr.bf16.mxu0 %v1948_v4  ;;  %v203_v12 = vld [vmem:[%s2177_s6] sm:$0xf]  ;;  %v204_v13 = vld [vmem:[%s2177_s6 + $0x4] sm:$0xf]  ;;  %v2182_v15 = vld [vmem:[%s2177_s6 + $0x8] ss:$0 sps:$4 sm:$0xff]  }
  0x31   : > { %1756 = vmatprep.subr.bf16.mxu1 %v1949_v5  ;;  %v1550_v14 = vcombine.low %v203_v12, %v204_v13  ;;  %v257_v18 = vshll.u32 %v2182_v15, 16  ;;  %v261_v27 = vshrl.u32 %v2182_v15, 16  ;;  %v1962_v29 = vld [vmem:[%s2177_s6 + $0x8] ss:$0 sps:$4 sm:$0x77]   ;;  %v486_v37 = vrot.slane %v2182_v15, 1  ;;  %vm1432_vm10 = vmand %vm1430_vm6, %vm1431_vm7 }
  0x32   : > { %v1966_v33 = vld [vmem:[#allocation3 + $0xf0] sm:$0xff]   ;;  %v463_v34 = vld [vmem:[%s2177_s6] sm:$0xe]  ;;  %v2192_v39 = vld [vmem:[%s2177_s6 + $0x4] sm:$0xf]  ;;  %s2262_s7 = smov (!%p197_p2, %s1548_s7), 3 }
  0x33   : > { %1737 = vmatpush3.bf16.msra.mxu0 %v1948_v4  ;;  %v250_v16 = vshrl.u32 %v1550_v14, 16  ;;  %v252_v17 = vshll.u32 %v1550_v14, 16  ;;  %1768 = vmatprep.mubr.bf16.mxu1 %v1550_v14  ;;  %v259_v22 = vrot.slane %v257_v18, 1  ;;  %v1569_v36 = vcombine.low %v463_v34, %v204_v13  ;;  %v589_v38 = vld [vmem:[%s2177_s6] sm:$0x8]  ;;  %v1969_v48 = vld [vmem:[#allocation3 + $0xa0] sm:$0xff]  }
  0x34   : > { %1757 = vmatpush3.bf16.msra.mxu1 %v1949_v5  ;;  %1738 = vmatprep.subr.bf16.mxu0 %v1950_v6  ;;  %v2195_v40 = vld [vmem:[%s2177_s6 + $0x8] sm:$0xf]  ;;  %v1968_v41 = vld [vmem:[#allocation3 + $0xe8] sm:$0xff]   ;;  %v592_v43 = vld [vmem:[%s2177_s6 + $0xc] sm:$0x3]  ;;  %v1578_v44 = vcombine.low %v589_v38, %v2192_v39  ;;  %s1549_s8 = sshll.u32 %s2262_s7, 2 }
  0x35   : > { %1758 = vmatprep.subr.bf16.mxu1 %v1951_v7  ;;  %v254_v21 = vrot.slane %v252_v17, 1  ;;  %v263_v31 = vor.u32 %v261_v27, %v259_v22  ;;  %v485_v42 = vrot.slane %v1569_v36, 1  ;;  %v1579_v45 = vcombine.low %v2195_v40, %v592_v43  ;;  %v1970_v50 = vld [vmem:[#allocation3 + $0xe0] sm:$0xff]   ;;  %v1971_v52 = vld [vmem:[#allocation3 + $0x98] sm:$0xff]   ;;  %v1973_v54 = vld [vmem:[#allocation3 + $0x90] sm:$0xff]   ;;  %s2242_s11 = scalar_lea.vmem %s2256_s3, %s1549_s8 }
  0x36   : > { %v621_v47 = vrot.slane %v1578_v44, 3  ;;  %v1972_v53 = vld [vmem:[#allocation3 + $0xd8] sm:$0xff]   ;;  %v1974_v55 = vld [vmem:[#allocation3 + $0xd0] sm:$0xff]   ;;  %v1975_v56 = vld [vmem:[#allocation3 + $0x88] sm:$0xff]   ;;  %v748_v60 = vshrl.u32 %v1578_v44, 16  ;;  %v751_v61 = vshll.u32 %v1578_v44, 16  ;;  %v1597_v13 = vcombine.low %v2192_v39, %v2195_v40 }
  0x37   : > { %1739 = vmatpush3.bf16.msra.mxu0 %v1950_v6  ;;  %v255_v23 = vor.u32 %v254_v21, %v250_v16  ;;  %v487_v46 = vsel %vm484_vm1, %v485_v42, %v486_v37  ;;  %v622_v49 = vrot.slane %v1579_v45, 3  ;;  %v1976_v57 = vld [vmem:[#allocation3 + $0xc8] sm:$0xff]   ;;  %v2205_v58 = vld [vmem:[%s2177_s6 + $0xc] sm:$0x7]  ;;  %v1977_v62 = vld [vmem:[#allocation3 + $0x80] sm:$0xff]  }
  0x38   : > { %1759 = vmatpush3.bf16.msra.mxu1 %v1951_v7  ;;  %1740 = vmatprep.subr.bf16.mxu0 %v1952_v8  ;;  %v1588_v59 = vcombine.low %v2195_v40, %v2205_v58  ;;  %v1978_v63 = vld [vmem:[#allocation3 + $0xc0] sm:$0xff]   ;;  %v750_v2 = vrot.slane %v748_v60, 3  ;;  %v753_v3 = vrot.slane %v751_v61, 4  ;;  %v1980_v6 = vld [vmem:[#allocation3 + $0x138] sm:$0xff]   ;;  %v1986_v14 = vld [vmem:[#allocation3 + $0x128] sm:$0xff]  }
  0x39   : > { %1760 = vmatprep.subr.bf16.mxu1 %v1953_v9  ;;  %v260_v26 = vsel %vm248_vm0, %v255_v23, %v259_v22  ;;  %v623_v51 = vsel %vm620_vm2, %v621_v47, %v622_v49  ;;  %v1983_v7 = vld [vmem:[#allocation3 + $0x178] sm:$0xff]   ;;  %v1987_v16 = vld [vmem:[#allocation3 + $0x168] sm:$0xff]   ;;  %v1988_v15 = vld [vmem:[#allocation3 + $0x120] sm:$0xff]   ;;  %vm1455_vm9 = vsmask.f32 1282 }
  0x3a   : > { %1748 = vmatprep.mubr.bf16.mxu0 %v260_v26  ;;  %v756_v0 = vshrl.u32 %v1588_v59, 16  ;;  %v759_v1 = vshll.u32 %v1588_v59, 16  ;;  %v1989_v17 = vld [vmem:[#allocation3 + $0x160] sm:$0xff]   ;;  %v987_v18 = vld [vmem:[%s2177_s6 + $0xc] sm:$0xf]  ;;  %v1991_v21 = vld [vmem:[#allocation3 + $0x158] sm:$0xff]  }
  0x3b   : > { %1741 = vmatpush3.bf16.msra.mxu0 %v1952_v8  ;;  %v754_v8 = vor.u32 %v753_v3, %v750_v2  ;;  %v986_v23 = vld [vmem:[%s2177_s6 + $0x8] sm:$0xf]  ;;  %v985_v26 = vld [vmem:[%s2177_s6 + $0x4] sm:$0xc]  ;;  %v1996_v40 = vld [vmem:[#allocation3 + $0x100] sm:$0xff]  }
  0x3c   : > { %1761 = vmatpush3.bf16.msra.mxu1 %v1953_v9  ;;  %1742 = vmatprep.subr.bf16.mxu0 %v1954_v10  ;;  %v758_v4 = vrot.slane %v756_v0, 3  ;;  %v761_v5 = vrot.slane %v759_v1, 4  ;;  %v1995_v34 = vld [vmem:[#allocation3 + $0x148] sm:$0xff]   ;;  %v1999_v47 = vld [vmem:[#allocation3 + $0x1b8] sm:$0xff]   ;;  %v2007_v60 = vld [vmem:[#allocation3 + $0x1a0] sm:$0xff]  }
  0x3d   : > { %1762 = vmatprep.subr.bf16.mxu1 %v1955_v11  ;;  %v2005_v59 = vld [vmem:[#allocation3 + $0x1a8] sm:$0xff]   ;;  %v2008_v61 = vld [vmem:[#allocation3 + $0x1e0] sm:$0xff]   ;;  %v2011_v0 = vld [vmem:[#allocation3 + $0x190] sm:$0xff]  }
  0x3e   : > { %v2209_v9 = vor.u32 %v761_v5, %v758_v4  ;;  %v2012_v1 = vld [vmem:[#allocation3 + $0x1d0] sm:$0xff]   ;;  %v2013_v2 = vld [vmem:[#allocation3 + $0x188] sm:$0xff]   ;;  %v2015_v4 = vld [vmem:[#allocation3 + $0x180] sm:$0xff]  }
  0x3f   : > { %1743 = vmatpush3.bf16.msra.mxu0 %v1954_v10  ;;  %v1984_v10 = vld [vmem:[#allocation3 + $0x130] sm:$0xff]   ;;  %v2014_v3 = vld [vmem:[#allocation3 + $0x1c8] sm:$0xff]   ;;  %v2016_v5 = vld [vmem:[#allocation3 + $0x1c0] sm:$0xff]  }
  0x40   : > { %1763 = vmatpush3.bf16.msra.mxu1 %v1955_v11  ;;  %1744 = vmatprep.subr.bf16.mxu0 %v1956_v19  ;;  %v1985_v11 = vld [vmem:[#allocation3 + $0x170] sm:$0xff]   ;;  %v763_v12 = vsel %vm746_vm3, %v754_v8, %v2209_v9  ;;  %v2022_v8 = vld [vmem:[#allocation3 + $0x228] sm:$0xff]   ;;  %vm1456_vm11 = vmand %vm1454_vm8, %vm1455_vm9 }
  0x41   : > { %1764 = vmatprep.subr.bf16.mxu1 %v1957_v20 }
  0x43   : > { %1745 = vmatpush3.bf16.msra.mxu0 %v1956_v19  ;;  %v1121_v19 = vld [vmem:[%s2177_s6 + $0x10] sm:$0x3] }
  0x44   : > { %1765 = vmatpush3.bf16.msra.mxu1 %v1957_v20  ;;  %1746 = vmatprep.subr.bf16.mxu0 %v1958_v24  ;;  %v1990_v20 = vld [vmem:[#allocation3 + $0x118] sm:$0xff]   ;;  %v2218_v22 = vcombine.low %v987_v18, %v1121_v19 }
  0x45   : > { %1766 = vmatprep.subr.bf16.mxu1 %v1959_v25 }
  0x46   : > { %v1152_v38 = vshrl.u32 %v2218_v22, 16  ;;  %v1155_v39 = vshll.u32 %v2218_v22, 16 }
  0x47   : > { %1747 = vmatpush3.bf16.msra.mxu0 %v1958_v24  ;;  %v1261_v24 = vld [vmem:[%s2177_s6 + $0x4] sm:$0x8] }
  0x48   : > { %1767 = vmatpush3.bf16.msra.mxu1 %v1959_v25  ;;  %1772 = vmatprep.subr.bf16.mxu0 %v1963_v28  ;;  %v1992_v25 = vld [vmem:[#allocation3 + $0x110] sm:$0xff]   ;;  %v1626_v27 = vcombine.low %v1261_v24, %v986_v23  ;;  %v1154_v45 = vrot.slane %v1152_v38, 2 }
  0x49   : > { %1792 = vmatprep.subr.bf16.mxu1 %v1964_v30 }
  0x4a   : > { %1749 = vmatmul.mubr.bf16.vlgmr.msra.gmra.mxu0 %v263_v31  ;;  %v1607_v31 = vcombine.low %v985_v26, %v986_v23 }
  0x4b   : > { %1769 = vmatmul.mubr.bf16.vlgmr.msra.gmra.mxu1 %v1962_v29  ;;  %1773 = vmatpush3.bf16.msra.mxu0 %v1963_v28  ;;  %v1283_v28 = vrot.slane %v2218_v22, 3  ;;  %v1993_v29 = vld [vmem:[#allocation3 + $0x150] sm:$0xff]   ;;  %v2101_v22 = vmov 0  }
  0x4c   : > { %1793 = vmatpush3.bf16.msra.mxu1 %v1964_v30  ;;  %1774 = vmatprep.subr.bf16.mxu0 %v1965_v32  ;;  %v1282_v30 = vrot.slane %v1626_v27, 3  ;;  %v1144_v36 = vshrl.u32 %v1607_v31, 16  ;;  %1402 = vst [vmem:[%s2242_s11] sm:$0xf] %v2101_v22  ;;  %1403 = vst [vmem:[%s2242_s11 + $0x4] sm:$0xf] %v2101_v22 }
  0x4d   : > { %1794 = vmatprep.subr.bf16.mxu1 %v1966_v33  ;;  %1788 = vmatprep.mubr.bf16.mxu0 %v487_v46  ;;  %v1157_v46 = vrot.slane %v1155_v39, 3 }
  0x4e   : > { %1808 = vmatprep.mubr.bf16.mxu1 %v623_v51  ;;  %v1146_v43 = vrot.slane %v1144_v36, 2  ;;  %v1598_v51 = vcombine.low %v2205_v58, %v2205_v58  ;;  %v2006_v58 = vld [vmem:[#allocation3 + $0x1e8] sm:$0xff]  }
  0x4f   : > { %1775 = vmatpush3.bf16.msra.mxu0 %v1965_v32  ;;  %v1994_v32 = vld [vmem:[#allocation3 + $0x108] sm:$0xff]  }
  0x50   : > { %1795 = vmatpush3.bf16.msra.mxu1 %v1966_v33  ;;  %1776 = vmatprep.subr.bf16.mxu0 %v1967_v35  ;;  %v2227_v33 = vsel %vm620_vm2, %v1282_v30, %v1283_v28 }
  0x51   : > { %1796 = vmatprep.subr.bf16.mxu1 %v1968_v41 }
  0x53   : > { %1777 = vmatpush3.bf16.msra.mxu0 %v1967_v35  ;;  %v988_v35 = vld [vmem:[%s2177_s6 + $0x10] sm:$0x1] }
  0x54   : > { %1797 = vmatpush3.bf16.msra.mxu1 %v1968_v41  ;;  %1778 = vmatprep.subr.bf16.mxu0 %v1969_v48  ;;  %v1997_v41 = vld [vmem:[#allocation3 + $0x140] sm:$0xff]   ;;  %v1608_v42 = vcombine.low %v987_v18, %v988_v35 }
  0x55   : > { %1798 = vmatprep.subr.bf16.mxu1 %v1970_v50 }
  0x57   : > { %1779 = vmatpush3.bf16.msra.mxu0 %v1969_v48  ;;  %v2002_v48 = vld [vmem:[#allocation3 + $0x1f8] sm:$0xff]  }
  0x58   : > { %1799 = vmatpush3.bf16.msra.mxu1 %v1970_v50  ;;  %1780 = vmatprep.subr.bf16.mxu0 %v1971_v52  ;;  %v1018_v50 = vrot.slane %v1608_v42, 2 }
  0x59   : > { %1800 = vmatprep.subr.bf16.mxu1 %v1972_v53 }
  0x5b   : > { %1781 = vmatpush3.bf16.msra.mxu0 %v1971_v52 }
  0x5c   : > { %1801 = vmatpush3.bf16.msra.mxu1 %v1972_v53  ;;  %1782 = vmatprep.subr.bf16.mxu0 %v1973_v54  ;;  %v1158_v53 = vor.u32 %v1157_v46, %v1154_v45 }
  0x5d   : > { %1802 = vmatprep.subr.bf16.mxu1 %v1974_v55 }
  0x5f   : > { %1783 = vmatpush3.bf16.msra.mxu0 %v1973_v54  ;;  %v2003_v54 = vld [vmem:[#allocation3 + $0x1b0] sm:$0xff]  }
  0x60   : > { %1803 = vmatpush3.bf16.msra.mxu1 %v1974_v55  ;;  %1784 = vmatprep.subr.bf16.mxu0 %v1975_v56  ;;  %v2004_v55 = vld [vmem:[#allocation3 + $0x1f0] sm:$0xff]  }
  0x61   : > { %1804 = vmatprep.subr.bf16.mxu1 %v1976_v57 }
  0x63   : > { %1785 = vmatpush3.bf16.msra.mxu0 %v1975_v56 }
  0x64   : > { %1805 = vmatpush3.bf16.msra.mxu1 %v1976_v57  ;;  %1786 = vmatprep.subr.bf16.mxu0 %v1977_v62 }
  0x65   : > { %1806 = vmatprep.subr.bf16.mxu1 %v1978_v63 }
  0x67   : > { %1787 = vmatpush3.bf16.msra.mxu0 %v1977_v62  ;;  %v2009_v62 = vld [vmem:[#allocation3 + $0x198] sm:$0xff]  }
  0x68   : > { %1807 = vmatpush3.bf16.msra.mxu1 %v1978_v63  ;;  %1812 = vmatprep.subr.bf16.mxu0 %v1980_v6  ;;  %v2010_v63 = vld [vmem:[#allocation3 + $0x1d8] sm:$0xff]  }
  0x69   : > { %1832 = vmatprep.subr.bf16.mxu1 %v1983_v7 }
  0x6a   : > { %1789 = vmatmul.mubr.bf16.vlgmr.msra.gmra.mxu0 %v486_v37  ;;  %v1147_v37 = vshll.u32 %v1607_v31, 16 }
  0x6b   : > { %1813 = vmatpush3.bf16.msra.mxu0 %v1980_v6  ;;  %1809 = vmatmul.mubr.bf16.vlgmr.msra.gmra.mxu1 %v622_v49  ;;  %v1017_v49 = vrot.slane %v1607_v31, 2  ;;  %v2020_v6 = vld [vmem:[#allocation3 + $0x238] sm:$0xff]  }
  0x6c   : > { %1833 = vmatpush3.bf16.msra.mxu1 %v1983_v7  ;;  %1814 = vmatprep.subr.bf16.mxu0 %v1984_v10  ;;  %v1149_v44 = vrot.slane %v1147_v37, 3  ;;  %v2021_v7 = vld [vmem:[#allocation3 + $0x230] sm:$0xff]  }
  0x6d   : > { %1834 = vmatprep.subr.bf16.mxu1 %v1985_v11  ;;  %1828 = vmatprep.mubr.bf16.mxu0 %v763_v12  ;;  %v1019_v56 = vsel %vm1016_vm4, %v1017_v49, %v1018_v50  ;;  %v2026_v12 = vld [vmem:[#allocation3 + $0x208] sm:$0xff]  }
  0x6e   : > { %1848 = vmatprep.mubr.bf16.mxu1 %v1597_v13  ;;  %v1150_v52 = vor.u32 %v1149_v44, %v1146_v43  ;;  %v2027_v13 = vld [vmem:[#allocation3 + $0x200] sm:$0xff]  }
  0x6f   : > { %1815 = vmatpush3.bf16.msra.mxu0 %v1984_v10  ;;  %v2024_v10 = vld [vmem:[#allocation3 + $0x218] sm:$0xff]  }
  0x70   : > { %1835 = vmatpush3.bf16.msra.mxu1 %v1985_v11  ;;  %1816 = vmatprep.subr.bf16.mxu0 %v1986_v14  ;;  %v1159_v57 = vsel %vm1142_vm5, %v1150_v52, %v1158_v53  ;;  %v2025_v11 = vld [vmem:[#allocation3 + $0x210] sm:$0xff]  }
  0x71   : > { %1836 = vmatprep.subr.bf16.mxu1 %v1987_v16 }
  0x73   : > { %1817 = vmatpush3.bf16.msra.mxu0 %v1986_v14 }
  0x74   : > { %1837 = vmatpush3.bf16.msra.mxu1 %v1987_v16  ;;  %1818 = vmatprep.subr.bf16.mxu0 %v1988_v15 }
  0x75   : > { %1838 = vmatprep.subr.bf16.mxu1 %v1989_v17 }
  0x77   : > { %1819 = vmatpush3.bf16.msra.mxu0 %v1988_v15 }
  0x78   : > { %1839 = vmatpush3.bf16.msra.mxu1 %v1989_v17  ;;  %1820 = vmatprep.subr.bf16.mxu0 %v1990_v20 }
  0x79   : > { %1840 = vmatprep.subr.bf16.mxu1 %v1991_v21 }
  0x7b   : > { %1821 = vmatpush3.bf16.msra.mxu0 %v1990_v20 }
  0x7c   : > { %1841 = vmatpush3.bf16.msra.mxu1 %v1991_v21  ;;  %1822 = vmatprep.subr.bf16.mxu0 %v1992_v25 }
  0x7d   : > { %1842 = vmatprep.subr.bf16.mxu1 %v1993_v29 }
  0x7f   : > { %1823 = vmatpush3.bf16.msra.mxu0 %v1992_v25 }
  0x80   : > { %1843 = vmatpush3.bf16.msra.mxu1 %v1993_v29  ;;  %1824 = vmatprep.subr.bf16.mxu0 %v1994_v32 }
  0x81   : > { %1844 = vmatprep.subr.bf16.mxu1 %v1995_v34 }
  0x83   : > { %1825 = vmatpush3.bf16.msra.mxu0 %v1994_v32 }
  0x84   : > { %1845 = vmatpush3.bf16.msra.mxu1 %v1995_v34  ;;  %1826 = vmatprep.subr.bf16.mxu0 %v1996_v40 }
  0x85   : > { %1846 = vmatprep.subr.bf16.mxu1 %v1997_v41 }
  0x87   : > { %1827 = vmatpush3.bf16.msra.mxu0 %v1996_v40 }
  0x88   : > { %1847 = vmatpush3.bf16.msra.mxu1 %v1997_v41  ;;  %1852 = vmatprep.subr.bf16.mxu0 %v1999_v47 }
  0x89   : > { %1872 = vmatprep.subr.bf16.mxu1 %v2002_v48 }
  0x8a   : > { %1829 = vmatmul.mubr.bf16.vlgmr.msra.gmra.mxu0 %v2209_v9  ;;  %v2023_v9 = vld [vmem:[#allocation3 + $0x220] sm:$0xff]  }
  0x8b   : > { %1853 = vmatpush3.bf16.msra.mxu0 %v1999_v47  ;;  %1849 = vmatmul.mubr.bf16.vlgmr.msra.gmra.mxu1 %v1598_v51 }
  0x8c   : > { %1873 = vmatpush3.bf16.msra.mxu1 %v2002_v48  ;;  %1854 = vmatprep.subr.bf16.mxu0 %v2003_v54 }
  0x8d   : > { %1874 = vmatprep.subr.bf16.mxu1 %v2004_v55  ;;  %1868 = vmatprep.mubr.bf16.mxu0 %v1019_v56 }
  0x8e   : > { %1888 = vmatprep.mubr.bf16.mxu1 %v1159_v57 }
  0x8f   : > { %1855 = vmatpush3.bf16.msra.mxu0 %v2003_v54 }
  0x90   : > { %1875 = vmatpush3.bf16.msra.mxu1 %v2004_v55  ;;  %1856 = vmatprep.subr.bf16.mxu0 %v2005_v59 }
  0x91   : > { %1876 = vmatprep.subr.bf16.mxu1 %v2006_v58 }
  0x93   : > { %1857 = vmatpush3.bf16.msra.mxu0 %v2005_v59 }
  0x94   : > { %1877 = vmatpush3.bf16.msra.mxu1 %v2006_v58  ;;  %1858 = vmatprep.subr.bf16.mxu0 %v2007_v60 }
  0x95   : > { %1878 = vmatprep.subr.bf16.mxu1 %v2008_v61 }
  0x97   : > { %1859 = vmatpush3.bf16.msra.mxu0 %v2007_v60 }
  0x98   : > { %1879 = vmatpush3.bf16.msra.mxu1 %v2008_v61  ;;  %1860 = vmatprep.subr.bf16.mxu0 %v2009_v62 }
  0x99   : > { %1880 = vmatprep.subr.bf16.mxu1 %v2010_v63 }
  0x9b   : > { %1861 = vmatpush3.bf16.msra.mxu0 %v2009_v62 }
  0x9c   : > { %1881 = vmatpush3.bf16.msra.mxu1 %v2010_v63  ;;  %1862 = vmatprep.subr.bf16.mxu0 %v2011_v0 }
  0x9d   : > { %1882 = vmatprep.subr.bf16.mxu1 %v2012_v1 }
  0x9f   : > { %1863 = vmatpush3.bf16.msra.mxu0 %v2011_v0 }
  0xa0   : > { %1883 = vmatpush3.bf16.msra.mxu1 %v2012_v1  ;;  %1864 = vmatprep.subr.bf16.mxu0 %v2013_v2  ;;  %v1635_v1 = vld [vmem:[#allocation5] ss:$0 sm:$0xff] }
  0xa1   : > { %1884 = vmatprep.subr.bf16.mxu1 %v2014_v3 }
  0xa3   : > { %1865 = vmatpush3.bf16.msra.mxu0 %v2013_v2 }
  0xa4   : > { %1885 = vmatpush3.bf16.msra.mxu1 %v2014_v3  ;;  %1866 = vmatprep.subr.bf16.mxu0 %v2015_v4 }
  0xa5   : > { %1886 = vmatprep.subr.bf16.mxu1 %v2016_v5 }
  0xa7   : > { %1867 = vmatpush3.bf16.msra.mxu0 %v2015_v4 }
  0xa8   : > { %1887 = vmatpush3.bf16.msra.mxu1 %v2016_v5  ;;  %1892 = vmatprep.subr.bf16.mxu0 %v2020_v6 }
  0xaa   : > { %1869 = vmatmul.mubr.bf16.vlgmr.msra.gmra.mxu0 %v1018_v50 }
  0xab   : > { %1893 = vmatpush3.bf16.msra.mxu0 %v2020_v6  ;;  %1889 = vmatmul.mubr.bf16.vlgmr.msra.gmra.mxu1 %v1158_v53 }
  0xac   : > { %1894 = vmatprep.subr.bf16.mxu0 %v2021_v7  ;;  %1908 = vmatprep.mubr.bf16.mxu0 %v2227_v33 }
  0xaf   : > { %1895 = vmatpush3.bf16.msra.mxu0 %v2021_v7 }
  0xb0   : > { %1896 = vmatprep.subr.bf16.mxu0 %v2022_v8 }
  0xb3   : > { %1897 = vmatpush3.bf16.msra.mxu0 %v2022_v8 }
  0xb4   : > { %1898 = vmatprep.subr.bf16.mxu0 %v2023_v9 }
  0xb7   : > { %1899 = vmatpush3.bf16.msra.mxu0 %v2023_v9 }
  0xb8   : > { %1900 = vmatprep.subr.bf16.mxu0 %v2024_v10 }
  0xbb   : > { %1901 = vmatpush3.bf16.msra.mxu0 %v2024_v10 }
  0xbc   : > { %1902 = vmatprep.subr.bf16.mxu0 %v2025_v11 }
  0xbf   : > { %1903 = vmatpush3.bf16.msra.mxu0 %v2025_v11 }
  0xc0   : > { %1904 = vmatprep.subr.bf16.mxu0 %v2026_v12 }
  0xc3   : > { %1905 = vmatpush3.bf16.msra.mxu0 %v2026_v12 }
  0xc4   : > { %1906 = vmatprep.subr.bf16.mxu0 %v2027_v13 }
  0xc7   : > { %1907 = vmatpush3.bf16.msra.mxu0 %v2027_v13 }
  0xca   : > { %1909 = vmatmul.mubr.bf16.vlgmr.msra.gmra.mxu0 %v1283_v28 }
 0x10a   : > { %v1750_v14 = vpop.f32.mrf.mxu0 }
 0x10b   : > { %v1770_v16 = vpop.f32.mrf.mxu1 }
 0x10c   : > { %v458_v15 = vadd.f32 %v1770_v16, %v1750_v14  ;;  %v348_v17 = vpop.f32.mrf.mxu0 }
 0x10d   : > { %v449_v18 = vpop.f32.mrf.mxu1 }
 0x10e   : > { %v450_v19 = vadd.f32 %v449_v18, %v348_v17  ;;  %v1751_v20 = vpop.f32.mrf.mxu0 }
 0x10f   : > { %v1771_v21 = vpop.f32.mrf.mxu1 }
 0x110   : > { %v351_v23 = vpop.f32.mrf.mxu0 }
 0x111   : > { %v452_v24 = vpop.f32.mrf.mxu1 }
 0x112   : > { %v453_v25 = vadd.f32 %v452_v24, %v351_v23 }
 0x12a   : > { %v1790_v26 = vpop.f32.mrf.mxu0 }
 0x12b   : > { %v588_v27 = vadd.f32 %v1790_v26, %v458_v15  ;;  %v1810_v28 = vpop.f32.mrf.mxu1 }
 0x12c   : > { %v572_v29 = vpop.f32.mrf.mxu0 }
 0x12d   : > { %v586_v30 = vadd.f32 %v572_v29, %v450_v19  ;;  %v724_v31 = vadd.f32 %v1810_v28, %v588_v27  ;;  %v708_v32 = vpop.f32.mrf.mxu1 }
 0x12e   : > { %v1791_v33 = vpop.f32.mrf.mxu0 }
 0x12f   : > { %v722_v34 = vadd.f32 %v708_v32, %v586_v30  ;;  %v1811_v35 = vpop.f32.mrf.mxu1 }
 0x130   : > { %v575_v36 = vpop.f32.mrf.mxu0 }
 0x131   : > { %v711_v37 = vpop.f32.mrf.mxu1  ;;  %v587_v52 = vadd.f32 %v575_v36, %v453_v25 }
 0x133   : > { %v723_v55 = vadd.f32 %v711_v37, %v587_v52 }
 0x14a   : > { %v1830_v38 = vpop.f32.mrf.mxu0 }
 0x14b   : > { %v1850_v39 = vpop.f32.mrf.mxu1  ;;  %v864_v53 = vadd.f32 %v1830_v38, %v724_v31 }
 0x14c   : > { %v848_v40 = vpop.f32.mrf.mxu0 }
 0x14d   : > { %v968_v41 = vpop.f32.mrf.mxu1  ;;  %v862_v54 = vadd.f32 %v848_v40, %v722_v34  ;;  %v984_v56 = vadd.f32 %v1850_v39, %v864_v53  ;;  %v1433_v39 = vld [vmem:[%s2242_s11] sm:$0xc]  ;;  %v1457_v40 = vld [vmem:[%s2242_s11 + $0x4] sm:$0x3] }
 0x14e   : > { %v1831_v42 = vpop.f32.mrf.mxu0 }
 0x14f   : > { %v1851_v43 = vpop.f32.mrf.mxu1  ;;  %v982_v57 = vadd.f32 %v968_v41, %v862_v54 }
 0x150   : > { %v851_v44 = vpop.f32.mrf.mxu0 }
 0x151   : > { %v971_v45 = vpop.f32.mrf.mxu1  ;;  %v863_v59 = vadd.f32 %v851_v44, %v723_v55 }
 0x153   : > { %v983_v62 = vadd.f32 %v971_v45, %v863_v59 }
 0x16a   : > { %v1870_v46 = vpop.f32.mrf.mxu0 }
 0x16b   : > { %v1890_v47 = vpop.f32.mrf.mxu1  ;;  %v1120_v58 = vadd.f32 %v1870_v46, %v984_v56 }
 0x16c   : > { %v1104_v48 = vpop.f32.mrf.mxu0 }
 0x16d   : > { %v1244_v49 = vpop.f32.mrf.mxu1  ;;  %v1118_v60 = vadd.f32 %v1104_v48, %v982_v57  ;;  %v1260_v63 = vadd.f32 %v1890_v47, %v1120_v58 }
 0x16e   : > { %v1871_v50 = vpop.f32.mrf.mxu0 }
 0x16f   : > { %v1891_v51 = vpop.f32.mrf.mxu1  ;;  %v1258_v2 = vadd.f32 %v1244_v49, %v1118_v60 }
 0x170   : > { %v1107_v61 = vpop.f32.mrf.mxu0 }
 0x171   : > { %v1119_v3 = vadd.f32 %v1107_v61, %v983_v62  ;;  %v1247_v5 = vpop.f32.mrf.mxu1 }
 0x173   : > { %v1259_v10 = vadd.f32 %v1247_v5, %v1119_v3 }
 0x18a   : > { %v1910_v0 = vpop.f32.mrf.mxu0 }
 0x18b   : > { %v1385_v4 = vadd.f32 %v1910_v0, %v1260_v63 }
 0x18c   : > { %v1369_v6 = vpop.f32.mrf.mxu0 }
 0x18d   : > { %v1395_v7 = vadd.f32 %v1635_v1, %v1385_v4  ;;  %v1383_v8 = vadd.f32 %v1369_v6, %v1258_v2 }
 0x18e   : > { %v1911_v9 = vpop.f32.mrf.mxu0 }
 0x18f   : > { %v1398_v11 = vmax.f32 %v1395_v7, 0.0  ;;  %v1393_v12 = vadd.f32 %v1635_v1, %v1383_v8 }
 0x190   : > { %v1372_v13 = vpop.f32.mrf.mxu0 }
 0x191   : > { %1401 = vst [vmem:[#allocation2 + $0x10] sm:$0x3f] %v1398_v11  ;;  %v1396_v14 = vmax.f32 %v1393_v12, 0.0  ;;  %v1384_v16 = vadd.f32 %v1372_v13, %v1259_v10 }
 0x193   : > { %1399 = vst [vmem:[#allocation2] sm:$0xff] %v1396_v14  ;;  %v1394_v15 = vadd.f32 %v1635_v1, %v1384_v16 }
 0x195   : > { %v1397_v17 = vmax.f32 %v1394_v15, 0.0 }
 0x197   : > { %1400 = vst [vmem:[#allocation2 + $0x8] sm:$0xff] %v1397_v17 }
 0x198   : > { %v1406_v18 = vld [vmem:[#allocation2 + $0x10] ss:$2 sm:$0x7]  ;;  %v1410_v19 = vld [vmem:[#allocation2 + $0x11] ss:$2 sm:$0x7] }
 0x199   : > { %v1412_v20 = vmax.f32 %v1406_v18, %v1410_v19 }
 0x19b   : > { %v1437_v24 = vrot.slane %v1412_v20, 3 }
 0x19e   : > { %v1404_v21 = vld [vmem:[#allocation2] ss:$2 sm:$0xff]  ;;  %v1408_v23 = vld [vmem:[#allocation2 + $0x1] ss:$2 sm:$0xff] }
 0x19f   : > { %v1411_v25 = vmax.f32 %v1404_v21, %v1408_v23 }
 0x1a1   : > { %v1414_v22 = vrot.slane %v1411_v25, 3  ;;  %v1439_v26 = vmax.f32 %v1411_v25, %v1437_v24 }
 0x1a3   : > { %v1416_v27 = vmax.f32 %v1411_v25, %v1414_v22  ;;  %v1641_v28 = vpack.c.bf16 %v1439_v26, %v1439_v26 }
 0x1a5   : > { %v1640_v29 = vpack.c.bf16 %v1416_v27, %v1416_v27  ;;  %v1445_v30 = vshrl.u32 %v1641_v28, 16  ;;  %v1448_v31 = vshll.u32 %v1641_v28, 16 }
 0x1a7   : > { %v1422_v32 = vshrl.u32 %v1640_v29, 16  ;;  %v1425_v33 = vshll.u32 %v1640_v29, 16  ;;  %v1447_v34 = vrot.slane %v1445_v30, 6  ;;  %v1450_v35 = vrot.slane %v1448_v31, 7 }
 0x1a9   : > { %v1424_v36 = vrot.slane %v1422_v32, 5  ;;  %v1427_v37 = vrot.slane %v1425_v33, 6  ;;  %v1451_v38 = vor.u32 %v1450_v35, %v1447_v34 }
 0x1ab   : > { %v1428_v41 = vor.u32 %v1427_v37, %v1424_v36  ;;  %v1452_v42 = vrot.slane %v1451_v38, 4 }
 0x1ad   : > { %v1434_v43 = vsel %vm1432_vm10, %v1428_v41, %v1433_v39  ;;  %v1458_v44 = vsel %vm1456_vm11, %v1452_v42, %v1457_v40 }
 0x1ae   : > { %1435 = vst [vmem:[%s2242_s11] sm:$0xc] %v1434_v43  ;;  %1459 = vst [vmem:[%s2242_s11 + $0x4] sm:$0x3] %v1458_v44 }
 0x1af PF: > { %s15_s12 = sadd.s32 1, %s2095_s12  }
 0x1b0   : > { %p12_p3 = scmp.ge.s32.totalorder %s15_s12, 4  }
 0x1b2   :  { %14 = sbr.rel (!%p12_p3) target bundleno = 2 (0x2), region = 82 }
 0x1b7   :  { %1482 = vsyncpa [#allocation4], 1 }
 0x1b8   :  { %1484 = vsyncpa [#allocation4 + $0x1], 1 }
 0x1b9   :  { %1485 = vsyncpa [#allocation6], 1 }

// kernel: vgg_forward.5
= control target key start
LH: loop header
LB: loop body
LE: loop exit
PB: predicated region body
PF: predicated region fallthrough
CT: control target
= control target key end

     0   :  { %10 = vsyncpa [#allocation3], 0  ;;  %s4602_s0 = inlined_call_operand.vmem [shape: bf16[32,128], index: 0, kind: input, shape index: {}]   ;;  %s4603_s1 = inlined_call_operand.hbm [shape: bf16[9,128,512], index: 1, kind: input, shape index: {}]   ;;  %s4604_s2 = inlined_call_operand.hbm [shape: f32[1,512], index: 2, kind: input, shape index: {}]   ;;  %s4605_s3 = inlined_call_operand.hbm [shape: bf16[512,128], index: 3, kind: input, shape index: {}]   ;;  %s4606_s4 = inlined_call_operand.hbm [shape: f32[1,128], index: 4, kind: input, shape index: {}]   ;;  %s4607_s5 = inlined_call_operand.hbm [shape: f32[2,128], index: 5, kind: output, shape index: {}]  }
   0x1   :  { %11 = vsyncpa [#allocation6], 0 }
   0x2   :  { %12 = vsyncpa [#allocation9], 0 }
   0x3   :  { %13 = vsyncpa [#allocation4], 0  ;;  %s4339_s18 = smov [#allocation5]   ;;  %s4340_s20 = smov [#allocation2]  }
   0x4   :  { %s34_s19 = sshll.u32 %s4339_s18, 4  ;;  %s21_s21 = sshll.u32 %s4340_s20, 4  ;;  %s35_s19 = int_to_ptr.vmem [resolvable:$true] %s34_s19  ;;  %s22_s21 = int_to_ptr.vmem [resolvable:$true] %s21_s21 }
   0x5   :  { %s4239_s22 = scalar_lea.vmem %s35_s19, 64  ;;  %p4244_p1 = scmp.lt.s32.totalorder %s35_s19, %s35_s19 }
   0x6   :  { %p4240_p0 = scmp.ne.s32.totalorder %s35_s19, %s4239_s22  ;;  %p4245_p2 = scmp.lt.s32.totalorder %s4239_s22, %s4239_s22 }
   0x8   :  { %p4246_p3 = por %p4245_p2, %p4244_p1 }
   0xa   :  { %p4247_p4 = pnand %p4246_p3, %p4240_p0 }
   0xc   :  { %4250 = shalt.err (!%p4247_p4)
}
   0xd   :  { %37 = dma.hbm_to_vmem [thread:$0]  %s4604_s2, 64, %s35_s19, [#allocation6]  }
   0xe   :  { %s4259_s25 = scalar_lea.vmem %s22_s21, 36864  ;;  %p4264_p6 = scmp.lt.s32.totalorder %s22_s21, %s22_s21 }
   0xf   :  { %p4260_p5 = scmp.ne.s32.totalorder %s22_s21, %s4259_s25  ;;  %p4265_p7 = scmp.lt.s32.totalorder %s4259_s25, %s4259_s25 }
  0x11   :  { %p4266_p8 = por %p4265_p7, %p4264_p6 }
  0x13   :  { %p4267_p9 = pnand %p4266_p8, %p4260_p5 }
  0x15   :  { %4270 = shalt.err (!%p4267_p9)
}
  0x16   :  { %s4341_s26 = smov 256   ;;  %s4342_s27 = smov 16  }
  0x17   :  { %27 = dma.hbm_to_vmem [thread:$0]  %s4603_s1, 36864, %s22_s21, [#allocation3], %s4341_s26, %s4341_s26, %s4342_s27  }
  0x18   :  { %s4343_s30 = smov [#allocation7]  }
  0x19   :  { %s43_s6 = sshll.u32 %s4343_s30, 4  ;;  %s44_s6 = int_to_ptr.vmem [resolvable:$true] %s43_s6 }
  0x1a   :  { %s4279_s7 = scalar_lea.vmem %s44_s6, 4096  ;;  %p4284_p11 = scmp.lt.s32.totalorder %s44_s6, %s44_s6 }
  0x1b   :  { %p4280_p10 = scmp.ne.s32.totalorder %s44_s6, %s4279_s7  ;;  %p4285_p12 = scmp.lt.s32.totalorder %s4279_s7, %s4279_s7 }
  0x1d   :  { %p4286_p13 = por %p4285_p12, %p4284_p11 }
  0x1f   :  { %p4287_p0 = pnand %p4286_p13, %p4280_p10 }
  0x21   :  { %4290 = shalt.err (!%p4287_p0)
}
  0x22   :  { %s4344_s2 = smov 64   ;;  %s4345_s8 = smov 4  }
  0x23   :  { %49 = dma.hbm_to_vmem [thread:$0]  %s4605_s3, 4096, %s44_s6, [#allocation6], %s4344_s2, %s4344_s2, %s4345_s8  }
  0x24   :  { %s4346_s11 = smov [#allocation8]  }
  0x25   :  { %s56_s12 = sshll.u32 %s4346_s11, 4  ;;  %s57_s12 = int_to_ptr.vmem [resolvable:$true] %s56_s12 }
  0x26   :  { %s4299_s1 = scalar_lea.vmem %s57_s12, 16  ;;  %s4303_s13 = scalar_lea.vmem %s57_s12, 32 }
  0x27   :  { %p4300_p1 = scmp.ne.s32.totalorder %s57_s12, %s4299_s1  ;;  %p4304_p2 = scmp.lt.s32.totalorder %s57_s12, %s57_s12 }
  0x28   :  { %p4305_p3 = scmp.lt.s32.totalorder %s4303_s13, %s4299_s1 }
  0x2a   :  { %p4306_p4 = por %p4305_p3, %p4304_p2 }
  0x2c   :  { %p4307_p5 = pnand %p4306_p4, %p4300_p1 }
  0x2e   :  { %4310 = shalt.err (!%p4307_p5)
}
  0x2f   :  { %59 = dma.hbm_to_vmem [thread:$0]  %s4606_s4, 16, %s57_s12, [#allocation9]  }
  0x30   :  { %4331 = dma.done.wait [#allocation3], 36864  }
  0x31   :  { %4332 = vsyncadd [#allocation3], 4294930432 }
  0x32   :  { %4333 = dma.done.wait [#allocation6], 4160  }
  0x33   :  { %4334 = vsyncadd [#allocation6], 4294963136 }
  0x34   :  { %4335 = dma.done.wait [#allocation9], 16  }
  0x35   :  { %4336 = vsyncadd [#allocation9], 4294967280  ;;  %v4347_v0 = vmov 0   ;;  %v3754_v1 = vld [vmem:[#allocation2 + $0x1e4] ss:$16 sps:$4 sm:$0xff]   ;;  %vm726_vm1 = vcmask 1046528  }
  0x36   :  { %360 = vmatprep.mubr.bf16.mxu0 %v4347_v0  ;;  %409 = vmatprep.mubr.bf16.mxu1 %v4347_v0  ;;  %v3756_v2 = vld [vmem:[#allocation2 + $0x1ec] ss:$16 sps:$4 sm:$0xff]   ;;  %v3758_v3 = vld [vmem:[#allocation2 + $0x1e0] ss:$16 sps:$4 sm:$0xff]   ;;  %v3759_v4 = vld [vmem:[#allocation2 + $0x1e8] ss:$16 sps:$4 sm:$0xff]  }
  0x37   :  { %328 = vmatprep.subr.bf16.mxu0 %v3754_v1  ;;  %377 = vmatprep.subr.bf16.mxu1 %v3756_v2  ;;  %v3760_v5 = vld [vmem:[#allocation2 + $0x1c4] ss:$16 sps:$4 sm:$0xff]   ;;  %v3762_v6 = vld [vmem:[#allocation2 + $0x1cc] ss:$16 sps:$4 sm:$0xff]   ;;  %v3764_v7 = vld [vmem:[#allocation2 + $0x1c0] ss:$16 sps:$4 sm:$0xff]  }
  0x38   :  { %329 = vmatpush1.bf16.msra.mxu0 %v3758_v3  ;;  %378 = vmatpush1.bf16.msra.mxu1 %v3759_v4  ;;  %v3765_v8 = vld [vmem:[#allocation2 + $0x1c8] ss:$16 sps:$4 sm:$0xff]   ;;  %v3766_v9 = vld [vmem:[#allocation2 + $0x1a4] ss:$16 sps:$4 sm:$0xff]   ;;  %v3768_v10 = vld [vmem:[#allocation2 + $0x1ac] ss:$16 sps:$4 sm:$0xff]  }
  0x39   :  { %330 = vmatprep.subr.bf16.mxu0 %v3760_v5  ;;  %379 = vmatprep.subr.bf16.mxu1 %v3762_v6  ;;  %v3770_v11 = vld [vmem:[#allocation2 + $0x1a0] ss:$16 sps:$4 sm:$0xff]   ;;  %v3771_v12 = vld [vmem:[#allocation2 + $0x1a8] ss:$16 sps:$4 sm:$0xff]   ;;  %v3772_v13 = vld [vmem:[#allocation2 + $0x184] ss:$16 sps:$4 sm:$0xff]  }
  0x3a   :  { %v3774_v14 = vld [vmem:[#allocation2 + $0x18c] ss:$16 sps:$4 sm:$0xff]   ;;  %v3776_v15 = vld [vmem:[#allocation2 + $0x180] ss:$16 sps:$4 sm:$0xff]   ;;  %v3777_v16 = vld [vmem:[#allocation2 + $0x188] ss:$16 sps:$4 sm:$0xff]  }
  0x3b   :  { %v3778_v17 = vld [vmem:[#allocation2 + $0x164] ss:$16 sps:$4 sm:$0xff]   ;;  %v3780_v18 = vld [vmem:[#allocation2 + $0x16c] ss:$16 sps:$4 sm:$0xff]   ;;  %v3782_v19 = vld [vmem:[#allocation2 + $0x160] ss:$16 sps:$4 sm:$0xff]  }
  0x3c   :  { %331 = vmatpush1.bf16.msra.mxu0 %v3764_v7  ;;  %380 = vmatpush1.bf16.msra.mxu1 %v3765_v8  ;;  %v3783_v20 = vld [vmem:[#allocation2 + $0x168] ss:$16 sps:$4 sm:$0xff]   ;;  %v3784_v21 = vld [vmem:[#allocation2 + $0x144] ss:$16 sps:$4 sm:$0xff]   ;;  %v3786_v22 = vld [vmem:[#allocation2 + $0x14c] ss:$16 sps:$4 sm:$0xff]  }
  0x3d   :  { %332 = vmatprep.subr.bf16.mxu0 %v3766_v9  ;;  %381 = vmatprep.subr.bf16.mxu1 %v3768_v10  ;;  %v3788_v23 = vld [vmem:[#allocation2 + $0x140] ss:$16 sps:$4 sm:$0xff]   ;;  %v3789_v24 = vld [vmem:[#allocation2 + $0x148] ss:$16 sps:$4 sm:$0xff]   ;;  %v3790_v25 = vld [vmem:[#allocation2 + $0x124] ss:$16 sps:$4 sm:$0xff]  }
  0x3e   :  { %v3792_v26 = vld [vmem:[#allocation2 + $0x12c] ss:$16 sps:$4 sm:$0xff]   ;;  %v73_v27 = vld [vmem:[%s4602_s0] sm:$0xf]  ;;  %v4399_v28 = vld [vmem:[%s4602_s0 + $0x4] sm:$0xf] }
  0x3f   :  { %v4402_v29 = vcombine.low %v73_v27, %v4399_v28  ;;  %v4407_v30 = vld [vmem:[%s4602_s0 + $0x8] ss:$0 sps:$4 sm:$0xff]   ;;  %v3794_v31 = vld [vmem:[#allocation2 + $0x120] ss:$16 sps:$4 sm:$0xff]   ;;  %v3796_v36 = vld [vmem:[#allocation2 + $0x104] ss:$16 sps:$4 sm:$0xff]  }
  0x40   :  { %333 = vmatpush1.bf16.msra.mxu0 %v3770_v11  ;;  %382 = vmatpush1.bf16.msra.mxu1 %v3771_v12  ;;  %v3795_v32 = vld [vmem:[#allocation2 + $0x128] ss:$16 sps:$4 sm:$0xff]   ;;  %v159_v35 = vshll.u32 %v4407_v30, 16  ;;  %v3798_v37 = vld [vmem:[#allocation2 + $0x10c] ss:$16 sps:$4 sm:$0xff]   ;;  %v163_v51 = vshrl.u32 %v4407_v30, 16 }
  0x41   :  { %334 = vmatprep.subr.bf16.mxu0 %v3772_v13  ;;  %383 = vmatprep.subr.bf16.mxu1 %v3774_v14  ;;  %v152_v33 = vshrl.u32 %v4402_v29, 16  ;;  %v154_v34 = vshll.u32 %v4402_v29, 16  ;;  %v3800_v39 = vld [vmem:[#allocation2 + $0x100] ss:$16 sps:$4 sm:$0xff]   ;;  %vm150_vm0 = vsmask.f32 7424 }
  0x42   :  { %v3801_v40 = vld [vmem:[#allocation2 + $0x108] ss:$16 sps:$4 sm:$0xff]   ;;  %v161_v42 = vrot.slane %v159_v35, 1  ;;  %v3806_v43 = vld [vmem:[#allocation2 + $0xe4] ss:$16 sps:$4 sm:$0xff]   ;;  %vm1045_vm2 = vcmask 1045504  }
  0x43   :  { %v156_v38 = vrot.slane %v154_v34, 1  ;;  %v3809_v44 = vld [vmem:[#allocation2 + $0xec] ss:$16 sps:$4 sm:$0xff]   ;;  %v3804_v45 = vld [vmem:[#allocation2 + $0xe0] ss:$16 sps:$4 sm:$0xff]   ;;  %vm1677_vm4 = vcmask 1044480  }
  0x44   :  { %335 = vmatpush1.bf16.msra.mxu0 %v3776_v15  ;;  %384 = vmatpush1.bf16.msra.mxu1 %v3777_v16  ;;  %v3807_v47 = vld [vmem:[#allocation2 + $0xe8] ss:$16 sps:$4 sm:$0xff]   ;;  %v3812_v48 = vld [vmem:[#allocation2 + $0xc4] ss:$16 sps:$4 sm:$0xff]   ;;  %v3815_v49 = vld [vmem:[#allocation2 + $0xcc] ss:$16 sps:$4 sm:$0xff]   ;;  %v165_v56 = vor.u32 %v163_v51, %v161_v42 }
  0x45   :  { %336 = vmatprep.subr.bf16.mxu0 %v3778_v17  ;;  %385 = vmatprep.subr.bf16.mxu1 %v3780_v18  ;;  %v157_v41 = vor.u32 %v156_v38, %v152_v33  ;;  %v3810_v50 = vld [vmem:[#allocation2 + $0xc0] ss:$16 sps:$4 sm:$0xff]   ;;  %v3813_v52 = vld [vmem:[#allocation2 + $0xc8] ss:$16 sps:$4 sm:$0xff]   ;;  %v3818_v53 = vld [vmem:[#allocation2 + $0xa4] ss:$16 sps:$4 sm:$0xff]  }
  0x46   :  { %v3821_v54 = vld [vmem:[#allocation2 + $0xac] ss:$16 sps:$4 sm:$0xff]   ;;  %v3816_v55 = vld [vmem:[#allocation2 + $0xa0] ss:$16 sps:$4 sm:$0xff]   ;;  %v3819_v57 = vld [vmem:[#allocation2 + $0xa8] ss:$16 sps:$4 sm:$0xff]  }
  0x47   :  { %v162_v46 = vsel %vm150_vm0, %v157_v41, %v161_v42  ;;  %v3824_v58 = vld [vmem:[#allocation2 + $0x84] ss:$16 sps:$4 sm:$0xff]   ;;  %v3827_v59 = vld [vmem:[#allocation2 + $0x8c] ss:$16 sps:$4 sm:$0xff]   ;;  %v3822_v60 = vld [vmem:[#allocation2 + $0x80] ss:$16 sps:$4 sm:$0xff]  }
  0x48   :  { %337 = vmatpush1.bf16.msra.mxu0 %v3782_v19  ;;  %386 = vmatpush1.bf16.msra.mxu1 %v3783_v20  ;;  %v3825_v61 = vld [vmem:[#allocation2 + $0x88] ss:$16 sps:$4 sm:$0xff]   ;;  %v3830_v62 = vld [vmem:[#allocation2 + $0x64] ss:$16 sps:$4 sm:$0xff]   ;;  %v3833_v63 = vld [vmem:[#allocation2 + $0x6c] ss:$16 sps:$4 sm:$0xff]  }
  0x49   :  { %338 = vmatprep.subr.bf16.mxu0 %v3784_v21  ;;  %387 = vmatprep.subr.bf16.mxu1 %v3786_v22  ;;  %v3828_v1 = vld [vmem:[#allocation2 + $0x60] ss:$16 sps:$4 sm:$0xff]   ;;  %v3831_v2 = vld [vmem:[#allocation2 + $0x68] ss:$16 sps:$4 sm:$0xff]   ;;  %v3836_v3 = vld [vmem:[#allocation2 + $0x44] ss:$16 sps:$4 sm:$0xff]  }
  0x4a   :  { %v3839_v4 = vld [vmem:[#allocation2 + $0x4c] ss:$16 sps:$4 sm:$0xff]   ;;  %v3834_v5 = vld [vmem:[#allocation2 + $0x40] ss:$16 sps:$4 sm:$0xff]   ;;  %v3837_v6 = vld [vmem:[#allocation2 + $0x48] ss:$16 sps:$4 sm:$0xff]  }
  0x4b   :  { %v3842_v7 = vld [vmem:[#allocation2 + $0x24] ss:$16 sps:$4 sm:$0xff]   ;;  %v3845_v8 = vld [vmem:[#allocation2 + $0x2c] ss:$16 sps:$4 sm:$0xff]   ;;  %v3840_v9 = vld [vmem:[#allocation2 + $0x20] ss:$16 sps:$4 sm:$0xff]  }
  0x4c   :  { %339 = vmatpush1.bf16.msra.mxu0 %v3788_v23  ;;  %388 = vmatpush1.bf16.msra.mxu1 %v3789_v24  ;;  %v3843_v10 = vld [vmem:[#allocation2 + $0x28] ss:$16 sps:$4 sm:$0xff]   ;;  %v3848_v11 = vld [vmem:[#allocation2 + $0x4] ss:$16 sps:$4 sm:$0xff]   ;;  %v3851_v12 = vld [vmem:[#allocation2 + $0xc] ss:$16 sps:$4 sm:$0xff]  }
  0x4d   :  { %340 = vmatprep.subr.bf16.mxu0 %v3790_v25  ;;  %389 = vmatprep.subr.bf16.mxu1 %v3792_v26  ;;  %v3846_v13 = vld [vmem:[#allocation2] ss:$16 sps:$4 sm:$0xff]   ;;  %v3849_v14 = vld [vmem:[#allocation2 + $0x8] ss:$16 sps:$4 sm:$0xff]   ;;  %v3854_v15 = vld [vmem:[#allocation2 + $0x2e4] ss:$16 sps:$4 sm:$0xff]  }
  0x4e   :  { %v3857_v16 = vld [vmem:[#allocation2 + $0x2ec] ss:$16 sps:$4 sm:$0xff]   ;;  %v3852_v17 = vld [vmem:[#allocation2 + $0x2e0] ss:$16 sps:$4 sm:$0xff]   ;;  %v3855_v18 = vld [vmem:[#allocation2 + $0x2e8] ss:$16 sps:$4 sm:$0xff]  }
  0x4f   :  { %v3860_v19 = vld [vmem:[#allocation2 + $0x2c4] ss:$16 sps:$4 sm:$0xff]   ;;  %v3863_v20 = vld [vmem:[#allocation2 + $0x2cc] ss:$16 sps:$4 sm:$0xff]   ;;  %v689_v21 = vld [vmem:[%s4602_s0] sm:$0xe] }
  0x50   :  { %341 = vmatpush1.bf16.msra.mxu0 %v3794_v31  ;;  %390 = vmatpush1.bf16.msra.mxu1 %v3795_v32  ;;  %v3858_v22 = vld [vmem:[#allocation2 + $0x2c0] ss:$16 sps:$4 sm:$0xff]   ;;  %v3861_v23 = vld [vmem:[#allocation2 + $0x2c8] ss:$16 sps:$4 sm:$0xff]   ;;  %v3434_v24 = vcombine.low %v689_v21, %v4399_v28  ;;  %v4425_v25 = vrot.slane %v4407_v30, 1  ;;  %vm2997_vm5 = vcmask 1040384  }
  0x51   :  { %342 = vmatprep.subr.bf16.mxu0 %v3796_v36  ;;  %391 = vmatprep.subr.bf16.mxu1 %v3798_v37  ;;  %v3867_v26 = vld [vmem:[#allocation2 + $0x2a4] ss:$16 sps:$4 sm:$0xff]   ;;  %v3870_v27 = vld [vmem:[#allocation2 + $0x2ac] ss:$16 sps:$4 sm:$0xff]   ;;  %v3865_v28 = vld [vmem:[#allocation2 + $0x2a0] ss:$16 sps:$4 sm:$0xff]  }
  0x52   :  { %v727_v31 = vrot.slane %v3434_v24, 1  ;;  %v3868_v32 = vld [vmem:[#allocation2 + $0x2a8] ss:$16 sps:$4 sm:$0xff]   ;;  %v3873_v33 = vld [vmem:[#allocation2 + $0x284] ss:$16 sps:$4 sm:$0xff]  }
  0x53   :  { %v3876_v34 = vld [vmem:[#allocation2 + $0x28c] ss:$16 sps:$4 sm:$0xff]   ;;  %v3871_v35 = vld [vmem:[#allocation2 + $0x280] ss:$16 sps:$4 sm:$0xff]   ;;  %v3874_v36 = vld [vmem:[#allocation2 + $0x288] ss:$16 sps:$4 sm:$0xff]  }
  0x54   :  { %343 = vmatpush1.bf16.msra.mxu0 %v3800_v39  ;;  %392 = vmatpush1.bf16.msra.mxu1 %v3801_v40  ;;  %v729_v30 = vsel %vm726_vm1, %v727_v31, %v4425_v25  ;;  %v3879_v37 = vld [vmem:[#allocation2 + $0x264] ss:$16 sps:$4 sm:$0xff]   ;;  %v3882_v38 = vld [vmem:[#allocation2 + $0x26c] ss:$16 sps:$4 sm:$0xff]   ;;  %v3877_v39 = vld [vmem:[#allocation2 + $0x260] ss:$16 sps:$4 sm:$0xff]  }
  0x55   :  { %591 = vmatprep.subr.bf16.mxu0 %v3806_v43  ;;  %640 = vmatprep.subr.bf16.mxu1 %v3809_v44  ;;  %v3880_v40 = vld [vmem:[#allocation2 + $0x268] ss:$16 sps:$4 sm:$0xff]   ;;  %v3885_v41 = vld [vmem:[#allocation2 + $0x244] ss:$16 sps:$4 sm:$0xff]   ;;  %v3888_v42 = vld [vmem:[#allocation2 + $0x24c] ss:$16 sps:$4 sm:$0xff]  }
  0x56   :  { %v3883_v43 = vld [vmem:[#allocation2 + $0x240] ss:$16 sps:$4 sm:$0xff]   ;;  %v3886_v44 = vld [vmem:[#allocation2 + $0x248] ss:$16 sps:$4 sm:$0xff]   ;;  %v3946_v24 = vld [vmem:[#allocation2 + $0x304] ss:$16 sps:$4 sm:$0xff]  }
  0x57   :  { %361 = vmatmul.mubr.bf16.vlgmr.msra.gmra.mxu0 %v162_v46  ;;  %410 = vmatmul.mubr.bf16.vlgmr.msra.gmra.mxu1 %v162_v46  ;;  %v3894_v46 = vld [vmem:[#allocation2 + $0x22c] ss:$16 sps:$4 sm:$0xff]   ;;  %v3895_v51 = vld [vmem:[#allocation2 + $0x200] ss:$16 sps:$4 sm:$0xff]   ;;  %v3941_v21 = vld [vmem:[#allocation2 + $0x328] ss:$16 sps:$4 sm:$0xff]  }
  0x58   :  { %592 = vmatpush1.bf16.msra.mxu0 %v3804_v45  ;;  %641 = vmatpush1.bf16.msra.mxu1 %v3807_v47  ;;  %v3891_v45 = vld [vmem:[#allocation2 + $0x224] ss:$16 sps:$4 sm:$0xff]   ;;  %v3889_v47 = vld [vmem:[#allocation2 + $0x220] ss:$16 sps:$4 sm:$0xff]   ;;  %vm1354_vm3 = vsmask.f32 5376 }
  0x59   :  { %593 = vmatprep.subr.bf16.mxu0 %v3812_v48  ;;  %642 = vmatprep.subr.bf16.mxu1 %v3815_v49  ;;  %v3892_v48 = vld [vmem:[#allocation2 + $0x228] ss:$16 sps:$4 sm:$0xff]   ;;  %v3897_v49 = vld [vmem:[#allocation2 + $0x204] ss:$16 sps:$4 sm:$0xff]  }
  0x5a   :  { %368 = vmatprep.mubr.bf16.mxu0 %v4347_v0  ;;  %417 = vmatprep.mubr.bf16.mxu1 %v4347_v0 }
  0x5c   :  { %594 = vmatpush1.bf16.msra.mxu0 %v3810_v50  ;;  %643 = vmatpush1.bf16.msra.mxu1 %v3813_v52  ;;  %v3900_v50 = vld [vmem:[#allocation2 + $0x20c] ss:$16 sps:$4 sm:$0xff]   ;;  %v3898_v52 = vld [vmem:[#allocation2 + $0x208] ss:$16 sps:$4 sm:$0xff]  }
  0x5d   :  { %595 = vmatprep.subr.bf16.mxu0 %v3818_v53  ;;  %644 = vmatprep.subr.bf16.mxu1 %v3821_v54  ;;  %v3904_v53 = vld [vmem:[#allocation2 + $0x3e4] ss:$16 sps:$4 sm:$0xff]   ;;  %v3907_v54 = vld [vmem:[#allocation2 + $0x3ec] ss:$16 sps:$4 sm:$0xff]  }
  0x5f   :  { %369 = vmatmul.mubr.bf16.gmra.mxu0 %v165_v56  ;;  %418 = vmatmul.mubr.bf16.gmra.mxu1 %v165_v56  ;;  %v3905_v56 = vld [vmem:[#allocation2 + $0x3e8] ss:$16 sps:$4 sm:$0xff]  }
  0x60   :  { %596 = vmatpush1.bf16.msra.mxu0 %v3816_v55  ;;  %645 = vmatpush1.bf16.msra.mxu1 %v3819_v57  ;;  %v3902_v55 = vld [vmem:[#allocation2 + $0x3e0] ss:$16 sps:$4 sm:$0xff]   ;;  %v3910_v57 = vld [vmem:[#allocation2 + $0x3c4] ss:$16 sps:$4 sm:$0xff]  }
  0x61   :  { %597 = vmatprep.subr.bf16.mxu0 %v3824_v58  ;;  %646 = vmatprep.subr.bf16.mxu1 %v3827_v59  ;;  %v3913_v58 = vld [vmem:[#allocation2 + $0x3cc] ss:$16 sps:$4 sm:$0xff]   ;;  %v3908_v59 = vld [vmem:[#allocation2 + $0x3c0] ss:$16 sps:$4 sm:$0xff]  }
  0x62   :  { %623 = vmatprep.mubr.bf16.mxu0 %v4347_v0  ;;  %672 = vmatprep.mubr.bf16.mxu1 %v4347_v0 }
  0x64   :  { %598 = vmatpush1.bf16.msra.mxu0 %v3822_v60  ;;  %647 = vmatpush1.bf16.msra.mxu1 %v3825_v61  ;;  %v3911_v60 = vld [vmem:[#allocation2 + $0x3c8] ss:$16 sps:$4 sm:$0xff]   ;;  %v3916_v61 = vld [vmem:[#allocation2 + $0x3a4] ss:$16 sps:$4 sm:$0xff]  }
  0x65   :  { %599 = vmatprep.subr.bf16.mxu0 %v3830_v62  ;;  %648 = vmatprep.subr.bf16.mxu1 %v3833_v63  ;;  %v3919_v62 = vld [vmem:[#allocation2 + $0x3ac] ss:$16 sps:$4 sm:$0xff]   ;;  %v3914_v63 = vld [vmem:[#allocation2 + $0x3a0] ss:$16 sps:$4 sm:$0xff]  }
  0x68   :  { %600 = vmatpush1.bf16.msra.mxu0 %v3828_v1  ;;  %649 = vmatpush1.bf16.msra.mxu1 %v3831_v2  ;;  %v3917_v1 = vld [vmem:[#allocation2 + $0x3a8] ss:$16 sps:$4 sm:$0xff]   ;;  %v3922_v2 = vld [vmem:[#allocation2 + $0x384] ss:$16 sps:$4 sm:$0xff]  }
  0x69   :  { %601 = vmatprep.subr.bf16.mxu0 %v3836_v3  ;;  %650 = vmatprep.subr.bf16.mxu1 %v3839_v4  ;;  %v3925_v3 = vld [vmem:[#allocation2 + $0x38c] ss:$16 sps:$4 sm:$0xff]   ;;  %v3920_v4 = vld [vmem:[#allocation2 + $0x380] ss:$16 sps:$4 sm:$0xff]  }
  0x6c   :  { %602 = vmatpush1.bf16.msra.mxu0 %v3834_v5  ;;  %651 = vmatpush1.bf16.msra.mxu1 %v3837_v6  ;;  %v3923_v5 = vld [vmem:[#allocation2 + $0x388] ss:$16 sps:$4 sm:$0xff]   ;;  %v3928_v6 = vld [vmem:[#allocation2 + $0x364] ss:$16 sps:$4 sm:$0xff]  }
  0x6d   :  { %603 = vmatprep.subr.bf16.mxu0 %v3842_v7  ;;  %652 = vmatprep.subr.bf16.mxu1 %v3845_v8  ;;  %v3931_v7 = vld [vmem:[#allocation2 + $0x36c] ss:$16 sps:$4 sm:$0xff]   ;;  %v3926_v8 = vld [vmem:[#allocation2 + $0x360] ss:$16 sps:$4 sm:$0xff]  }
  0x70   :  { %604 = vmatpush1.bf16.msra.mxu0 %v3840_v9  ;;  %653 = vmatpush1.bf16.msra.mxu1 %v3843_v10  ;;  %v3929_v9 = vld [vmem:[#allocation2 + $0x368] ss:$16 sps:$4 sm:$0xff]   ;;  %v3934_v10 = vld [vmem:[#allocation2 + $0x344] ss:$16 sps:$4 sm:$0xff]  }
  0x71   :  { %605 = vmatprep.subr.bf16.mxu0 %v3848_v11  ;;  %654 = vmatprep.subr.bf16.mxu1 %v3851_v12  ;;  %v3937_v11 = vld [vmem:[#allocation2 + $0x34c] ss:$16 sps:$4 sm:$0xff]   ;;  %v3932_v12 = vld [vmem:[#allocation2 + $0x340] ss:$16 sps:$4 sm:$0xff]  }
  0x74   :  { %606 = vmatpush1.bf16.msra.mxu0 %v3846_v13  ;;  %655 = vmatpush1.bf16.msra.mxu1 %v3849_v14  ;;  %v3935_v13 = vld [vmem:[#allocation2 + $0x348] ss:$16 sps:$4 sm:$0xff]   ;;  %v3940_v14 = vld [vmem:[#allocation2 + $0x324] ss:$16 sps:$4 sm:$0xff]  }
  0x75   :  { %892 = vmatprep.subr.bf16.mxu0 %v3854_v15  ;;  %941 = vmatprep.subr.bf16.mxu1 %v3857_v16  ;;  %v3943_v15 = vld [vmem:[#allocation2 + $0x32c] ss:$16 sps:$4 sm:$0xff]   ;;  %v998_v16 = vld [vmem:[%s4602_s0] sm:$0xc] }
  0x77   :  { %624 = vmatmul.mubr.bf16.vlgmr.msra.gmra.mxu0 %v4402_v29  ;;  %673 = vmatmul.mubr.bf16.vlgmr.msra.gmra.mxu1 %v4402_v29  ;;  %v3864_v29 = vld [vmem:[%s4602_s0 + $0x8] ss:$0 sps:$4 sm:$0x77]  }
  0x78   :  { %893 = vmatpush1.bf16.msra.mxu0 %v3852_v17  ;;  %942 = vmatpush1.bf16.msra.mxu1 %v3855_v18  ;;  %v4448_v17 = vld [vmem:[%s4602_s0 + $0x4] sm:$0xf]  ;;  %v4453_v18 = vld [vmem:[%s4602_s0 + $0x8] sm:$0xf] }
  0x79   :  { %894 = vmatprep.subr.bf16.mxu0 %v3860_v19  ;;  %943 = vmatprep.subr.bf16.mxu1 %v3863_v20  ;;  %v1001_v19 = vld [vmem:[%s4602_s0 + $0xc] sm:$0x1]  ;;  %v3938_v20 = vld [vmem:[#allocation2 + $0x320] ss:$16 sps:$4 sm:$0xff]  }
  0x7a   :  { %631 = vmatprep.mubr.bf16.mxu0 %v4347_v0  ;;  %680 = vmatprep.mubr.bf16.mxu1 %v4347_v0 }
  0x7c   :  { %895 = vmatpush1.bf16.msra.mxu0 %v3858_v22  ;;  %944 = vmatpush1.bf16.msra.mxu1 %v3861_v23  ;;  %v4459_v22 = vcombine.low %v998_v16, %v4448_v17  ;;  %v3468_v23 = vcombine.low %v4453_v18, %v1001_v19  ;;  %v4004_v16 = vld [vmem:[#allocation2 + $0x5e8] ss:$16 sps:$4 sm:$0xff]   ;;  %v4009_v19 = vld [vmem:[#allocation2 + $0x5c4] ss:$16 sps:$4 sm:$0xff]  }
  0x7d   :  { %896 = vmatprep.subr.bf16.mxu0 %v3867_v26  ;;  %945 = vmatprep.subr.bf16.mxu1 %v3870_v27  ;;  %v3944_v26 = vld [vmem:[#allocation2 + $0x300] ss:$16 sps:$4 sm:$0xff]   ;;  %v3947_v27 = vld [vmem:[#allocation2 + $0x308] ss:$16 sps:$4 sm:$0xff]  }
  0x7e   :  { %v1046_v31 = vrot.slane %v4459_v22, 2 }
  0x7f   :  { %632 = vmatmul.mubr.bf16.gmra.mxu0 %v3864_v29  ;;  %681 = vmatmul.mubr.bf16.gmra.mxu1 %v3864_v29  ;;  %v1047_v29 = vrot.slane %v3468_v23, 2  ;;  %v4015_v23 = vld [vmem:[#allocation2 + $0x5a4] ss:$16 sps:$4 sm:$0xff]  }
  0x80   :  { %897 = vmatpush1.bf16.msra.mxu0 %v3865_v28  ;;  %946 = vmatpush1.bf16.msra.mxu1 %v3868_v32  ;;  %v3954_v28 = vld [vmem:[#allocation2 + $0x4e4] ss:$16 sps:$4 sm:$0xff]   ;;  %v3957_v32 = vld [vmem:[#allocation2 + $0x4ec] ss:$16 sps:$4 sm:$0xff]  }
  0x81   :  { %898 = vmatprep.subr.bf16.mxu0 %v3873_v33  ;;  %947 = vmatprep.subr.bf16.mxu1 %v3876_v34  ;;  %v3952_v33 = vld [vmem:[#allocation2 + $0x4e0] ss:$16 sps:$4 sm:$0xff]   ;;  %v3955_v34 = vld [vmem:[#allocation2 + $0x4e8] ss:$16 sps:$4 sm:$0xff]  }
  0x82   :  { %924 = vmatprep.mubr.bf16.mxu0 %v4347_v0  ;;  %973 = vmatprep.mubr.bf16.mxu1 %v4347_v0 }
  0x84   :  { %899 = vmatpush1.bf16.msra.mxu0 %v3871_v35  ;;  %948 = vmatpush1.bf16.msra.mxu1 %v3874_v36  ;;  %v3960_v35 = vld [vmem:[#allocation2 + $0x4c4] ss:$16 sps:$4 sm:$0xff]   ;;  %v3963_v36 = vld [vmem:[#allocation2 + $0x4cc] ss:$16 sps:$4 sm:$0xff]  }
  0x85   :  { %900 = vmatprep.subr.bf16.mxu0 %v3879_v37  ;;  %949 = vmatprep.subr.bf16.mxu1 %v3882_v38  ;;  %v3958_v37 = vld [vmem:[#allocation2 + $0x4c0] ss:$16 sps:$4 sm:$0xff]   ;;  %v3961_v38 = vld [vmem:[#allocation2 + $0x4c8] ss:$16 sps:$4 sm:$0xff]  }
  0x88   :  { %901 = vmatpush1.bf16.msra.mxu0 %v3877_v39  ;;  %950 = vmatpush1.bf16.msra.mxu1 %v3880_v40  ;;  %v3966_v39 = vld [vmem:[#allocation2 + $0x4a4] ss:$16 sps:$4 sm:$0xff]   ;;  %v3969_v40 = vld [vmem:[#allocation2 + $0x4ac] ss:$16 sps:$4 sm:$0xff]  }
  0x89   :  { %902 = vmatprep.subr.bf16.mxu0 %v3885_v41  ;;  %951 = vmatprep.subr.bf16.mxu1 %v3888_v42  ;;  %v3964_v41 = vld [vmem:[#allocation2 + $0x4a0] ss:$16 sps:$4 sm:$0xff]   ;;  %v3967_v42 = vld [vmem:[#allocation2 + $0x4a8] ss:$16 sps:$4 sm:$0xff]  }
  0x8c   :  { %903 = vmatpush1.bf16.msra.mxu0 %v3883_v43  ;;  %952 = vmatpush1.bf16.msra.mxu1 %v3886_v44  ;;  %v3972_v43 = vld [vmem:[#allocation2 + $0x484] ss:$16 sps:$4 sm:$0xff]   ;;  %v3975_v44 = vld [vmem:[#allocation2 + $0x48c] ss:$16 sps:$4 sm:$0xff]  }
  0x8d   :  { %904 = vmatprep.subr.bf16.mxu0 %v3891_v45  ;;  %953 = vmatprep.subr.bf16.mxu1 %v3894_v46  ;;  %v3970_v45 = vld [vmem:[#allocation2 + $0x480] ss:$16 sps:$4 sm:$0xff]   ;;  %v3973_v46 = vld [vmem:[#allocation2 + $0x488] ss:$16 sps:$4 sm:$0xff]  }
  0x90   :  { %905 = vmatpush1.bf16.msra.mxu0 %v3889_v47  ;;  %954 = vmatpush1.bf16.msra.mxu1 %v3892_v48  ;;  %v3978_v47 = vld [vmem:[#allocation2 + $0x464] ss:$16 sps:$4 sm:$0xff]   ;;  %v3981_v48 = vld [vmem:[#allocation2 + $0x46c] ss:$16 sps:$4 sm:$0xff]  }
  0x91   :  { %906 = vmatprep.subr.bf16.mxu0 %v3897_v49  ;;  %955 = vmatprep.subr.bf16.mxu1 %v3900_v50  ;;  %v1317_v49 = vld [vmem:[%s4602_s0 + $0xc] sm:$0x3]  ;;  %v3976_v50 = vld [vmem:[#allocation2 + $0x460] ss:$16 sps:$4 sm:$0xff]  }
  0x94   :  { %907 = vmatpush1.bf16.msra.mxu0 %v3895_v51  ;;  %956 = vmatpush1.bf16.msra.mxu1 %v3898_v52  ;;  %v3979_v51 = vld [vmem:[#allocation2 + $0x468] ss:$16 sps:$4 sm:$0xff]   ;;  %v3984_v52 = vld [vmem:[#allocation2 + $0x444] ss:$16 sps:$4 sm:$0xff]  }
  0x95   :  { %1211 = vmatprep.subr.bf16.mxu0 %v3904_v53  ;;  %1260 = vmatprep.subr.bf16.mxu1 %v3907_v54  ;;  %v4471_v53 = vcombine.low %v4453_v18, %v1317_v49  ;;  %v3987_v54 = vld [vmem:[#allocation2 + $0x44c] ss:$16 sps:$4 sm:$0xff]   ;;  %v4046_v49 = vld [vmem:[#allocation2 + $0x508] ss:$16 sps:$4 sm:$0xff]  }
  0x97   :  { %925 = vmatmul.mubr.bf16.vlgmr.msra.gmra.mxu0 %v729_v30  ;;  %974 = vmatmul.mubr.bf16.vlgmr.msra.gmra.mxu1 %v729_v30  ;;  %v1048_v30 = vsel %vm1045_vm2, %v1046_v31, %v1047_v29  ;;  %v4024_v31 = vld [vmem:[#allocation2 + $0x58c] ss:$16 sps:$4 sm:$0xff]  }
  0x98   :  { %1212 = vmatpush1.bf16.msra.mxu0 %v3902_v55  ;;  %1261 = vmatpush1.bf16.msra.mxu1 %v3905_v56  ;;  %v3982_v55 = vld [vmem:[#allocation2 + $0x440] ss:$16 sps:$4 sm:$0xff]   ;;  %v3985_v56 = vld [vmem:[#allocation2 + $0x448] ss:$16 sps:$4 sm:$0xff]  }
  0x99   :  { %1213 = vmatprep.subr.bf16.mxu0 %v3910_v57  ;;  %1262 = vmatprep.subr.bf16.mxu1 %v3913_v58  ;;  %v1356_v57 = vshrl.u32 %v4459_v22, 16  ;;  %v3990_v58 = vld [vmem:[#allocation2 + $0x424] ss:$16 sps:$4 sm:$0xff]  }
  0x9a   :  { %932 = vmatprep.mubr.bf16.mxu0 %v4347_v0  ;;  %981 = vmatprep.mubr.bf16.mxu1 %v4347_v0 }
  0x9c   :  { %1214 = vmatpush1.bf16.msra.mxu0 %v3908_v59  ;;  %1263 = vmatpush1.bf16.msra.mxu1 %v3911_v60  ;;  %v1359_v59 = vshll.u32 %v4459_v22, 16  ;;  %v1364_v60 = vshrl.u32 %v4471_v53, 16  ;;  %v4010_v22 = vld [vmem:[#allocation2 + $0x5c8] ss:$16 sps:$4 sm:$0xff]  }
  0x9d   :  { %1215 = vmatprep.subr.bf16.mxu0 %v3916_v61  ;;  %1264 = vmatprep.subr.bf16.mxu1 %v3919_v62  ;;  %v1367_v61 = vshll.u32 %v4471_v53, 16  ;;  %v3993_v62 = vld [vmem:[#allocation2 + $0x42c] ss:$16 sps:$4 sm:$0xff]  }
  0x9f   :  { %933 = vmatmul.mubr.bf16.gmra.mxu0 %v4425_v25  ;;  %982 = vmatmul.mubr.bf16.gmra.mxu1 %v4425_v25  ;;  %v3949_v25 = vld [vmem:[#allocation2 + $0x30c] ss:$16 sps:$4 sm:$0xff]  }
  0xa0   :  { %1216 = vmatpush1.bf16.msra.mxu0 %v3914_v63  ;;  %1265 = vmatpush1.bf16.msra.mxu1 %v3917_v1  ;;  %v3988_v63 = vld [vmem:[#allocation2 + $0x420] ss:$16 sps:$4 sm:$0xff]   ;;  %v3991_v1 = vld [vmem:[#allocation2 + $0x428] ss:$16 sps:$4 sm:$0xff]  }
  0xa1   :  { %1217 = vmatprep.subr.bf16.mxu0 %v3922_v2  ;;  %1266 = vmatprep.subr.bf16.mxu1 %v3925_v3  ;;  %v1358_v2 = vrot.slane %v1356_v57, 2  ;;  %v3996_v3 = vld [vmem:[#allocation2 + $0x404] ss:$16 sps:$4 sm:$0xff]  }
  0xa2   :  { %1243 = vmatprep.mubr.bf16.mxu0 %v4347_v0  ;;  %1292 = vmatprep.mubr.bf16.mxu1 %v4347_v0  ;;  %v4058_v57 = vld [vmem:[#allocation2 + $0x6c4] ss:$16 sps:$4 sm:$0xff]  }
  0xa4   :  { %1218 = vmatpush1.bf16.msra.mxu0 %v3920_v4  ;;  %1267 = vmatpush1.bf16.msra.mxu1 %v3923_v5  ;;  %v1361_v4 = vrot.slane %v1359_v59, 3  ;;  %v1366_v5 = vrot.slane %v1364_v60, 2  ;;  %v4059_v59 = vld [vmem:[#allocation2 + $0x6c8] ss:$16 sps:$4 sm:$0xff]   ;;  %v4064_v60 = vld [vmem:[#allocation2 + $0x6a4] ss:$16 sps:$4 sm:$0xff]  }
  0xa5   :  { %1219 = vmatprep.subr.bf16.mxu0 %v3928_v6  ;;  %1268 = vmatprep.subr.bf16.mxu1 %v3931_v7  ;;  %v1369_v6 = vrot.slane %v1367_v61, 3  ;;  %v3999_v7 = vld [vmem:[#allocation2 + $0x40c] ss:$16 sps:$4 sm:$0xff]  }
  0xa6   :  { %v4067_v61 = vld [vmem:[#allocation2 + $0x6ac] ss:$16 sps:$4 sm:$0xff]  }
  0xa8   :  { %1220 = vmatpush1.bf16.msra.mxu0 %v3926_v8  ;;  %1269 = vmatpush1.bf16.msra.mxu1 %v3929_v9  ;;  %v3994_v8 = vld [vmem:[#allocation2 + $0x400] ss:$16 sps:$4 sm:$0xff]   ;;  %v3997_v9 = vld [vmem:[#allocation2 + $0x408] ss:$16 sps:$4 sm:$0xff]  }
  0xa9   :  { %1221 = vmatprep.subr.bf16.mxu0 %v3934_v10  ;;  %1270 = vmatprep.subr.bf16.mxu1 %v3937_v11  ;;  %v1362_v10 = vor.u32 %v1361_v4, %v1358_v2  ;;  %v1370_v11 = vor.u32 %v1369_v6, %v1366_v5  ;;  %v4073_v2 = vld [vmem:[#allocation2 + $0x68c] ss:$16 sps:$4 sm:$0xff]   ;;  %v4071_v4 = vld [vmem:[#allocation2 + $0x688] ss:$16 sps:$4 sm:$0xff]   ;;  %v4076_v5 = vld [vmem:[#allocation2 + $0x664] ss:$16 sps:$4 sm:$0xff]  }
  0xaa   :  { %v4079_v6 = vld [vmem:[#allocation2 + $0x66c] ss:$16 sps:$4 sm:$0xff]  }
  0xac   :  { %1222 = vmatpush1.bf16.msra.mxu0 %v3932_v12  ;;  %1271 = vmatpush1.bf16.msra.mxu1 %v3935_v13  ;;  %v4003_v12 = vld [vmem:[#allocation2 + $0x5e4] ss:$16 sps:$4 sm:$0xff]   ;;  %v4006_v13 = vld [vmem:[#allocation2 + $0x5ec] ss:$16 sps:$4 sm:$0xff]  }
  0xad   :  { %1223 = vmatprep.subr.bf16.mxu0 %v3940_v14  ;;  %1272 = vmatprep.subr.bf16.mxu1 %v3943_v15  ;;  %v4001_v14 = vld [vmem:[#allocation2 + $0x5e0] ss:$16 sps:$4 sm:$0xff]   ;;  %v1371_v15 = vsel %vm1354_vm3, %v1362_v10, %v1370_v11  ;;  %v4085_v10 = vld [vmem:[#allocation2 + $0x64c] ss:$16 sps:$4 sm:$0xff]  }
  0xb0   :  { %1224 = vmatpush1.bf16.msra.mxu0 %v3938_v20  ;;  %1273 = vmatpush1.bf16.msra.mxu1 %v3941_v21  ;;  %v4012_v20 = vld [vmem:[#allocation2 + $0x5cc] ss:$16 sps:$4 sm:$0xff]   ;;  %v4007_v21 = vld [vmem:[#allocation2 + $0x5c0] ss:$16 sps:$4 sm:$0xff]  }
  0xb1   :  { %1225 = vmatprep.subr.bf16.mxu0 %v3946_v24  ;;  %1274 = vmatprep.subr.bf16.mxu1 %v3949_v25  ;;  %v4018_v24 = vld [vmem:[#allocation2 + $0x5ac] ss:$16 sps:$4 sm:$0xff]   ;;  %v4013_v25 = vld [vmem:[#allocation2 + $0x5a0] ss:$16 sps:$4 sm:$0xff]  }
  0xb4   :  { %1226 = vmatpush1.bf16.msra.mxu0 %v3944_v26  ;;  %1275 = vmatpush1.bf16.msra.mxu1 %v3947_v27  ;;  %v4016_v26 = vld [vmem:[#allocation2 + $0x5a8] ss:$16 sps:$4 sm:$0xff]   ;;  %v4021_v27 = vld [vmem:[#allocation2 + $0x584] ss:$16 sps:$4 sm:$0xff]  }
  0xb5   :  { %1534 = vmatprep.subr.bf16.mxu0 %v3954_v28  ;;  %1583 = vmatprep.subr.bf16.mxu1 %v3957_v32  ;;  %v4022_v28 = vld [vmem:[#allocation2 + $0x588] ss:$16 sps:$4 sm:$0xff]   ;;  %v4027_v32 = vld [vmem:[#allocation2 + $0x564] ss:$16 sps:$4 sm:$0xff]  }
  0xb7   :  { %1244 = vmatmul.mubr.bf16.vlgmr.msra.gmra.mxu0 %v1048_v30  ;;  %1293 = vmatmul.mubr.bf16.vlgmr.msra.gmra.mxu1 %v1048_v30  ;;  %v4030_v30 = vld [vmem:[#allocation2 + $0x56c] ss:$16 sps:$4 sm:$0xff]  }
  0xb8   :  { %1535 = vmatpush1.bf16.msra.mxu0 %v3952_v33  ;;  %1584 = vmatpush1.bf16.msra.mxu1 %v3955_v34  ;;  %v4025_v33 = vld [vmem:[#allocation2 + $0x560] ss:$16 sps:$4 sm:$0xff]   ;;  %v4028_v34 = vld [vmem:[#allocation2 + $0x568] ss:$16 sps:$4 sm:$0xff]  }
  0xb9   :  { %1536 = vmatprep.subr.bf16.mxu0 %v3960_v35  ;;  %1585 = vmatprep.subr.bf16.mxu1 %v3963_v36  ;;  %v4033_v35 = vld [vmem:[#allocation2 + $0x544] ss:$16 sps:$4 sm:$0xff]   ;;  %v4036_v36 = vld [vmem:[#allocation2 + $0x54c] ss:$16 sps:$4 sm:$0xff]  }
  0xba   :  { %1251 = vmatprep.mubr.bf16.mxu0 %v4347_v0  ;;  %1300 = vmatprep.mubr.bf16.mxu1 %v4347_v0 }
  0xbc   :  { %1537 = vmatpush1.bf16.msra.mxu0 %v3958_v37  ;;  %1586 = vmatpush1.bf16.msra.mxu1 %v3961_v38  ;;  %v4031_v37 = vld [vmem:[#allocation2 + $0x540] ss:$16 sps:$4 sm:$0xff]   ;;  %v4034_v38 = vld [vmem:[#allocation2 + $0x548] ss:$16 sps:$4 sm:$0xff]  }
  0xbd   :  { %1538 = vmatprep.subr.bf16.mxu0 %v3966_v39  ;;  %1587 = vmatprep.subr.bf16.mxu1 %v3969_v40  ;;  %v4039_v39 = vld [vmem:[#allocation2 + $0x524] ss:$16 sps:$4 sm:$0xff]   ;;  %v4042_v40 = vld [vmem:[#allocation2 + $0x52c] ss:$16 sps:$4 sm:$0xff]  }
  0xbf   :  { %1252 = vmatmul.mubr.bf16.gmra.mxu0 %v1047_v29  ;;  %1301 = vmatmul.mubr.bf16.gmra.mxu1 %v1047_v29  ;;  %v4019_v29 = vld [vmem:[#allocation2 + $0x580] ss:$16 sps:$4 sm:$0xff]  }
  0xc0   :  { %1539 = vmatpush1.bf16.msra.mxu0 %v3964_v41  ;;  %1588 = vmatpush1.bf16.msra.mxu1 %v3967_v42  ;;  %v1640_v41 = vld [vmem:[%s4602_s0] sm:$0x8] }
  0xc1   :  { %1540 = vmatprep.subr.bf16.mxu0 %v3972_v43  ;;  %1589 = vmatprep.subr.bf16.mxu1 %v3975_v44  ;;  %v4037_v42 = vld [vmem:[#allocation2 + $0x520] ss:$16 sps:$4 sm:$0xff]   ;;  %v4040_v43 = vld [vmem:[#allocation2 + $0x528] ss:$16 sps:$4 sm:$0xff]   ;;  %v4045_v44 = vld [vmem:[#allocation2 + $0x504] ss:$16 sps:$4 sm:$0xff]  }
  0xc2   :  { %1566 = vmatprep.mubr.bf16.mxu0 %v4347_v0  ;;  %1615 = vmatprep.mubr.bf16.mxu1 %v4347_v0 }
  0xc4   :  { %1541 = vmatpush1.bf16.msra.mxu0 %v3970_v45  ;;  %1590 = vmatpush1.bf16.msra.mxu1 %v3973_v46  ;;  %v3534_v45 = vcombine.low %v1640_v41, %v4448_v17  ;;  %v4048_v46 = vld [vmem:[#allocation2 + $0x50c] ss:$16 sps:$4 sm:$0xff]  }
  0xc5   :  { %1542 = vmatprep.subr.bf16.mxu0 %v3978_v47  ;;  %1591 = vmatprep.subr.bf16.mxu1 %v3981_v48  ;;  %v4043_v47 = vld [vmem:[#allocation2 + $0x500] ss:$16 sps:$4 sm:$0xff]   ;;  %v1679_v48 = vrot.slane %v4471_v53, 3 }
  0xc6   :  { %v4056_v53 = vld [vmem:[#allocation2 + $0x6c0] ss:$16 sps:$4 sm:$0xff]  }
  0xc8   :  { %1543 = vmatpush1.bf16.msra.mxu0 %v3976_v50  ;;  %1592 = vmatpush1.bf16.msra.mxu1 %v3979_v51  ;;  %v1678_v50 = vrot.slane %v3534_v45, 3  ;;  %v4052_v51 = vld [vmem:[#allocation2 + $0x6e4] ss:$16 sps:$4 sm:$0xff]  }
  0xc9   :  { %1544 = vmatprep.subr.bf16.mxu0 %v3984_v52  ;;  %1593 = vmatprep.subr.bf16.mxu1 %v3987_v54  ;;  %v4055_v52 = vld [vmem:[#allocation2 + $0x6ec] ss:$16 sps:$4 sm:$0xff]   ;;  %v4050_v54 = vld [vmem:[#allocation2 + $0x6e0] ss:$16 sps:$4 sm:$0xff]  }
  0xcc   :  { %1545 = vmatpush1.bf16.msra.mxu0 %v3982_v55  ;;  %1594 = vmatpush1.bf16.msra.mxu1 %v3985_v56  ;;  %v1680_v55 = vsel %vm1677_vm4, %v1678_v50, %v1679_v48  ;;  %v4053_v56 = vld [vmem:[#allocation2 + $0x6e8] ss:$16 sps:$4 sm:$0xff]   ;;  %v4129_v50 = vld [vmem:[#allocation2 + $0x76c] ss:$16 sps:$4 sm:$0xff]  }
  0xcd   :  { %1546 = vmatprep.subr.bf16.mxu0 %v3990_v58  ;;  %1595 = vmatprep.subr.bf16.mxu1 %v3993_v62  ;;  %v4061_v58 = vld [vmem:[#allocation2 + $0x6cc] ss:$16 sps:$4 sm:$0xff]   ;;  %v4062_v62 = vld [vmem:[#allocation2 + $0x6a0] ss:$16 sps:$4 sm:$0xff]  }
  0xd0   :  { %1547 = vmatpush1.bf16.msra.mxu0 %v3988_v63  ;;  %1596 = vmatpush1.bf16.msra.mxu1 %v3991_v1  ;;  %v4065_v63 = vld [vmem:[#allocation2 + $0x6a8] ss:$16 sps:$4 sm:$0xff]   ;;  %v4070_v1 = vld [vmem:[#allocation2 + $0x684] ss:$16 sps:$4 sm:$0xff]  }
  0xd1   :  { %1548 = vmatprep.subr.bf16.mxu0 %v3996_v3  ;;  %1597 = vmatprep.subr.bf16.mxu1 %v3999_v7  ;;  %v4068_v3 = vld [vmem:[#allocation2 + $0x680] ss:$16 sps:$4 sm:$0xff]  }
  0xd2   :  { %v4074_v7 = vld [vmem:[#allocation2 + $0x660] ss:$16 sps:$4 sm:$0xff]  }
  0xd4   :  { %1549 = vmatpush1.bf16.msra.mxu0 %v3994_v8  ;;  %1598 = vmatpush1.bf16.msra.mxu1 %v3997_v9  ;;  %v4077_v8 = vld [vmem:[#allocation2 + $0x668] ss:$16 sps:$4 sm:$0xff]   ;;  %v4082_v9 = vld [vmem:[#allocation2 + $0x644] ss:$16 sps:$4 sm:$0xff]  }
  0xd5   :  { %1843 = vmatprep.subr.bf16.mxu0 %v4003_v12  ;;  %1892 = vmatprep.subr.bf16.mxu1 %v4006_v13  ;;  %v4083_v12 = vld [vmem:[#allocation2 + $0x648] ss:$16 sps:$4 sm:$0xff]   ;;  %v4088_v13 = vld [vmem:[#allocation2 + $0x624] ss:$16 sps:$4 sm:$0xff]  }
  0xd7   :  { %1567 = vmatmul.mubr.bf16.vlgmr.msra.gmra.mxu0 %v1371_v15  ;;  %1616 = vmatmul.mubr.bf16.vlgmr.msra.gmra.mxu1 %v1371_v15  ;;  %v4086_v15 = vld [vmem:[#allocation2 + $0x620] ss:$16 sps:$4 sm:$0xff]  }
  0xd8   :  { %1844 = vmatpush1.bf16.msra.mxu0 %v4001_v14  ;;  %1893 = vmatpush1.bf16.msra.mxu1 %v4004_v16  ;;  %v4091_v14 = vld [vmem:[#allocation2 + $0x62c] ss:$16 sps:$4 sm:$0xff]   ;;  %v4089_v16 = vld [vmem:[#allocation2 + $0x628] ss:$16 sps:$4 sm:$0xff]  }
  0xd9   :  { %1845 = vmatprep.subr.bf16.mxu0 %v4009_v19  ;;  %1894 = vmatprep.subr.bf16.mxu1 %v4012_v20  ;;  %v4094_v19 = vld [vmem:[#allocation2 + $0x604] ss:$16 sps:$4 sm:$0xff]   ;;  %v4097_v20 = vld [vmem:[#allocation2 + $0x60c] ss:$16 sps:$4 sm:$0xff]  }
  0xda   :  { %1574 = vmatprep.mubr.bf16.mxu0 %v4347_v0  ;;  %1623 = vmatprep.mubr.bf16.mxu1 %v4347_v0 }
  0xdc   :  { %1846 = vmatpush1.bf16.msra.mxu0 %v4007_v21  ;;  %1895 = vmatpush1.bf16.msra.mxu1 %v4010_v22  ;;  %v4092_v21 = vld [vmem:[#allocation2 + $0x600] ss:$16 sps:$4 sm:$0xff]   ;;  %v4095_v22 = vld [vmem:[#allocation2 + $0x608] ss:$16 sps:$4 sm:$0xff]  }
  0xdd   :  { %1847 = vmatprep.subr.bf16.mxu0 %v4015_v23  ;;  %1896 = vmatprep.subr.bf16.mxu1 %v4018_v24  ;;  %v4101_v23 = vld [vmem:[#allocation2 + $0x7e4] ss:$16 sps:$4 sm:$0xff]   ;;  %v4104_v24 = vld [vmem:[#allocation2 + $0x7ec] ss:$16 sps:$4 sm:$0xff]  }
  0xdf   :  { %1575 = vmatmul.mubr.bf16.gmra.mxu0 %v1370_v11  ;;  %1624 = vmatmul.mubr.bf16.gmra.mxu1 %v1370_v11  ;;  %v4080_v11 = vld [vmem:[#allocation2 + $0x640] ss:$16 sps:$4 sm:$0xff]  }
  0xe0   :  { %1848 = vmatpush1.bf16.msra.mxu0 %v4013_v25  ;;  %1897 = vmatpush1.bf16.msra.mxu1 %v4016_v26  ;;  %v4492_v25 = vcombine.low %v4448_v17, %v4453_v18  ;;  %v4099_v26 = vld [vmem:[#allocation2 + $0x7e0] ss:$16 sps:$4 sm:$0xff]   ;;  %v4108_v18 = vld [vmem:[#allocation2 + $0x7c8] ss:$16 sps:$4 sm:$0xff]  }
  0xe1   :  { %1849 = vmatprep.subr.bf16.mxu0 %v4021_v27  ;;  %1898 = vmatprep.subr.bf16.mxu1 %v4024_v31  ;;  %v4102_v27 = vld [vmem:[#allocation2 + $0x7e8] ss:$16 sps:$4 sm:$0xff]   ;;  %v4107_v31 = vld [vmem:[#allocation2 + $0x7c4] ss:$16 sps:$4 sm:$0xff]   ;;  %v4105_v17 = vld [vmem:[#allocation2 + $0x7c0] ss:$16 sps:$4 sm:$0xff]  }
  0xe2   :  { %1875 = vmatprep.mubr.bf16.mxu0 %v4347_v0  ;;  %1924 = vmatprep.mubr.bf16.mxu1 %v4347_v0 }
  0xe4   :  { %1850 = vmatpush1.bf16.msra.mxu0 %v4019_v29  ;;  %1899 = vmatpush1.bf16.msra.mxu1 %v4022_v28  ;;  %v4110_v29 = vld [vmem:[#allocation2 + $0x7cc] ss:$16 sps:$4 sm:$0xff]  }
  0xe5   :  { %1851 = vmatprep.subr.bf16.mxu0 %v4027_v32  ;;  %1900 = vmatprep.subr.bf16.mxu1 %v4030_v30 }
  0xe8   :  { %1852 = vmatpush1.bf16.msra.mxu0 %v4025_v33  ;;  %1901 = vmatpush1.bf16.msra.mxu1 %v4028_v34  ;;  %v4114_v34 = vld [vmem:[#allocation2 + $0x7a4] ss:$16 sps:$4 sm:$0xff]  }
  0xe9   :  { %1853 = vmatprep.subr.bf16.mxu0 %v4033_v35  ;;  %1902 = vmatprep.subr.bf16.mxu1 %v4036_v36  ;;  %v4117_v35 = vld [vmem:[#allocation2 + $0x7ac] ss:$16 sps:$4 sm:$0xff]  }
  0xec   :  { %1854 = vmatpush1.bf16.msra.mxu0 %v4031_v37  ;;  %1903 = vmatpush1.bf16.msra.mxu1 %v4034_v38  ;;  %v4111_v38 = vld [vmem:[%s4602_s0 + $0xc] ss:$0 sps:$4 sm:$0x77]  }
  0xed   :  { %1855 = vmatprep.subr.bf16.mxu0 %v4039_v39  ;;  %1904 = vmatprep.subr.bf16.mxu1 %v4042_v40  ;;  %v4112_v39 = vld [vmem:[#allocation2 + $0x7a0] ss:$16 sps:$4 sm:$0xff]   ;;  %v4115_v40 = vld [vmem:[#allocation2 + $0x7a8] ss:$16 sps:$4 sm:$0xff]  }
  0xf0   :  { %1856 = vmatpush1.bf16.msra.mxu0 %v4037_v42  ;;  %1905 = vmatpush1.bf16.msra.mxu1 %v4040_v43  ;;  %v4120_v43 = vld [vmem:[#allocation2 + $0x784] ss:$16 sps:$4 sm:$0xff]  }
  0xf1   :  { %1857 = vmatprep.subr.bf16.mxu0 %v4045_v44  ;;  %1906 = vmatprep.subr.bf16.mxu1 %v4048_v46  ;;  %v4123_v44 = vld [vmem:[#allocation2 + $0x78c] ss:$16 sps:$4 sm:$0xff]  }
  0xf4   :  { %1858 = vmatpush1.bf16.msra.mxu0 %v4043_v47  ;;  %1907 = vmatpush1.bf16.msra.mxu1 %v4046_v49  ;;  %v4118_v47 = vld [vmem:[#allocation2 + $0x780] ss:$16 sps:$4 sm:$0xff]   ;;  %v4126_v49 = vld [vmem:[#allocation2 + $0x764] ss:$16 sps:$4 sm:$0xff]  }
  0xf5   :  { %2149 = vmatprep.subr.bf16.mxu0 %v4052_v51  ;;  %2198 = vmatprep.subr.bf16.mxu1 %v4055_v52 }
  0xf7   :  { %1876 = vmatmul.mubr.bf16.vlgmr.msra.gmra.mxu0 %v1680_v55  ;;  %1925 = vmatmul.mubr.bf16.vlgmr.msra.gmra.mxu1 %v1680_v55 }
  0xf8   :  { %2150 = vmatpush1.bf16.msra.mxu0 %v4050_v54  ;;  %2199 = vmatpush1.bf16.msra.mxu1 %v4053_v56  ;;  %v4124_v56 = vld [vmem:[#allocation2 + $0x760] ss:$16 sps:$4 sm:$0xff]  }
  0xf9   :  { %2151 = vmatprep.subr.bf16.mxu0 %v4058_v57  ;;  %2200 = vmatprep.subr.bf16.mxu1 %v4061_v58  ;;  %v4127_v57 = vld [vmem:[#allocation2 + $0x768] ss:$16 sps:$4 sm:$0xff]   ;;  %v4132_v58 = vld [vmem:[#allocation2 + $0x744] ss:$16 sps:$4 sm:$0xff]  }
  0xfa   :  { %1883 = vmatprep.mubr.bf16.mxu0 %v4347_v0  ;;  %1932 = vmatprep.mubr.bf16.mxu1 %v4347_v0 }
  0xfc   :  { %2152 = vmatpush1.bf16.msra.mxu0 %v4056_v53  ;;  %2201 = vmatpush1.bf16.msra.mxu1 %v4059_v59  ;;  %v4135_v53 = vld [vmem:[#allocation2 + $0x74c] ss:$16 sps:$4 sm:$0xff]  }
  0xfd   :  { %2153 = vmatprep.subr.bf16.mxu0 %v4064_v60  ;;  %2202 = vmatprep.subr.bf16.mxu1 %v4067_v61  ;;  %v2295_v61 = vshll.u32 %v4492_v25, 16 }
  0xff   :  { %1884 = vmatmul.mubr.bf16.gmra.mxu0 %v1679_v48  ;;  %1933 = vmatmul.mubr.bf16.gmra.mxu1 %v1679_v48  ;;  %v4121_v48 = vld [vmem:[#allocation2 + $0x788] ss:$16 sps:$4 sm:$0xff]  }
 0x100   :  { %2154 = vmatpush1.bf16.msra.mxu0 %v4062_v62  ;;  %2203 = vmatpush1.bf16.msra.mxu1 %v4065_v63  ;;  %v4130_v62 = vld [vmem:[#allocation2 + $0x740] ss:$16 sps:$4 sm:$0xff]   ;;  %v4133_v63 = vld [vmem:[#allocation2 + $0x748] ss:$16 sps:$4 sm:$0xff]  }
 0x101   :  { %2155 = vmatprep.subr.bf16.mxu0 %v4070_v1  ;;  %2204 = vmatprep.subr.bf16.mxu1 %v4073_v2  ;;  %v4523_v1 = vld [vmem:[%s4602_s0 + $0xc] ss:$0 sps:$4 sm:$0xff]   ;;  %v4138_v2 = vld [vmem:[#allocation2 + $0x724] ss:$16 sps:$4 sm:$0xff]  }
 0x102   :  { %2181 = vmatprep.mubr.bf16.mxu0 %v4347_v0  ;;  %2230 = vmatprep.mubr.bf16.mxu1 %v4347_v0 }
 0x104   :  { %2156 = vmatpush1.bf16.msra.mxu0 %v4068_v3  ;;  %2205 = vmatpush1.bf16.msra.mxu1 %v4071_v4  ;;  %v4141_v3 = vld [vmem:[#allocation2 + $0x72c] ss:$16 sps:$4 sm:$0xff]   ;;  %v2293_v4 = vshrl.u32 %v4492_v25, 16 }
 0x105   :  { %2157 = vmatprep.subr.bf16.mxu0 %v4076_v5  ;;  %2206 = vmatprep.subr.bf16.mxu1 %v4079_v6  ;;  %v4136_v5 = vld [vmem:[#allocation2 + $0x720] ss:$16 sps:$4 sm:$0xff]   ;;  %v4139_v6 = vld [vmem:[#allocation2 + $0x728] ss:$16 sps:$4 sm:$0xff]  }
 0x108   :  { %2158 = vmatpush1.bf16.msra.mxu0 %v4074_v7  ;;  %2207 = vmatpush1.bf16.msra.mxu1 %v4077_v8  ;;  %v2297_v7 = vrot.slane %v2295_v61, 1  ;;  %v2300_v8 = vshll.u32 %v4523_v1, 16  ;;  %v4176_v61 = vld [vmem:[#allocation2 + $0x868] ss:$16 sps:$4 sm:$0xff]  }
 0x109   :  { %2159 = vmatprep.subr.bf16.mxu0 %v4082_v9  ;;  %2208 = vmatprep.subr.bf16.mxu1 %v4085_v10  ;;  %v4144_v9 = vld [vmem:[#allocation2 + $0x704] ss:$16 sps:$4 sm:$0xff]   ;;  %v4147_v10 = vld [vmem:[#allocation2 + $0x70c] ss:$16 sps:$4 sm:$0xff]  }
 0x10c   :  { %2160 = vmatpush1.bf16.msra.mxu0 %v4080_v11  ;;  %2209 = vmatpush1.bf16.msra.mxu1 %v4083_v12  ;;  %v4142_v11 = vld [vmem:[#allocation2 + $0x700] ss:$16 sps:$4 sm:$0xff]   ;;  %v4145_v12 = vld [vmem:[#allocation2 + $0x708] ss:$16 sps:$4 sm:$0xff]  }
 0x10d   :  { %2161 = vmatprep.subr.bf16.mxu0 %v4088_v13  ;;  %2210 = vmatprep.subr.bf16.mxu1 %v4091_v14  ;;  %v2298_v13 = vor.u32 %v2297_v7, %v2293_v4  ;;  %v2302_v14 = vrot.slane %v2300_v8, 1  ;;  %v4187_v4 = vld [vmem:[#allocation2 + $0x824] ss:$16 sps:$4 sm:$0xff]   ;;  %v4185_v7 = vld [vmem:[#allocation2 + $0x820] ss:$16 sps:$4 sm:$0xff]  }
 0x10e   :  { %v4188_v8 = vld [vmem:[#allocation2 + $0x828] ss:$16 sps:$4 sm:$0xff]  }
 0x110   :  { %2162 = vmatpush1.bf16.msra.mxu0 %v4086_v15  ;;  %2211 = vmatpush1.bf16.msra.mxu1 %v4089_v16  ;;  %v4151_v15 = vld [vmem:[#allocation2 + $0x8e4] ss:$16 sps:$4 sm:$0xff]   ;;  %v4154_v16 = vld [vmem:[#allocation2 + $0x8ec] ss:$16 sps:$4 sm:$0xff]  }
 0x111   :  { %2163 = vmatprep.subr.bf16.mxu0 %v4094_v19  ;;  %2212 = vmatprep.subr.bf16.mxu1 %v4097_v20  ;;  %v2303_v19 = vsel %vm150_vm0, %v2298_v13, %v2302_v14  ;;  %v4149_v20 = vld [vmem:[#allocation2 + $0x8e0] ss:$16 sps:$4 sm:$0xff]  }
 0x112   :  { %v4191_v13 = vld [vmem:[#allocation2 + $0x800] ss:$16 sps:$4 sm:$0xff]  }
 0x114   :  { %2164 = vmatpush1.bf16.msra.mxu0 %v4092_v21  ;;  %2213 = vmatpush1.bf16.msra.mxu1 %v4095_v22  ;;  %v4152_v21 = vld [vmem:[#allocation2 + $0x8e8] ss:$16 sps:$4 sm:$0xff]   ;;  %v4157_v22 = vld [vmem:[#allocation2 + $0x8c4] ss:$16 sps:$4 sm:$0xff]  }
 0x115   :  { %2469 = vmatprep.subr.bf16.mxu0 %v4101_v23  ;;  %2518 = vmatprep.subr.bf16.mxu1 %v4104_v24  ;;  %v4160_v23 = vld [vmem:[#allocation2 + $0x8cc] ss:$16 sps:$4 sm:$0xff]  }
 0x117   :  { %v4494_v28 = vpop.f32.mrf.mxu0  ;;  %v4496_v32 = vpop.f32.mrf.mxu1  ;;  %2182 = vmatmul.mubr.bf16.vlgmr.msra.gmra.mxu0 %v4492_v25  ;;  %2231 = vmatmul.mubr.bf16.vlgmr.msra.gmra.mxu1 %v4492_v25 }
 0x118   :  { %2470 = vmatpush1.bf16.msra.mxu0 %v4099_v26  ;;  %2519 = vmatpush1.bf16.msra.mxu1 %v4102_v27  ;;  %v2304_v26 = vshrl.u32 %v4523_v1, 16 }
 0x119   :  { %v4500_v30 = vpop.f32.mrf.mxu0  ;;  %v4502_v33 = vpop.f32.mrf.mxu1  ;;  %2471 = vmatprep.subr.bf16.mxu0 %v4107_v31  ;;  %2520 = vmatprep.subr.bf16.mxu1 %v4110_v29  ;;  %v4155_v29 = vld [vmem:[#allocation2 + $0x8c0] ss:$16 sps:$4 sm:$0xff]  }
 0x11a   :  { %2189 = vmatprep.mubr.bf16.mxu0 %v4347_v0  ;;  %2238 = vmatprep.mubr.bf16.mxu1 %v4347_v0 }
 0x11b   :  { %v366_v36 = vpop.f32.mrf.mxu0  ;;  %v415_v37 = vpop.f32.mrf.mxu1 }
 0x11c   :  { %2472 = vmatpush1.bf16.msra.mxu0 %v4105_v17  ;;  %2521 = vmatpush1.bf16.msra.mxu1 %v4108_v18  ;;  %v4158_v17 = vld [vmem:[#allocation2 + $0x8c8] ss:$16 sps:$4 sm:$0xff]   ;;  %v4166_v36 = vld [vmem:[#allocation2 + $0x8ac] ss:$16 sps:$4 sm:$0xff]  }
 0x11d   :  { %v367_v41 = vpop.f32.mrf.mxu0  ;;  %v416_v42 = vpop.f32.mrf.mxu1  ;;  %2473 = vmatprep.subr.bf16.mxu0 %v4114_v34  ;;  %2522 = vmatprep.subr.bf16.mxu1 %v4117_v35  ;;  %v4163_v35 = vld [vmem:[#allocation2 + $0x8a4] ss:$16 sps:$4 sm:$0xff]  }
 0x11e   :  { %v4164_v41 = vld [vmem:[#allocation2 + $0x8a8] ss:$16 sps:$4 sm:$0xff]  }
 0x11f   :  { %2190 = vmatmul.mubr.bf16.gmra.mxu0 %v4111_v38  ;;  %2239 = vmatmul.mubr.bf16.gmra.mxu1 %v4111_v38  ;;  %v4509_v45 = vpop.f32.mrf.mxu0  ;;  %v4511_v46 = vpop.f32.mrf.mxu1 }
 0x120   :  { %2474 = vmatpush1.bf16.msra.mxu0 %v4112_v39  ;;  %2523 = vmatpush1.bf16.msra.mxu1 %v4115_v40  ;;  %v2306_v39 = vor.u32 %v2304_v26, %v2302_v14  ;;  %v4161_v40 = vld [vmem:[#allocation2 + $0x8a0] ss:$16 sps:$4 sm:$0xff]   ;;  %v4194_v14 = vld [vmem:[#allocation2 + $0x808] ss:$16 sps:$4 sm:$0xff]  }
 0x121   :  { %2475 = vmatprep.subr.bf16.mxu0 %v4120_v43  ;;  %2524 = vmatprep.subr.bf16.mxu1 %v4123_v44  ;;  %v4513_v51 = vpop.f32.mrf.mxu0  ;;  %v4515_v52 = vpop.f32.mrf.mxu1  ;;  %v4172_v44 = vld [vmem:[#allocation2 + $0x88c] ss:$16 sps:$4 sm:$0xff]  }
 0x122   :  { %2501 = vmatprep.mubr.bf16.mxu0 %v4347_v0  ;;  %2550 = vmatprep.mubr.bf16.mxu1 %v4347_v0 }
 0x123   :  { %v374_v54 = vpop.f32.mrf.mxu0  ;;  %v423_v55 = vpop.f32.mrf.mxu1 }
 0x124   :  { %2476 = vmatpush1.bf16.msra.mxu0 %v4118_v47  ;;  %2525 = vmatpush1.bf16.msra.mxu1 %v4121_v48  ;;  %v4170_v54 = vld [vmem:[#allocation2 + $0x888] ss:$16 sps:$4 sm:$0xff]  }
 0x125   :  { %2477 = vmatprep.subr.bf16.mxu0 %v4126_v49  ;;  %2526 = vmatprep.subr.bf16.mxu1 %v4129_v50  ;;  %v375_v59 = vpop.f32.mrf.mxu0  ;;  %v424_v60 = vpop.f32.mrf.mxu1  ;;  %v4167_v50 = vld [vmem:[#allocation2 + $0x880] ss:$16 sps:$4 sm:$0xff]  }
 0x126   :  { %v4173_v60 = vld [vmem:[#allocation2 + $0x860] ss:$16 sps:$4 sm:$0xff]  }
 0x128   :  { %2478 = vmatpush1.bf16.msra.mxu0 %v4124_v56  ;;  %2527 = vmatpush1.bf16.msra.mxu1 %v4127_v57  ;;  %v4175_v57 = vld [vmem:[#allocation2 + $0x864] ss:$16 sps:$4 sm:$0xff]  }
 0x129   :  { %2479 = vmatprep.subr.bf16.mxu0 %v4132_v58  ;;  %2528 = vmatprep.subr.bf16.mxu1 %v4135_v53  ;;  %v4178_v58 = vld [vmem:[#allocation2 + $0x86c] ss:$16 sps:$4 sm:$0xff]  }
 0x12c   :  { %2480 = vmatpush1.bf16.msra.mxu0 %v4130_v62  ;;  %2529 = vmatpush1.bf16.msra.mxu1 %v4133_v63  ;;  %v4181_v62 = vld [vmem:[#allocation2 + $0x844] ss:$16 sps:$4 sm:$0xff]   ;;  %v4184_v63 = vld [vmem:[#allocation2 + $0x84c] ss:$16 sps:$4 sm:$0xff]  }
 0x12d   :  { %2481 = vmatprep.subr.bf16.mxu0 %v4138_v2  ;;  %2530 = vmatprep.subr.bf16.mxu1 %v4141_v3  ;;  %v4182_v3 = vld [vmem:[#allocation2 + $0x848] ss:$16 sps:$4 sm:$0xff]  }
 0x130   :  { %2482 = vmatpush1.bf16.msra.mxu0 %v4136_v5  ;;  %2531 = vmatpush1.bf16.msra.mxu1 %v4139_v6  ;;  %v4190_v5 = vld [vmem:[#allocation2 + $0x82c] ss:$16 sps:$4 sm:$0xff]   ;;  %v2575_v6 = vld [vmem:[%s4602_s0 + $0x4] sm:$0xe] }
 0x131   :  { %2483 = vmatprep.subr.bf16.mxu0 %v4144_v9  ;;  %2532 = vmatprep.subr.bf16.mxu1 %v4147_v10  ;;  %v4230_v9 = vld [vmem:[%s4602_s0 + $0x8] sm:$0xf]  ;;  %s4348_s0 = smov [#allocation10]  }
 0x132   :  { %v3634_v10 = vcombine.low %v2575_v6, %v4230_v9  ;;  %s3356_s4 = sshll.u32 %s4348_s0, 4  ;;  %s3357_s4 = int_to_ptr.vmem [resolvable:$true] %s3356_s4 }
 0x133   :  { %s4311_s16 = scalar_lea.vmem %s3357_s4, 32  ;;  %p4316_p7 = scmp.lt.s32.totalorder %s3357_s4, %s3357_s4 }
 0x134   :  { %2484 = vmatpush1.bf16.msra.mxu0 %v4142_v11  ;;  %2533 = vmatpush1.bf16.msra.mxu1 %v4145_v12  ;;  %v4193_v11 = vld [vmem:[#allocation2 + $0x804] ss:$16 sps:$4 sm:$0xff]   ;;  %v4196_v12 = vld [vmem:[#allocation2 + $0x80c] ss:$16 sps:$4 sm:$0xff]   ;;  %p4312_p6 = scmp.ne.s32.totalorder %s3357_s4, %s4311_s16  ;;  %p4317_p8 = scmp.lt.s32.totalorder %s4311_s16, %s4311_s16 }
 0x135   :  { %2777 = vmatprep.subr.bf16.mxu0 %v4151_v15  ;;  %2826 = vmatprep.subr.bf16.mxu1 %v4154_v16  ;;  %v2612_v15 = vrot.slane %v3634_v10, 1  ;;  %v2613_v16 = vrot.slane %v4523_v1, 1  ;;  %v4202_v10 = vld [vmem:[#allocation7 + $0x70] sm:$0xff]  }
 0x136   :  { %p4318_p9 = por %p4317_p8, %p4316_p7 }
 0x137   :  { %v625_v24 = vpop.f32.mrf.mxu0  ;;  %v674_v25 = vpop.f32.mrf.mxu1  ;;  %2502 = vmatmul.mubr.bf16.vlgmr.msra.gmra.mxu0 %v2303_v19  ;;  %2551 = vmatmul.mubr.bf16.vlgmr.msra.gmra.mxu1 %v2303_v19  ;;  %v2614_v19 = vsel %vm726_vm1, %v2612_v15, %v2613_v16  ;;  %v4205_v15 = vld [vmem:[#allocation7 + $0xb0] sm:$0xff]  }
 0x138   :  { %v4530_v27 = vadd.f32 %v625_v24, %v4494_v28  ;;  %v4533_v31 = vadd.f32 %v674_v25, %v4496_v32  ;;  %2778 = vmatpush1.bf16.msra.mxu0 %v4149_v20  ;;  %2827 = vmatpush1.bf16.msra.mxu1 %v4152_v21  ;;  %p4319_p10 = pnand %p4318_p9, %p4312_p6 }
 0x139   :  { %v627_v18 = vpop.f32.mrf.mxu0  ;;  %v676_v34 = vpop.f32.mrf.mxu1  ;;  %2779 = vmatprep.subr.bf16.mxu0 %v4157_v22  ;;  %2828 = vmatprep.subr.bf16.mxu1 %v4160_v23 }
 0x13a   :  { %v4536_v37 = vadd.f32 %v627_v18, %v4500_v30  ;;  %v4539_v38 = vadd.f32 %v676_v34, %v4502_v33  ;;  %2509 = vmatprep.mubr.bf16.mxu0 %v4347_v0  ;;  %2558 = vmatprep.mubr.bf16.mxu1 %v4347_v0  ;;  %v4169_v30 = vld [vmem:[#allocation2 + $0x884] ss:$16 sps:$4 sm:$0xff]  }
 0x13b   :  { %v629_v28 = vpop.f32.mrf.mxu0  ;;  %v678_v32 = vpop.f32.mrf.mxu1 }
 0x13c   :  { %2780 = vmatpush1.bf16.msra.mxu0 %v4155_v29  ;;  %2829 = vmatpush1.bf16.msra.mxu1 %v4158_v17 }
 0x13d   :  { %v630_v42 = vpop.f32.mrf.mxu0  ;;  %v679_v43 = vpop.f32.mrf.mxu1  ;;  %2781 = vmatprep.subr.bf16.mxu0 %v4163_v35  ;;  %2830 = vmatprep.subr.bf16.mxu1 %v4166_v36 }
 0x13f   :  { %v633_v47 = vpop.f32.mrf.mxu0  ;;  %v682_v33 = vpop.f32.mrf.mxu1  ;;  %2510 = vmatmul.mubr.bf16.gmra.mxu0 %v2306_v39  ;;  %2559 = vmatmul.mubr.bf16.gmra.mxu1 %v2306_v39 }
 0x140   :  { %v4544_v48 = vadd.f32 %v633_v47, %v4509_v45  ;;  %v4547_v49 = vadd.f32 %v682_v33, %v4511_v46  ;;  %2782 = vmatpush1.bf16.msra.mxu0 %v4161_v40  ;;  %2831 = vmatpush1.bf16.msra.mxu1 %v4164_v41 }
 0x141   :  { %v635_v55 = vpop.f32.mrf.mxu0  ;;  %v684_v56 = vpop.f32.mrf.mxu1  ;;  %2783 = vmatprep.subr.bf16.mxu0 %v4169_v30  ;;  %2832 = vmatprep.subr.bf16.mxu1 %v4172_v44 }
 0x142   :  { %v4550_v53 = vadd.f32 %v635_v55, %v4513_v51  ;;  %v4553_v59 = vadd.f32 %v684_v56, %v4515_v52  ;;  %2809 = vmatprep.mubr.bf16.mxu0 %v4347_v0  ;;  %2858 = vmatprep.mubr.bf16.mxu1 %v4347_v0  ;;  %v4179_v52 = vld [vmem:[#allocation2 + $0x840] ss:$16 sps:$4 sm:$0xff]  }
 0x143   :  { %v637_v45 = vpop.f32.mrf.mxu0  ;;  %v686_v46 = vpop.f32.mrf.mxu1 }
 0x144   :  { %2784 = vmatpush1.bf16.msra.mxu0 %v4167_v50  ;;  %2833 = vmatpush1.bf16.msra.mxu1 %v4170_v54 }
 0x145   :  { %2785 = vmatprep.subr.bf16.mxu0 %v4175_v57  ;;  %2834 = vmatprep.subr.bf16.mxu1 %v4178_v58  ;;  %v638_v2 = vpop.f32.mrf.mxu0  ;;  %v687_v51 = vpop.f32.mrf.mxu1 }
 0x148   :  { %2786 = vmatpush1.bf16.msra.mxu0 %v4173_v60  ;;  %2835 = vmatpush1.bf16.msra.mxu1 %v4176_v61 }
 0x149   :  { %2787 = vmatprep.subr.bf16.mxu0 %v4181_v62  ;;  %2836 = vmatprep.subr.bf16.mxu1 %v4184_v63 }
 0x14c   :  { %2788 = vmatpush1.bf16.msra.mxu0 %v4179_v52  ;;  %2837 = vmatpush1.bf16.msra.mxu1 %v4182_v3  ;;  %v4198_v52 = vld [vmem:[#allocation7 + $0x78] sm:$0xff]  }
 0x14d   :  { %2789 = vmatprep.subr.bf16.mxu0 %v4187_v4  ;;  %2838 = vmatprep.subr.bf16.mxu1 %v4190_v5  ;;  %v4199_v3 = vld [vmem:[#allocation7 + $0xf8] sm:$0xff]  }
 0x14e   :  { %v4200_v4 = vld [vmem:[#allocation7 + $0x38] sm:$0xff]  }
 0x14f   :  { %v4201_v5 = vld [vmem:[#allocation7 + $0xb8] sm:$0xff]  }
 0x150   :  { %2790 = vmatpush1.bf16.msra.mxu0 %v4185_v7  ;;  %2839 = vmatpush1.bf16.msra.mxu1 %v4188_v8 }
 0x151   :  { %2791 = vmatprep.subr.bf16.mxu0 %v4193_v11  ;;  %2840 = vmatprep.subr.bf16.mxu1 %v4196_v12  ;;  %v4203_v11 = vld [vmem:[#allocation7 + $0xf0] sm:$0xff]  }
 0x154   :  { %2792 = vmatpush1.bf16.msra.mxu0 %v4191_v13  ;;  %2841 = vmatpush1.bf16.msra.mxu1 %v4194_v14  ;;  %v4204_v14 = vld [vmem:[#allocation7 + $0x30] sm:$0xff]  }
 0x155   :  { %3700 = vmatprep.subr.bf16.mxu0 %v4198_v52  ;;  %3722 = vmatprep.subr.bf16.mxu1 %v4199_v3 }
 0x157   :  { %v926_v20 = vpop.f32.mrf.mxu0  ;;  %v975_v21 = vpop.f32.mrf.mxu1  ;;  %2810 = vmatmul.mubr.bf16.vlgmr.msra.gmra.mxu0 %v2614_v19  ;;  %2859 = vmatmul.mubr.bf16.vlgmr.msra.gmra.mxu1 %v2614_v19 }
 0x158   :  { %v990_v22 = vadd.f32 %v926_v20, %v4530_v27  ;;  %v992_v23 = vadd.f32 %v975_v21, %v4533_v31  ;;  %2817 = vmatprep.mubr.bf16.mxu0 %v4347_v0  ;;  %2866 = vmatprep.mubr.bf16.mxu1 %v4347_v0 }
 0x159   :  { %v928_v24 = vpop.f32.mrf.mxu0  ;;  %v977_v1 = vpop.f32.mrf.mxu1  ;;  %3701 = vmatpush3.bf16.msra.mxu0 %v4200_v4  ;;  %3723 = vmatpush3.bf16.msra.mxu1 %v4201_v5 }
 0x15a   :  { %v991_v25 = vadd.f32 %v928_v24, %v4536_v37  ;;  %v993_v26 = vadd.f32 %v977_v1, %v4539_v38  ;;  %3702 = vmatprep.subr.bf16.mxu0 %v4202_v10  ;;  %3724 = vmatprep.subr.bf16.mxu1 %v4203_v11 }
 0x15b   :  { %v930_v29 = vpop.f32.mrf.mxu0  ;;  %v979_v17 = vpop.f32.mrf.mxu1 }
 0x15d   :  { %v931_v18 = vpop.f32.mrf.mxu0  ;;  %v980_v34 = vpop.f32.mrf.mxu1  ;;  %3703 = vmatpush3.bf16.msra.mxu0 %v4204_v14  ;;  %3725 = vmatpush3.bf16.msra.mxu1 %v4205_v15 }
 0x15f   :  { %v934_v35 = vpop.f32.mrf.mxu0  ;;  %v983_v36 = vpop.f32.mrf.mxu1  ;;  %2818 = vmatmul.mubr.bf16.gmra.mxu0 %v2613_v16  ;;  %2867 = vmatmul.mubr.bf16.gmra.mxu1 %v2613_v16 }
 0x160   :  { %v994_v27 = vadd.f32 %v934_v35, %v4544_v48  ;;  %v996_v31 = vadd.f32 %v983_v36, %v4547_v49 }
 0x161   :  { %v936_v28 = vpop.f32.mrf.mxu0  ;;  %v985_v0 = vpop.f32.mrf.mxu1 }
 0x162   :  { %v995_v32 = vadd.f32 %v936_v28, %v4550_v53  ;;  %v997_v37 = vadd.f32 %v985_v0, %v4553_v59 }
 0x163   :  { %v938_v39 = vpop.f32.mrf.mxu0  ;;  %v987_v38 = vpop.f32.mrf.mxu1 }
 0x165   :  { %v939_v40 = vpop.f32.mrf.mxu0  ;;  %v988_v41 = vpop.f32.mrf.mxu1 }
 0x177   :  { %v1245_v42 = vpop.f32.mrf.mxu0  ;;  %v1294_v43 = vpop.f32.mrf.mxu1 }
 0x178   :  { %v1309_v30 = vadd.f32 %v1245_v42, %v990_v22  ;;  %v1311_v44 = vadd.f32 %v1294_v43, %v992_v23  ;;  %v4206_v22 = vld [vmem:[#allocation7 + $0x68] sm:$0xff]   ;;  %v4214_v42 = vld [vmem:[#allocation7 + $0x58] sm:$0xff]  }
 0x179   :  { %v1247_v47 = vpop.f32.mrf.mxu0  ;;  %v1296_v33 = vpop.f32.mrf.mxu1  ;;  %v4207_v23 = vld [vmem:[#allocation7 + $0xe8] sm:$0xff]   ;;  %3704 = vmatprep.subr.bf16.mxu0 %v4206_v22  ;;  %v4215_v43 = vld [vmem:[#allocation7 + $0xd8] sm:$0xff]  }
 0x17a   :  { %v1310_v50 = vadd.f32 %v1247_v47, %v991_v25  ;;  %v1312_v48 = vadd.f32 %v1296_v33, %v993_v26  ;;  %3726 = vmatprep.subr.bf16.mxu1 %v4207_v23  ;;  %v4208_v25 = vld [vmem:[#allocation7 + $0x28] sm:$0xff]   ;;  %v4218_v47 = vld [vmem:[#allocation7 + $0x50] sm:$0xff]  }
 0x17b   :  { %v1249_v54 = vpop.f32.mrf.mxu0  ;;  %v1298_v49 = vpop.f32.mrf.mxu1  ;;  %v4209_v26 = vld [vmem:[#allocation7 + $0xa8] sm:$0xff]   ;;  %3705 = vmatpush3.bf16.msra.mxu0 %v4208_v25  ;;  %v4219_v33 = vld [vmem:[#allocation7 + $0xd0] sm:$0xff]  }
 0x17c   :  { %3727 = vmatpush3.bf16.msra.mxu1 %v4209_v26  ;;  %v4222_v54 = vld [vmem:[#allocation7 + $0x48] sm:$0xff]  }
 0x17d   :  { %v1250_v55 = vpop.f32.mrf.mxu0  ;;  %v1299_v56 = vpop.f32.mrf.mxu1  ;;  %v4223_v49 = vld [vmem:[#allocation7 + $0xc8] sm:$0xff]  }
 0x17e   :  { %v4224_v55 = vld [vmem:[#allocation7 + $0x8] sm:$0xff]  }
 0x17f   :  { %v1253_v57 = vpop.f32.mrf.mxu0  ;;  %v1302_v58 = vpop.f32.mrf.mxu1  ;;  %v4225_v56 = vld [vmem:[#allocation7 + $0x88] sm:$0xff]  }
 0x180   :  { %v1313_v53 = vadd.f32 %v1253_v57, %v994_v27  ;;  %v1315_v59 = vadd.f32 %v1302_v58, %v996_v31  ;;  %v4210_v27 = vld [vmem:[#allocation7 + $0x60] sm:$0xff]  }
 0x181   :  { %v1255_v45 = vpop.f32.mrf.mxu0  ;;  %v1304_v46 = vpop.f32.mrf.mxu1  ;;  %v4211_v31 = vld [vmem:[#allocation7 + $0xe0] sm:$0xff]   ;;  %3706 = vmatprep.subr.bf16.mxu0 %v4210_v27 }
 0x182   :  { %v1314_v60 = vadd.f32 %v1255_v45, %v995_v32  ;;  %v1316_v61 = vadd.f32 %v1304_v46, %v997_v37  ;;  %v4212_v32 = vld [vmem:[#allocation7 + $0x20] sm:$0xff]   ;;  %3728 = vmatprep.subr.bf16.mxu1 %v4211_v31 }
 0x183   :  { %v1257_v62 = vpop.f32.mrf.mxu0  ;;  %v1306_v63 = vpop.f32.mrf.mxu1  ;;  %v4213_v37 = vld [vmem:[#allocation7 + $0xa0] sm:$0xff]   ;;  %3707 = vmatpush3.bf16.msra.mxu0 %v4212_v32 }
 0x184   :  { %3729 = vmatpush3.bf16.msra.mxu1 %v4213_v37  ;;  %3708 = vmatprep.subr.bf16.mxu0 %v4214_v42  ;;  %v4226_v57 = vld [vmem:[#allocation7 + $0x40] sm:$0xff]  }
 0x185   :  { %v1258_v2 = vpop.f32.mrf.mxu0  ;;  %v1307_v51 = vpop.f32.mrf.mxu1  ;;  %3730 = vmatprep.subr.bf16.mxu1 %v4215_v43  ;;  %v4227_v58 = vld [vmem:[#allocation7 + $0xc0] sm:$0xff]  }
 0x197   :  { %v1568_v6 = vpop.f32.mrf.mxu0  ;;  %v1617_v7 = vpop.f32.mrf.mxu1 }
 0x198   :  { %v4575_v8 = vadd.f32 %v1568_v6, %v1309_v30  ;;  %v4577_v9 = vadd.f32 %v1617_v7, %v1311_v44  ;;  %v4216_v30 = vld [vmem:[#allocation7 + $0x18] sm:$0xff]  }
 0x199   :  { %v1570_v12 = vpop.f32.mrf.mxu0  ;;  %v1619_v13 = vpop.f32.mrf.mxu1  ;;  %v4217_v44 = vld [vmem:[#allocation7 + $0x98] sm:$0xff]   ;;  %3709 = vmatpush3.bf16.msra.mxu0 %v4216_v30 }
 0x19a   :  { %v4579_v16 = vadd.f32 %v1570_v12, %v1310_v50  ;;  %v4581_v19 = vadd.f32 %v1619_v13, %v1312_v48  ;;  %3731 = vmatpush3.bf16.msra.mxu1 %v4217_v44  ;;  %v4220_v50 = vld [vmem:[#allocation7 + $0x10] sm:$0xff]   ;;  %3710 = vmatprep.subr.bf16.mxu0 %v4218_v47 }
 0x19b   :  { %v1572_v20 = vpop.f32.mrf.mxu0  ;;  %v1621_v21 = vpop.f32.mrf.mxu1  ;;  %v4221_v48 = vld [vmem:[#allocation7 + $0x90] sm:$0xff]   ;;  %3732 = vmatprep.subr.bf16.mxu1 %v4219_v33 }
 0x19d   :  { %v1573_v24 = vpop.f32.mrf.mxu0  ;;  %v1622_v1 = vpop.f32.mrf.mxu1  ;;  %3711 = vmatpush3.bf16.msra.mxu0 %v4220_v50 }
 0x19e   :  { %3733 = vmatpush3.bf16.msra.mxu1 %v4221_v48  ;;  %3712 = vmatprep.subr.bf16.mxu0 %v4222_v54 }
 0x19f   :  { %v1576_v29 = vpop.f32.mrf.mxu0  ;;  %v1625_v17 = vpop.f32.mrf.mxu1  ;;  %3734 = vmatprep.subr.bf16.mxu1 %v4223_v49 }
 0x1a0   :  { %v4583_v18 = vadd.f32 %v1576_v29, %v1313_v53  ;;  %v4585_v34 = vadd.f32 %v1625_v17, %v1315_v59  ;;  %v4228_v53 = vld [vmem:[#allocation7] sm:$0xff]  }
 0x1a1   :  { %v1578_v35 = vpop.f32.mrf.mxu0  ;;  %v1627_v36 = vpop.f32.mrf.mxu1  ;;  %3713 = vmatpush3.bf16.msra.mxu0 %v4224_v55  ;;  %v4229_v59 = vld [vmem:[#allocation7 + $0x80] sm:$0xff]  }
 0x1a2   :  { %v1637_v28 = vadd.f32 %v1578_v35, %v1314_v60  ;;  %v1639_v0 = vadd.f32 %v1627_v36, %v1316_v61  ;;  %3735 = vmatpush3.bf16.msra.mxu1 %v4225_v56  ;;  %3714 = vmatprep.subr.bf16.mxu0 %v4226_v57 }
 0x1a3   :  { %v1580_v39 = vpop.f32.mrf.mxu0  ;;  %v1629_v38 = vpop.f32.mrf.mxu1  ;;  %3736 = vmatprep.subr.bf16.mxu1 %v4227_v58 }
 0x1a5   :  { %v1581_v40 = vpop.f32.mrf.mxu0  ;;  %v1630_v41 = vpop.f32.mrf.mxu1  ;;  %3715 = vmatpush3.bf16.msra.mxu0 %v4228_v53  ;;  %v2885_v53 = vlaneseq }
 0x1a6   :  { %3737 = vmatpush3.bf16.msra.mxu1 %v4229_v59 }
 0x1a7   :  { %v2886_v59 = vshrl.u32 %v2885_v53, 7 }
 0x1b7   :  { %v1877_v45 = vpop.f32.mrf.mxu0  ;;  %v1926_v46 = vpop.f32.mrf.mxu1 }
 0x1b8   :  { %v1941_v60 = vadd.f32 %v1877_v45, %v4575_v8  ;;  %v1943_v61 = vadd.f32 %v1926_v46, %v4577_v9  ;;  %v2887_v45 = vsub.s32 0, %v2886_v59  ;;  %v2895_v46 = vsub.s32 2, %v2886_v59 }
 0x1b9   :  { %v1879_v62 = vpop.f32.mrf.mxu0  ;;  %v1928_v63 = vpop.f32.mrf.mxu1 }
 0x1ba   :  { %v1942_v2 = vadd.f32 %v1879_v62, %v4579_v16  ;;  %v1944_v51 = vadd.f32 %v1928_v63, %v4581_v19  ;;  %v2899_v62 = vsub.s32 3, %v2886_v59 }
 0x1bb   :  { %v1881_v52 = vpop.f32.mrf.mxu0  ;;  %v1930_v3 = vpop.f32.mrf.mxu1 }
 0x1bd   :  { %v1882_v4 = vpop.f32.mrf.mxu0  ;;  %v1931_v5 = vpop.f32.mrf.mxu1 }
 0x1bf   :  { %v1885_v6 = vpop.f32.mrf.mxu0  ;;  %v1934_v7 = vpop.f32.mrf.mxu1 }
 0x1c0   :  { %v1945_v10 = vadd.f32 %v1885_v6, %v4583_v18  ;;  %v1947_v11 = vadd.f32 %v1934_v7, %v4585_v34 }
 0x1c1   :  { %v1887_v12 = vpop.f32.mrf.mxu0  ;;  %v1936_v8 = vpop.f32.mrf.mxu1 }
 0x1c2   :  { %v4593_v13 = vadd.f32 %v1887_v12, %v1637_v28  ;;  %v4595_v9 = vadd.f32 %v1936_v8, %v1639_v0 }
 0x1c3   :  { %v1889_v14 = vpop.f32.mrf.mxu0  ;;  %v1938_v15 = vpop.f32.mrf.mxu1 }
 0x1c5   :  { %v1890_v16 = vpop.f32.mrf.mxu0  ;;  %v1939_v19 = vpop.f32.mrf.mxu1 }
 0x1d7   :  { %v2183_v20 = vpop.f32.mrf.mxu0  ;;  %v2232_v21 = vpop.f32.mrf.mxu1 }
 0x1d8   :  { %v2247_v22 = vadd.f32 %v2183_v20, %v1941_v60  ;;  %v2249_v23 = vadd.f32 %v2232_v21, %v1943_v61  ;;  %v2883_v60 = vld [vmem:[#allocation5] sm:$0xf]  ;;  %v2891_v61 = vsub.s32 1, %v2886_v59 }
 0x1d9   :  { %v2185_v24 = vpop.f32.mrf.mxu0  ;;  %v2234_v1 = vpop.f32.mrf.mxu1  ;;  %v2896_v52 = vrot.slane %v2883_v60, %v2895_v46  ;;  %v2900_v6 = vrot.slane %v2883_v60, %v2899_v62 }
 0x1da   :  { %v2248_v25 = vadd.f32 %v2185_v24, %v1942_v2  ;;  %v2250_v26 = vadd.f32 %v2234_v1, %v1944_v51  ;;  %v2888_v51 = vrot.slane %v2883_v60, %v2887_v45  ;;  %v2892_v5 = vrot.slane %v2883_v60, %v2891_v61 }
 0x1db   :  { %v2187_v29 = vpop.f32.mrf.mxu0  ;;  %v2236_v17 = vpop.f32.mrf.mxu1 }
 0x1dd   :  { %v2188_v18 = vpop.f32.mrf.mxu0  ;;  %v2237_v34 = vpop.f32.mrf.mxu1 }
 0x1df   :  { %v2191_v35 = vpop.f32.mrf.mxu0  ;;  %v2240_v36 = vpop.f32.mrf.mxu1 }
 0x1e0   :  { %v2251_v27 = vadd.f32 %v2191_v35, %v1945_v10  ;;  %v2253_v31 = vadd.f32 %v2240_v36, %v1947_v11 }
 0x1e1   :  { %v2193_v28 = vpop.f32.mrf.mxu0  ;;  %v2242_v0 = vpop.f32.mrf.mxu1 }
 0x1e2   :  { %v2252_v34 = vadd.f32 %v2193_v28, %v4593_v13 }
 0x1e3   :  { %v2195_v32 = vpop.f32.mrf.mxu0  ;;  %v2244_v37 = vpop.f32.mrf.mxu1 }
 0x1e5   :  { %v2196_v39 = vpop.f32.mrf.mxu0  ;;  %v2245_v38 = vpop.f32.mrf.mxu1 }
 0x1f7   :  { %v2503_v40 = vpop.f32.mrf.mxu0  ;;  %v2552_v41 = vpop.f32.mrf.mxu1 }
 0x1f8   :  { %v2567_v63 = vadd.f32 %v2503_v40, %v2247_v22  ;;  %v2569_v2 = vadd.f32 %v2552_v41, %v2249_v23 }
 0x1f9   :  { %v2505_v42 = vpop.f32.mrf.mxu0  ;;  %v2554_v43 = vpop.f32.mrf.mxu1 }
 0x1fa   :  { %v2568_v7 = vadd.f32 %v2505_v42, %v2248_v25  ;;  %v2570_v10 = vadd.f32 %v2554_v43, %v2250_v26  ;;  %v2254_v25 = vadd.f32 %v2242_v0, %v4595_v9 }
 0x1fb   :  { %v2507_v30 = vpop.f32.mrf.mxu0  ;;  %v2556_v44 = vpop.f32.mrf.mxu1 }
 0x1fd   :  { %v2508_v47 = vpop.f32.mrf.mxu0  ;;  %v2557_v33 = vpop.f32.mrf.mxu1 }
 0x1ff   :  { %v2511_v50 = vpop.f32.mrf.mxu0  ;;  %v2560_v48 = vpop.f32.mrf.mxu1 }
 0x200   :  { %v2571_v26 = vadd.f32 %v2511_v50, %v2251_v27  ;;  %v2573_v35 = vadd.f32 %v2560_v48, %v2253_v31 }
 0x201   :  { %v2513_v54 = vpop.f32.mrf.mxu0  ;;  %v2562_v49 = vpop.f32.mrf.mxu1 }
 0x202   :  { %v2572_v38 = vadd.f32 %v2513_v54, %v2252_v34  ;;  %v2574_v40 = vadd.f32 %v2562_v49, %v2254_v25 }
 0x203   :  { %v2515_v55 = vpop.f32.mrf.mxu0  ;;  %v2564_v56 = vpop.f32.mrf.mxu1 }
 0x205   :  { %v2516_v57 = vpop.f32.mrf.mxu0  ;;  %v2565_v58 = vpop.f32.mrf.mxu1 }
 0x217   :  { %v2811_v3 = vpop.f32.mrf.mxu0  ;;  %v2860_v4 = vpop.f32.mrf.mxu1 }
 0x218   :  { %v2875_v11 = vadd.f32 %v2811_v3, %v2567_v63  ;;  %v2877_v12 = vadd.f32 %v2860_v4, %v2569_v2 }
 0x219   :  { %v2813_v8 = vpop.f32.mrf.mxu0  ;;  %v2862_v14 = vpop.f32.mrf.mxu1 }
 0x21a   :  { %v2905_v15 = vadd.f32 %v2888_v51, %v2875_v11  ;;  %v2907_v16 = vadd.f32 %v2896_v52, %v2877_v12  ;;  %v2876_v19 = vadd.f32 %v2813_v8, %v2568_v7  ;;  %v2878_v20 = vadd.f32 %v2862_v14, %v2570_v10 }
 0x21b   :  { %v2815_v21 = vpop.f32.mrf.mxu0  ;;  %v2864_v24 = vpop.f32.mrf.mxu1 }
 0x21c   :  { %v2906_v22 = vadd.f32 %v2892_v5, %v2876_v19  ;;  %v2908_v23 = vadd.f32 %v2900_v6, %v2878_v20  ;;  %v2913_v17 = vmax.f32 %v2905_v15, 0.0  ;;  %v2915_v18 = vmax.f32 %v2907_v16, 0.0 }
 0x21d   :  { %v2816_v1 = vpop.f32.mrf.mxu0  ;;  %v2865_v29 = vpop.f32.mrf.mxu1 }
 0x21e   :  { %v2914_v37 = vmax.f32 %v2906_v22, 0.0  ;;  %v2916_v39 = vmax.f32 %v2908_v23, 0.0  ;;  %v2925_v44 = vrot.slane %v2913_v17, 1  ;;  %v2927_v47 = vrot.slane %v2915_v18, 1 }
 0x21f   :  { %v2819_v36 = vpop.f32.mrf.mxu0  ;;  %v2868_v32 = vpop.f32.mrf.mxu1 }
 0x220   :  { %v2879_v41 = vadd.f32 %v2819_v36, %v2571_v26  ;;  %v2881_v42 = vadd.f32 %v2868_v32, %v2573_v35  ;;  %v2926_v27 = vrot.slane %v2914_v37, 1  ;;  %v2928_v31 = vrot.slane %v2916_v39, 1 }
 0x221   :  { %v2821_v43 = vpop.f32.mrf.mxu0  ;;  %v2870_v30 = vpop.f32.mrf.mxu1  ;;  %v2933_v58 = vmax.f32 %v2913_v17, %v2925_v44  ;;  %v2935_v53 = vmax.f32 %v2915_v18, %v2927_v47 }
 0x222   :  { %v2909_v33 = vadd.f32 %v2888_v51, %v2879_v41  ;;  %v2911_v55 = vadd.f32 %v2896_v52, %v2881_v42  ;;  %v2880_v56 = vadd.f32 %v2821_v43, %v2572_v38  ;;  %v2882_v13 = vadd.f32 %v2870_v30, %v2574_v40  ;;  %v3667_v41 = vld [vmem:[#allocation8] ss:$0 sm:$0xff] }
 0x223   :  { %v2823_v28 = vpop.f32.mrf.mxu0  ;;  %v2872_v9 = vpop.f32.mrf.mxu1  ;;  %v2934_v61 = vmax.f32 %v2914_v37, %v2926_v27  ;;  %v2936_v62 = vmax.f32 %v2916_v39, %v2928_v31  ;;  %v2941_v3 = vrot.slane %v2933_v58, 4  ;;  %v2943_v4 = vrot.slane %v2935_v53, 4 }
 0x224   :  { %v2917_v0 = vmax.f32 %v2909_v33, 0.0  ;;  %v2919_v50 = vmax.f32 %v2911_v55, 0.0  ;;  %v2910_v48 = vadd.f32 %v2892_v5, %v2880_v56  ;;  %v2912_v57 = vadd.f32 %v2900_v6, %v2882_v13 }
 0x225   :  { %v2824_v54 = vpop.f32.mrf.mxu0  ;;  %v2873_v49 = vpop.f32.mrf.mxu1  ;;  %v2942_v11 = vrot.slane %v2934_v61, 4  ;;  %v2944_v12 = vrot.slane %v2936_v62, 4  ;;  %v2949_v19 = vmax.f32 %v2933_v58, %v2941_v3  ;;  %v2951_v20 = vmax.f32 %v2935_v53, %v2943_v4 }
 0x226   :  { %v2957_v59 = vrot.slane %v2917_v0, 1  ;;  %v2959_v45 = vrot.slane %v2919_v50, 1  ;;  %v2918_v46 = vmax.f32 %v2910_v48, 0.0  ;;  %v2920_v60 = vmax.f32 %v2912_v57, 0.0 }
 0x227   :  { %v2950_v1 = vmax.f32 %v2934_v61, %v2942_v11  ;;  %v2952_v29 = vmax.f32 %v2936_v62, %v2944_v12 }
 0x228   :  { %v2965_v63 = vmax.f32 %v2917_v0, %v2957_v59  ;;  %v2967_v2 = vmax.f32 %v2919_v50, %v2959_v45  ;;  %v2958_v51 = vrot.slane %v2918_v46, 1  ;;  %v2960_v52 = vrot.slane %v2920_v60, 1 }
 0x22a   :  { %v2973_v7 = vrot.slane %v2965_v63, 4  ;;  %v2975_v10 = vrot.slane %v2967_v2, 4  ;;  %v2966_v5 = vmax.f32 %v2918_v46, %v2958_v51  ;;  %v2968_v6 = vmax.f32 %v2920_v60, %v2960_v52 }
 0x22c   :  { %v2981_v8 = vmax.f32 %v2965_v63, %v2973_v7  ;;  %v2983_v14 = vmax.f32 %v2967_v2, %v2975_v10  ;;  %v2974_v15 = vrot.slane %v2966_v5, 4  ;;  %v2976_v16 = vrot.slane %v2968_v6, 4 }
 0x22e   :  { %v2989_v21 = vrot.slane %v2981_v8, 7  ;;  %v2991_v24 = vrot.slane %v2983_v14, 7  ;;  %v2982_v22 = vmax.f32 %v2966_v5, %v2974_v15  ;;  %v2984_v23 = vmax.f32 %v2968_v6, %v2976_v16 }
 0x230   :  { %v2990_v17 = vrot.slane %v2982_v22, 7  ;;  %v2992_v18 = vrot.slane %v2984_v23, 7  ;;  %v2998_v34 = vsel %vm2997_vm5, %v2949_v19, %v2989_v21  ;;  %v3000_v25 = vsel %vm2997_vm5, %v2951_v20, %v2991_v24 }
 0x231   :  { %v3002_v37 = vpack.c.bf16 %v2998_v34, %v2998_v34  ;;  %v3004_v39 = vpack.c.bf16 %v3000_v25, %v3000_v25 }
 0x232   :  { %v2999_v26 = vsel %vm2997_vm5, %v2950_v1, %v2990_v17  ;;  %v3001_v35 = vsel %vm2997_vm5, %v2952_v29, %v2992_v18 }
 0x233   :  { %v3003_v36 = vpack.c.bf16 %v2999_v26, %v2999_v26  ;;  %v3005_v32 = vpack.c.bf16 %v3001_v35, %v3001_v35 }
 0x235   :  { %3301 = vmatprep.mubr.bf16.mxu0 %v3003_v36  ;;  %3341 = vmatprep.mubr.bf16.mxu1 %v3005_v32 }
 0x236   :  { %3302 = vmatmul.mubr.bf16.vlgmr.msra.gmra.mxu0 %v3002_v37  ;;  %3342 = vmatmul.mubr.bf16.vlgmr.msra.gmra.mxu1 %v3004_v39 }
 0x2f6   :  { %v3716_v38 = vpop.f32.mrf.mxu0  ;;  %v3738_v40 = vpop.f32.mrf.mxu1 }
 0x2f8   :  { %v3717_v42 = vpop.f32.mrf.mxu0  ;;  %v3739_v43 = vpop.f32.mrf.mxu1 }
 0x2f9   :  { %v3718_v30 = vadd.f32 %v3717_v42, %v3716_v38  ;;  %v3740_v55 = vadd.f32 %v3739_v43, %v3738_v40 }
 0x2fa   :  { %v3719_v44 = vpop.f32.mrf.mxu0  ;;  %v3741_v47 = vpop.f32.mrf.mxu1 }
 0x2fb   :  { %v3304_v33 = vadd.f32 %v3718_v30, %v3667_v41 }
 0x2fc   :  { %v3720_v56 = vpop.f32.mrf.mxu0  ;;  %v3742_v13 = vpop.f32.mrf.mxu1 }
 0x2fd   :  { %v3344_v28 = vadd.f32 %v3740_v55, %v3304_v33 }
 0x2ff   :  { %3349 = vst [vmem:[#allocation10] sm:$0x3] %v3344_v28 }
 0x300   :  { %4322 = shalt.err (!%p4319_p10)
}
 0x301   :  { %3359 = dma.vmem_to_hbm [thread:$0]  %s3357_s4, 32, %s4607_s5, [#allocation4]  }
 0x302   :  { %4337 = dma.done.wait [#allocation4], 32  }
 0x303   :  { %4338 = vsyncadd [#allocation4], 4294967264 }
 0x304   :  { %3363 = vsyncpa [#allocation3], 1 }
 0x305   :  { %3364 = vsyncpa [#allocation6], 1 }
 0x306   :  { %3365 = vsyncpa [#allocation9], 1 }
 0x307   :  { %3366 = vsyncpa [#allocation4], 1 }

</bundles_post_ra>
